<compile_context>
chip_gen: v5e
topology: v5e:2x2
jax: 0.10.0
libtpu: 0.0.40
codegen_flags: <defaults>
</compile_context>

<pallas_src>
import functools

import jax
import jax.numpy as jnp
from jax import lax
from jax.experimental import pallas as pl
from jax.experimental.pallas import tpu as pltpu

_EPS = 1e-5


# ----------------------------------------------------------------------------
# Generation-aware tiling knobs.
# ----------------------------------------------------------------------------
def _vmem_budget():
    """(row_tile_cap, vmem_limit_bytes) sized to the chip generation."""
    try:
        phys = int(getattr(pltpu.get_tpu_info(), "vmem_capacity_bytes",
                           128 * 1024 * 1024))
    except Exception:
        phys = 128 * 1024 * 1024
    if phys >= 128 * 1024 * 1024:          # v5e / v6e (128 MiB physical VMEM)
        return 2048, 64 * 1024 * 1024
    return 1024, 32 * 1024 * 1024          # v7x (64 MiB physical VMEM)


def _pick_row_tile(rows, bytes_per_row, cap, budget):
    """Largest multiple-of-8 row tile <= cap whose double-buffered tiles fit
    `budget`; prefers an exact divisor of `rows` (no padding), otherwise pads."""
    cap = min(cap, ((rows + 7) // 8) * 8)
    cap = min(cap, max(8, (budget // (2 * bytes_per_row)) // 8 * 8))
    cap = max(8, (cap // 8) * 8)
    t = cap
    while t >= 8:
        if rows % t == 0:
            return t, rows
        t -= 8
    t = cap
    return t, ((rows + t - 1) // t) * t


# ----------------------------------------------------------------------------
# Stage 1: 1x1 conv (x @ w1) + per-tile sum / sumsq of the conv output.
# ----------------------------------------------------------------------------
def _conv1x1_stats_kernel(x_ref, w_ref, y_ref, stats_ref):
    acc = jnp.dot(x_ref[...], w_ref[...], preferred_element_type=jnp.float32)
    y_ref[...] = acc.astype(y_ref.dtype)
    s = jnp.sum(acc, axis=0, keepdims=True)
    q = jnp.sum(acc * acc, axis=0, keepdims=True)
    stats_ref[...] = jnp.concatenate([s, q], axis=0).reshape(stats_ref.shape)


# ----------------------------------------------------------------------------
# Stage 2: fused BN1+ReLU, 3x3 conv (pad 1) via a single K=9P im2col matmul,
# plus per-image stats of the conv output.  Grid is over batch images.
# ----------------------------------------------------------------------------
def _bn_relu_conv3x3_stats_kernel(y1_ref, coef_ref, w2_ref, y2_ref, stats_ref,
                                  apad_ref):
    _, H, W, P = y1_ref.shape

    # Zero the halo every step (cheap strips).  Required now that the grid
    # axis is "parallel": per-core scratch cannot rely on an n==0 init.
    zrow = jnp.zeros((1, W + 2, P), apad_ref.dtype)
    zcol = jnp.zeros((H, 1, P), apad_ref.dtype)
    apad_ref[0:1, :, :] = zrow
    apad_ref[H + 1:H + 2, :, :] = zrow
    apad_ref[1:H + 1, 0:1, :] = zcol
    apad_ref[1:H + 1, W + 1:W + 2, :] = zcol

    alpha = coef_ref[0:1, :].reshape(1, 1, P)
    beta = coef_ref[1:2, :].reshape(1, 1, P)
    a = jnp.maximum(y1_ref[0].astype(jnp.float32) * alpha + beta, 0.0)
    apad_ref[1:H + 1, 1:W + 1, :] = a.astype(apad_ref.dtype)  # one f32->bf16 cast

    ap = apad_ref[...]                                         # (H+2, W+2, P) bf16
    # Hoisted dx-im2col: the sublane-unaligned W-slices are materialized ONCE.
    ap3 = jnp.concatenate(
        [ap[:, 0:W, :], ap[:, 1:W + 1, :], ap[:, 2:W + 2, :]], axis=-1)  # (H+2,W,3P)
    # Leading-axis dy-slices are cheap; fold into one K=9P matmul.
    patch = jnp.concatenate(
        [ap3[0:H], ap3[1:H + 1], ap3[2:H + 2]], axis=-1)                 # (H,W,9P)
    acc = jnp.dot(patch.reshape(H * W, 9 * P), w2_ref[...],
                  preferred_element_type=jnp.float32)                    # (H*W,P)

    y2_ref[...] = acc.reshape(1, H, W, P).astype(y2_ref.dtype)
    s = jnp.sum(acc, axis=0, keepdims=True)
    q = jnp.sum(acc * acc, axis=0, keepdims=True)
    stats_ref[...] = jnp.concatenate([s, q], axis=0).reshape(stats_ref.shape)


# ----------------------------------------------------------------------------
# Stage 3: fused BN2+ReLU, 1x1 conv, per-tile stats.  `valid_rows` masks
# zero-padded rows (BN+ReLU of a zero row is NOT zero) so stats stay exact.
# ----------------------------------------------------------------------------
def _bn_relu_conv1x1_stats_kernel(y_ref, coef_ref, w_ref, o_ref, stats_ref, *,
                                  valid_rows):
    a = y_ref[...].astype(jnp.float32)
    a = jnp.maximum(a * coef_ref[0:1, :] + coef_ref[1:2, :], 0.0)
    if valid_rows is not None:
        tr = a.shape[0]
        row = pl.program_id(0) * tr + lax.broadcasted_iota(jnp.int32, a.shape, 0)
        a = jnp.where(row < valid_rows, a, 0.0)
    acc = jnp.dot(a.astype(w_ref.dtype), w_ref[...],
                  preferred_element_type=jnp.float32)
    o_ref[...] = acc.astype(o_ref.dtype)
    s = jnp.sum(acc, axis=0, keepdims=True)
    q = jnp.sum(acc * acc, axis=0, keepdims=True)
    stats_ref[...] = jnp.concatenate([s, q], axis=0).reshape(stats_ref.shape)


# ----------------------------------------------------------------------------
# Stage 4: BN3 + residual add + ReLU.  Residual is streamed in as bf16.
# ----------------------------------------------------------------------------
def _bn_residual_relu_kernel(y_ref, coef_ref, res_ref, o_ref):
    a = y_ref[...].astype(jnp.float32) * coef_ref[0:1, :] + coef_ref[1:2, :]
    o_ref[...] = jnp.maximum(a + res_ref[...].astype(jnp.float32),
                             0.0).astype(o_ref.dtype)


# ----------------------------------------------------------------------------
# JAX-level helper: fold training-mode BN (biased variance) into y*alpha+beta
# from per-block partial sum / sumsq stats (reduced here, per-channel only).
# ----------------------------------------------------------------------------
def _bn_coeffs(partial_stats, count, gamma, beta, eps=_EPS):
    stats = jnp.sum(partial_stats.astype(jnp.float32), axis=0)   # (2, C)
    s, sq = stats[0], stats[1]
    mean = s / count
    var = jnp.maximum(sq / count - mean * mean, 0.0)
    alpha = gamma.astype(jnp.float32) * lax.rsqrt(var + eps)
    return jnp.stack([alpha, beta.astype(jnp.float32) - mean * alpha], axis=0)


# ----------------------------------------------------------------------------
# Wrapper (NCHW in / NCHW out, like the PyTorch module)
# ----------------------------------------------------------------------------
def bottleneck_forward(x_nchw, params):
    (w1, w2, w3, g1, b1, g2, b2, g3, b3) = params
    N, Cin, H, W = x_nchw.shape
    P = w1.shape[0]          # planes
    Cout = w3.shape[0]       # planes * 4
    assert Cin == Cout, "residual add requires inplanes == planes * expansion"

    R = N * H * W
    # Boundary layout change only (kernels are NHWC / channels-on-lanes).
    x2d_bf = jnp.transpose(x_nchw, (0, 2, 3, 1)).reshape(R, Cin).astype(jnp.bfloat16)

    # Channels-last, bf16 weights (conv2 pre-reshaped for the K=9P im2col dot).
    w1_k = jnp.transpose(w1[:, :, 0, 0], (1, 0)).astype(jnp.bfloat16)      # (Cin, P)
    w2_k = jnp.transpose(w2, (2, 3, 1, 0)).reshape(9 * P, P).astype(jnp.bfloat16)
    w3_k = jnp.transpose(w3[:, :, 0, 0], (1, 0)).astype(jnp.bfloat16)      # (P, Cout)

    cap, vmem_limit = _vmem_budget()
    bytes_per_row = max(2 * (Cin + P),                    # stage 1 (bf16 in+out)
                        2 * (P + Cout),                   # stage 3 (bf16 in+out)
                        2 * Cout + 2 * Cout + 4 * Cout)   # stage 4 (bf16+bf16+f32)
    TR, RP = _pick_row_tile(R, bytes_per_row, cap, vmem_limit // 2)
    n_tiles = RP // TR
    pad = RP - R

    par = pltpu.CompilerParams(dimension_semantics=("parallel",),
                               vmem_limit_bytes=vmem_limit)

    def padded(a):
        return a if pad == 0 else jnp.pad(a, ((0, pad), (0, 0)))

    def cropped(a):
        return a if pad == 0 else a[:R]

    x2d_bf_p = padded(x2d_bf)

    # ---- stage 1: conv1 (1x1) + partial stats -----------------------------
    y1_pre, pstats1 = pl.pallas_call(
        _conv1x1_stats_kernel,
        grid=(n_tiles,),
        in_specs=[pl.BlockSpec((TR, Cin), lambda i: (i, 0)),
                  pl.BlockSpec((Cin, P), lambda i: (0, 0))],
        out_specs=(pl.BlockSpec((TR, P), lambda i: (i, 0)),
                   pl.BlockSpec((1, 2, P), lambda i: (i, 0, 0))),
        out_shape=(jax.ShapeDtypeStruct((RP, P), jnp.bfloat16),
                   jax.ShapeDtypeStruct((n_tiles, 2, P), jnp.float32)),
        compiler_params=par,
    )(x2d_bf_p, w1_k)
    coef1 = _bn_coeffs(pstats1, R, g1, b1)

    # ---- stage 2: bn1 + relu + conv2 (3x3, pad 1) + partial stats ----------
    y1_img = cropped(y1_pre).reshape(N, H, W, P)
    y2_pre, pstats2 = pl.pallas_call(
        _bn_relu_conv3x3_stats_kernel,
        grid=(N,),
        in_specs=[pl.BlockSpec((1, H, W, P), lambda n: (n, 0, 0, 0)),
                  pl.BlockSpec((2, P), lambda n: (0, 0)),
                  pl.BlockSpec((9 * P, P), lambda n: (0, 0))],
        out_specs=(pl.BlockSpec((1, H, W, P), lambda n: (n, 0, 0, 0)),
                   pl.BlockSpec((1, 2, P), lambda n: (n, 0, 0))),
        out_shape=(jax.ShapeDtypeStruct((N, H, W, P), jnp.bfloat16),
                   jax.ShapeDtypeStruct((N, 2, P), jnp.float32)),
        scratch_shapes=[pltpu.VMEM((H + 2, W + 2, P), jnp.bfloat16)],
        compiler_params=par,
    )(y1_img, coef1, w2_k)
    coef2 = _bn_coeffs(pstats2, R, g2, b2)

    # ---- stage 3: bn2 + relu + conv3 (1x1) + partial stats -----------------
    y2_rows = padded(y2_pre.reshape(R, P))
    kern3 = functools.partial(_bn_relu_conv1x1_stats_kernel,
                              valid_rows=(R if pad else None))
    y3_pre, pstats3 = pl.pallas_call(
        kern3,
        grid=(n_tiles,),
        in_specs=[pl.BlockSpec((TR, P), lambda i: (i, 0)),
                  pl.BlockSpec((2, P), lambda i: (0, 0)),
                  pl.BlockSpec((P, Cout), lambda i: (0, 0))],
        out_specs=(pl.BlockSpec((TR, Cout), lambda i: (i, 0)),
                   pl.BlockSpec((1, 2, Cout), lambda i: (i, 0, 0))),
        out_shape=(jax.ShapeDtypeStruct((RP, Cout), jnp.bfloat16),
                   jax.ShapeDtypeStruct((n_tiles, 2, Cout), jnp.float32)),
        compiler_params=par,
    )(y2_rows, coef2, w3_k)
    coef3 = _bn_coeffs(pstats3, R, g3, b3)

    # ---- stage 4: bn3 + residual add + relu --------------------------------
    out2d = pl.pallas_call(
        _bn_residual_relu_kernel,
        grid=(n_tiles,),
        in_specs=[pl.BlockSpec((TR, Cout), lambda i: (i, 0)),
                  pl.BlockSpec((2, Cout), lambda i: (0, 0)),
                  pl.BlockSpec((TR, Cout), lambda i: (i, 0))],
        out_specs=pl.BlockSpec((TR, Cout), lambda i: (i, 0)),
        out_shape=jax.ShapeDtypeStruct((RP, Cout), jnp.float32),
        compiler_params=par,
    )(y3_pre, coef3, x2d_bf_p)

    out = cropped(out2d).reshape(N, H, W, Cout)
    return jnp.transpose(out, (0, 3, 1, 2))


# ----------------------------------------------------------------------------
# Pure-JAX reference (NCHW, mirrors the PyTorch forward) for validation.
# ----------------------------------------------------------------------------
def bottleneck_reference(x, params):
    (w1, w2, w3, g1, b1, g2, b2, g3, b3) = params
    dn = ('NCHW', 'OIHW', 'NCHW')

    def bn_train(y, g, b, eps=_EPS):
        mean = y.mean(axis=(0, 2, 3), keepdims=True)
        var = ((y - mean) ** 2).mean(axis=(0, 2, 3), keepdims=True)
        return ((y - mean) / jnp.sqrt(var + eps)) * g.reshape(1, -1, 1, 1) \
            + b.reshape(1, -1, 1, 1)

    out = lax.conv_general_dilated(x, w1, (1, 1), 'VALID', dimension_numbers=dn)
    out = jnp.maximum(bn_train(out, g1, b1), 0.0)
    out = lax.conv_general_dilated(out, w2, (1, 1), [(1, 1), (1, 1)],
                                   dimension_numbers=dn)
    out = jnp.maximum(bn_train(out, g2, b2), 0.0)
    out = lax.conv_general_dilated(out, w3, (1, 1), 'VALID', dimension_numbers=dn)
    out = bn_train(out, g3, b3)
    return jnp.maximum(out + x, 0.0)


# ----------------------------------------------------------------------------
# Deterministic parameter construction (shapes from Bottleneck.__init__)
# ----------------------------------------------------------------------------
def make_params(key, inplanes, planes):
    expansion = 4
    ks = jax.random.split(key, 9)
    w1 = jax.random.normal(ks[0], (planes, inplanes, 1, 1), jnp.float32) * 0.2
    w2 = jax.random.normal(ks[1], (planes, planes, 3, 3), jnp.float32) * 0.1
    w3 = jax.random.normal(ks[2], (planes * expansion, planes, 1, 1),
                           jnp.float32) * 0.2
    g1 = 1.0 + 0.1 * jax.random.normal(ks[3], (planes,), jnp.float32)
    b1 = 0.1 * jax.random.normal(ks[4], (planes,), jnp.float32)
    g2 = 1.0 + 0.1 * jax.random.normal(ks[5], (planes,), jnp.float32)
    b2 = 0.1 * jax.random.normal(ks[6], (planes,), jnp.float32)
    g3 = 1.0 + 0.1 * jax.random.normal(ks[7], (planes * expansion,), jnp.float32)
    b3 = 0.1 * jax.random.normal(ks[8], (planes * expansion,), jnp.float32)
    return (w1, w2, w3, g1, b1, g2, b2, g3, b3)


if __name__ == "__main__":
    key = jax.random.PRNGKey(0)
    kx, kp = jax.random.split(key)

    planes = 4
    inplanes = planes * 4       # downsample=None -> residual add needs this
    N, H, W = 2, 16, 16

    x = jax.random.normal(kx, (N, inplanes, H, W), jnp.float32)
    params = make_params(kp, inplanes, planes)

    fwd = jax.jit(bottleneck_forward)
    out = jax.block_until_ready(fwd(x, params))
    ref = jax.block_until_ready(bottleneck_reference(x, params))

    assert out.shape == (N, inplanes, H, W)
    # bf16 matmul operands / intermediates (f32 accumulation) -> looser tol.
    if not jnp.allclose(out, ref, rtol=5e-2, atol=5e-2):
        raise AssertionError("Pallas kernel does not match JAX reference")
    print("KERNEL_OK")
</pallas_src>

<mosaic_0001>
module attributes {stable_mosaic.version = 11 : i64} {
  func.func @_conv1x1_stats_kernel(%arg0: i32, %arg1: memref<512x16xbf16, #tpu.memory_space<vmem>>, %arg2: memref<16x4xbf16, #tpu.memory_space<vmem>>, %arg3: memref<512x4xbf16, #tpu.memory_space<vmem>>, %arg4: memref<1x2x4xf32, #tpu.memory_space<vmem>>) attributes {dimension_semantics = [#tpu.dimension_semantics<parallel>], iteration_bounds = array<i64: 1>, scalar_prefetch = 0 : i64, scratch_operands = 0 : i64, tpu.core_type = #tpu.core_type<tc>, window_params = [{transform_indices = @transform_0, window_bounds = array<i64: 512, 16>}, {pipeline_mode = #tpu.pipeline_mode<synchronous>, transform_indices = @transform_1, window_bounds = array<i64: 16, 4>}, {transform_indices = @transform_2, window_bounds = array<i64: 512, 4>}, {transform_indices = @transform_3, window_bounds = array<i64: 1, 2, 4>}]} {
    %c0 = arith.constant 0 : index
    %c0_0 = arith.constant 0 : index
    %0 = vector.load %arg1[%c0, %c0_0] : memref<512x16xbf16, #tpu.memory_space<vmem>>, vector<512x16xbf16>
    %c0_1 = arith.constant 0 : index
    %c0_2 = arith.constant 0 : index
    %1 = vector.load %arg2[%c0_1, %c0_2] : memref<16x4xbf16, #tpu.memory_space<vmem>>, vector<16x4xbf16>
    %cst = arith.constant dense<0.000000e+00> : vector<512x4xf32>
    %2 = tpu.matmul %0, %1, %cst {dimension_numbers = #tpu.dot_dimension_numbers<[1], [0], [0], [1], [0, 0, 1, 1], [], []>} : vector<512x16xbf16>, vector<16x4xbf16>, vector<512x4xf32> -> vector<512x4xf32>
    %3 = arith.truncf %2 : vector<512x4xf32> to vector<512x4xbf16>
    %c0_3 = arith.constant 0 : index
    %c0_4 = arith.constant 0 : index
    %4 = vector.load %arg3[%c0_3, %c0_4] : memref<512x4xbf16, #tpu.memory_space<vmem>>, vector<512x4xbf16>
    tpu.vector_store %arg3[%c0_3, %c0_4], %3 {strides = array<i32>} : memref<512x4xbf16, #tpu.memory_space<vmem>>, vector<512x4xbf16>,
    %cst_5 = arith.constant dense<0.000000e+00> : vector<4xf32>
    %5 = vector.multi_reduction <add>, %2, %cst_5 [0] : vector<512x4xf32> to vector<4xf32>
    %6 = vector.shape_cast %5 : vector<4xf32> to vector<1x4xf32>
    %7 = arith.mulf %2, %2 : vector<512x4xf32>
    %cst_6 = arith.constant dense<0.000000e+00> : vector<4xf32>
    %8 = vector.multi_reduction <add>, %7, %cst_6 [0] : vector<512x4xf32> to vector<4xf32>
    %9 = vector.shape_cast %8 : vector<4xf32> to vector<1x4xf32>
    %10 = tpu.concatenate %6, %9 in 0 : vector<1x4xf32>, vector<1x4xf32> -> vector<2x4xf32>
    %11 = vector.shape_cast %10 : vector<2x4xf32> to vector<1x2x4xf32>
    %c0_7 = arith.constant 0 : index
    %c0_8 = arith.constant 0 : index
    %c0_9 = arith.constant 0 : index
    %12 = vector.load %arg4[%c0_7, %c0_8, %c0_9] : memref<1x2x4xf32, #tpu.memory_space<vmem>>, vector<1x2x4xf32>
    tpu.vector_store %arg4[%c0_7, %c0_8, %c0_9], %11 {strides = array<i32>} : memref<1x2x4xf32, #tpu.memory_space<vmem>>, vector<1x2x4xf32>,
    return
  }
  func.func @transform_0(%arg0: i32) -> (i32, i32) {
    %c0_i32 = arith.constant 0 : i32
    %c0_i32_0 = arith.constant 0 : i32
    return %arg0, %c0_i32 : i32, i32
  }
  func.func @transform_1(%arg0: i32) -> (i32, i32) {
    %c0_i32 = arith.constant 0 : i32
    %c0_i32_0 = arith.constant 0 : i32
    %c0_i32_1 = arith.constant 0 : i32
    return %c0_i32, %c0_i32_0 : i32, i32
  }
  func.func @transform_2(%arg0: i32) -> (i32, i32) {
    %c0_i32 = arith.constant 0 : i32
    %c0_i32_0 = arith.constant 0 : i32
    return %arg0, %c0_i32 : i32, i32
  }
  func.func @transform_3(%arg0: i32) -> (i32, i32, i32) {
    %c0_i32 = arith.constant 0 : i32
    %c0_i32_0 = arith.constant 0 : i32
    %c0_i32_1 = arith.constant 0 : i32
    return %arg0, %c0_i32, %c0_i32_0 : i32, i32, i32
  }
}

module attributes {stable_mosaic.version = 11 : i64} {
  func.func @_bn_relu_conv3x3_stats_kernel(%arg0: i32, %arg1: memref<1x16x16x4xbf16, #tpu.memory_space<vmem>>, %arg2: memref<2x4xf32, #tpu.memory_space<vmem>>, %arg3: memref<36x4xbf16, #tpu.memory_space<vmem>>, %arg4: memref<1x16x16x4xbf16, #tpu.memory_space<vmem>>, %arg5: memref<1x2x4xf32, #tpu.memory_space<vmem>>, %arg6: memref<18x18x4xbf16, #tpu.memory_space<vmem>>) attributes {dimension_semantics = [#tpu.dimension_semantics<parallel>], iteration_bounds = array<i64: 2>, scalar_prefetch = 0 : i64, scratch_operands = 1 : i64, tpu.core_type = #tpu.core_type<tc>, window_params = [{transform_indices = @transform_0, window_bounds = array<i64: 1, 16, 16, 4>}, {pipeline_mode = #tpu.pipeline_mode<synchronous>, transform_indices = @transform_1, window_bounds = array<i64: 2, 4>}, {pipeline_mode = #tpu.pipeline_mode<synchronous>, transform_indices = @transform_2, window_bounds = array<i64: 36, 4>}, {transform_indices = @transform_3, window_bounds = array<i64: 1, 16, 16, 4>}, {transform_indices = @transform_4, window_bounds = array<i64: 1, 2, 4>}]} {
    %cst = arith.constant 0.000000e+00 : bf16
    %0 = vector.broadcast %cst : bf16 to vector<1x18x4xbf16>
    %cst_0 = arith.constant 0.000000e+00 : bf16
    %1 = vector.broadcast %cst_0 : bf16 to vector<16x1x4xbf16>
    %c0 = arith.constant 0 : index
    %c0_1 = arith.constant 0 : index
    %c0_2 = arith.constant 0 : index
    %2 = vector.load %arg6[%c0, %c0_1, %c0_2] : memref<18x18x4xbf16, #tpu.memory_space<vmem>>, vector<1x18x4xbf16>
    tpu.vector_store %arg6[%c0, %c0_1, %c0_2], %0 {strides = array<i32>} : memref<18x18x4xbf16, #tpu.memory_space<vmem>>, vector<1x18x4xbf16>,
    %c17 = arith.constant 17 : index
    %c0_3 = arith.constant 0 : index
    %c0_4 = arith.constant 0 : index
    %3 = vector.load %arg6[%c17, %c0_3, %c0_4] : memref<18x18x4xbf16, #tpu.memory_space<vmem>>, vector<1x18x4xbf16>
    tpu.vector_store %arg6[%c17, %c0_3, %c0_4], %0 {strides = array<i32>} : memref<18x18x4xbf16, #tpu.memory_space<vmem>>, vector<1x18x4xbf16>,
    %c1 = arith.constant 1 : index
    %c0_5 = arith.constant 0 : index
    %c0_6 = arith.constant 0 : index
    %4 = vector.load %arg6[%c1, %c0_5, %c0_6] : memref<18x18x4xbf16, #tpu.memory_space<vmem>>, vector<16x1x4xbf16>
    tpu.vector_store %arg6[%c1, %c0_5, %c0_6], %1 {strides = array<i32>} : memref<18x18x4xbf16, #tpu.memory_space<vmem>>, vector<16x1x4xbf16>,
    %c1_7 = arith.constant 1 : index
    %c17_8 = arith.constant 17 : index
    %c0_9 = arith.constant 0 : index
    %5 = vector.load %arg6[%c1_7, %c17_8, %c0_9] : memref<18x18x4xbf16, #tpu.memory_space<vmem>>, vector<16x1x4xbf16>
    tpu.vector_store %arg6[%c1_7, %c17_8, %c0_9], %1 {strides = array<i32>} : memref<18x18x4xbf16, #tpu.memory_space<vmem>>, vector<16x1x4xbf16>,
    %c0_10 = arith.constant 0 : index
    %c0_11 = arith.constant 0 : index
    %6 = vector.load %arg2[%c0_10, %c0_11] : memref<2x4xf32, #tpu.memory_space<vmem>>, vector<1x4xf32>
    %7 = vector.shape_cast %6 : vector<1x4xf32> to vector<1x1x4xf32>
    %c1_12 = arith.constant 1 : index
    %c0_13 = arith.constant 0 : index
    %8 = vector.load %arg2[%c1_12, %c0_13] : memref<2x4xf32, #tpu.memory_space<vmem>>, vector<1x4xf32>
    %9 = vector.shape_cast %8 : vector<1x4xf32> to vector<1x1x4xf32>
    %c0_14 = arith.constant 0 : index
    %c0_15 = arith.constant 0 : index
    %c0_16 = arith.constant 0 : index
    %c0_17 = arith.constant 0 : index
    %10 = vector.load %arg1[%c0_14, %c0_15, %c0_16, %c0_17] : memref<1x16x16x4xbf16, #tpu.memory_space<vmem>>, vector<1x16x16x4xbf16>
    %11 = vector.shape_cast %10 : vector<1x16x16x4xbf16> to vector<16x16x4xbf16>
    %12 = arith.extf %11 : vector<16x16x4xbf16> to vector<16x16x4xf32>
    %13 = vector.broadcast %7 : vector<1x1x4xf32> to vector<16x16x4xf32>
    %14 = arith.mulf %12, %13 : vector<16x16x4xf32>
    %15 = vector.broadcast %9 : vector<1x1x4xf32> to vector<16x16x4xf32>
    %16 = arith.addf %14, %15 : vector<16x16x4xf32>
    %cst_18 = arith.constant 0.000000e+00 : f32
    %17 = vector.broadcast %cst_18 : f32 to vector<16x16x4xf32>
    %18 = arith.maximumf %16, %17 : vector<16x16x4xf32>
    %19 = arith.truncf %18 : vector<16x16x4xf32> to vector<16x16x4xbf16>
    %c1_19 = arith.constant 1 : index
    %c1_20 = arith.constant 1 : index
    %c0_21 = arith.constant 0 : index
    %20 = vector.load %arg6[%c1_19, %c1_20, %c0_21] : memref<18x18x4xbf16, #tpu.memory_space<vmem>>, vector<16x16x4xbf16>
    tpu.vector_store %arg6[%c1_19, %c1_20, %c0_21], %19 {strides = array<i32>} : memref<18x18x4xbf16, #tpu.memory_space<vmem>>, vector<16x16x4xbf16>,
    %c0_22 = arith.constant 0 : index
    %c0_23 = arith.constant 0 : index
    %c0_24 = arith.constant 0 : index
    %21 = vector.load %arg6[%c0_22, %c0_23, %c0_24] : memref<18x18x4xbf16, #tpu.memory_space<vmem>>, vector<18x18x4xbf16>
    %22 = vector.extract_strided_slice %21 {offsets = [0, 0, 0], sizes = [18, 16, 4], strides = [1, 1, 1]} : vector<18x18x4xbf16> to vector<18x16x4xbf16>
    %23 = vector.extract_strided_slice %21 {offsets = [0, 1, 0], sizes = [18, 16, 4], strides = [1, 1, 1]} : vector<18x18x4xbf16> to vector<18x16x4xbf16>
    %24 = vector.extract_strided_slice %21 {offsets = [0, 2, 0], sizes = [18, 16, 4], strides = [1, 1, 1]} : vector<18x18x4xbf16> to vector<18x16x4xbf16>
    %25 = tpu.concatenate %22, %23, %24 in 2 : vector<18x16x4xbf16>, vector<18x16x4xbf16>, vector<18x16x4xbf16> -> vector<18x16x12xbf16>
    %26 = vector.extract_strided_slice %25 {offsets = [0, 0, 0], sizes = [16, 16, 12], strides = [1, 1, 1]} : vector<18x16x12xbf16> to vector<16x16x12xbf16>
    %27 = vector.extract_strided_slice %25 {offsets = [1, 0, 0], sizes = [16, 16, 12], strides = [1, 1, 1]} : vector<18x16x12xbf16> to vector<16x16x12xbf16>
    %28 = vector.extract_strided_slice %25 {offsets = [2, 0, 0], sizes = [16, 16, 12], strides = [1, 1, 1]} : vector<18x16x12xbf16> to vector<16x16x12xbf16>
    %29 = tpu.concatenate %26, %27, %28 in 2 : vector<16x16x12xbf16>, vector<16x16x12xbf16>, vector<16x16x12xbf16> -> vector<16x16x36xbf16>
    %30 = vector.shape_cast %29 : vector<16x16x36xbf16> to vector<256x36xbf16>
    %c0_25 = arith.constant 0 : index
    %c0_26 = arith.constant 0 : index
    %31 = vector.load %arg3[%c0_25, %c0_26] : memref<36x4xbf16, #tpu.memory_space<vmem>>, vector<36x4xbf16>
    %cst_27 = arith.constant dense<0.000000e+00> : vector<256x4xf32>
    %32 = tpu.matmul %30, %31, %cst_27 {dimension_numbers = #tpu.dot_dimension_numbers<[1], [0], [0], [1], [0, 0, 1, 1], [], []>} : vector<256x36xbf16>, vector<36x4xbf16>, vector<256x4xf32> -> vector<256x4xf32>
    %33 = vector.shape_cast %32 : vector<256x4xf32> to vector<1x16x16x4xf32>
    %34 = arith.truncf %33 : vector<1x16x16x4xf32> to vector<1x16x16x4xbf16>
    %c0_28 = arith.constant 0 : index
    %c0_29 = arith.constant 0 : index
    %c0_30 = arith.constant 0 : index
    %c0_31 = arith.constant 0 : index
    %35 = vector.load %arg4[%c0_28, %c0_29, %c0_30, %c0_31] : memref<1x16x16x4xbf16, #tpu.memory_space<vmem>>, vector<1x16x16x4xbf16>
    tpu.vector_store %arg4[%c0_28, %c0_29, %c0_30, %c0_31], %34 {strides = array<i32>} : memref<1x16x16x4xbf16, #tpu.memory_space<vmem>>, vector<1x16x16x4xbf16>,
    %cst_32 = arith.constant dense<0.000000e+00> : vector<4xf32>
    %36 = vector.multi_reduction <add>, %32, %cst_32 [0] : vector<256x4xf32> to vector<4xf32>
    %37 = vector.shape_cast %36 : vector<4xf32> to vector<1x4xf32>
    %38 = arith.mulf %32, %32 : vector<256x4xf32>
    %cst_33 = arith.constant dense<0.000000e+00> : vector<4xf32>
    %39 = vector.multi_reduction <add>, %38, %cst_33 [0] : vector<256x4xf32> to vector<4xf32>
    %40 = vector.shape_cast %39 : vector<4xf32> to vector<1x4xf32>
    %41 = tpu.concatenate %37, %40 in 0 : vector<1x4xf32>, vector<1x4xf32> -> vector<2x4xf32>
    %42 = vector.shape_cast %41 : vector<2x4xf32> to vector<1x2x4xf32>
    %c0_34 = arith.constant 0 : index
    %c0_35 = arith.constant 0 : index
    %c0_36 = arith.constant 0 : index
    %43 = vector.load %arg5[%c0_34, %c0_35, %c0_36] : memref<1x2x4xf32, #tpu.memory_space<vmem>>, vector<1x2x4xf32>
    tpu.vector_store %arg5[%c0_34, %c0_35, %c0_36], %42 {strides = array<i32>} : memref<1x2x4xf32, #tpu.memory_space<vmem>>, vector<1x2x4xf32>,
    return
  }
  func.func @transform_0(%arg0: i32) -> (i32, i32, i32, i32) {
    %c0_i32 = arith.constant 0 : i32
    %c0_i32_0 = arith.constant 0 : i32
    %c0_i32_1 = arith.constant 0 : i32
    %c0_i32_2 = arith.constant 0 : i32
    return %arg0, %c0_i32, %c0_i32_0, %c0_i32_1 : i32, i32, i32, i32
  }
  func.func @transform_1(%arg0: i32) -> (i32, i32) {
    %c0_i32 = arith.constant 0 : i32
    %c0_i32_0 = arith.constant 0 : i32
    %c0_i32_1 = arith.constant 0 : i32
    return %c0_i32, %c0_i32_0 : i32, i32
  }
  func.func @transform_2(%arg0: i32) -> (i32, i32) {
    %c0_i32 = arith.constant 0 : i32
    %c0_i32_0 = arith.constant 0 : i32
    %c0_i32_1 = arith.constant 0 : i32
    return %c0_i32, %c0_i32_0 : i32, i32
  }
  func.func @transform_3(%arg0: i32) -> (i32, i32, i32, i32) {
    %c0_i32 = arith.constant 0 : i32
    %c0_i32_0 = arith.constant 0 : i32
    %c0_i32_1 = arith.constant 0 : i32
    %c0_i32_2 = arith.constant 0 : i32
    return %arg0, %c0_i32, %c0_i32_0, %c0_i32_1 : i32, i32, i32, i32
  }
  func.func @transform_4(%arg0: i32) -> (i32, i32, i32) {
    %c0_i32 = arith.constant 0 : i32
    %c0_i32_0 = arith.constant 0 : i32
    %c0_i32_1 = arith.constant 0 : i32
    return %arg0, %c0_i32, %c0_i32_0 : i32, i32, i32
  }
}

module attributes {stable_mosaic.version = 11 : i64} {
  func.func @_bn_relu_conv1x1_stats_kernel(%arg0: i32, %arg1: memref<512x4xbf16, #tpu.memory_space<vmem>>, %arg2: memref<2x4xf32, #tpu.memory_space<vmem>>, %arg3: memref<4x16xbf16, #tpu.memory_space<vmem>>, %arg4: memref<512x16xbf16, #tpu.memory_space<vmem>>, %arg5: memref<1x2x16xf32, #tpu.memory_space<vmem>>) attributes {dimension_semantics = [#tpu.dimension_semantics<parallel>], iteration_bounds = array<i64: 1>, scalar_prefetch = 0 : i64, scratch_operands = 0 : i64, tpu.core_type = #tpu.core_type<tc>, window_params = [{transform_indices = @transform_0, window_bounds = array<i64: 512, 4>}, {pipeline_mode = #tpu.pipeline_mode<synchronous>, transform_indices = @transform_1, window_bounds = array<i64: 2, 4>}, {pipeline_mode = #tpu.pipeline_mode<synchronous>, transform_indices = @transform_2, window_bounds = array<i64: 4, 16>}, {transform_indices = @transform_3, window_bounds = array<i64: 512, 16>}, {transform_indices = @transform_4, window_bounds = array<i64: 1, 2, 16>}]} {
    %c0 = arith.constant 0 : index
    %c0_0 = arith.constant 0 : index
    %0 = vector.load %arg1[%c0, %c0_0] : memref<512x4xbf16, #tpu.memory_space<vmem>>, vector<512x4xbf16>
    %1 = arith.extf %0 : vector<512x4xbf16> to vector<512x4xf32>
    %c0_1 = arith.constant 0 : index
    %c0_2 = arith.constant 0 : index
    %2 = vector.load %arg2[%c0_1, %c0_2] : memref<2x4xf32, #tpu.memory_space<vmem>>, vector<1x4xf32>
    %3 = vector.broadcast %2 : vector<1x4xf32> to vector<512x4xf32>
    %4 = arith.mulf %1, %3 : vector<512x4xf32>
    %c1 = arith.constant 1 : index
    %c0_3 = arith.constant 0 : index
    %5 = vector.load %arg2[%c1, %c0_3] : memref<2x4xf32, #tpu.memory_space<vmem>>, vector<1x4xf32>
    %6 = vector.broadcast %5 : vector<1x4xf32> to vector<512x4xf32>
    %7 = arith.addf %4, %6 : vector<512x4xf32>
    %cst = arith.constant 0.000000e+00 : f32
    %8 = vector.broadcast %cst : f32 to vector<512x4xf32>
    %9 = arith.maximumf %7, %8 : vector<512x4xf32>
    %10 = arith.truncf %9 : vector<512x4xf32> to vector<512x4xbf16>
    %c0_4 = arith.constant 0 : index
    %c0_5 = arith.constant 0 : index
    %11 = vector.load %arg3[%c0_4, %c0_5] : memref<4x16xbf16, #tpu.memory_space<vmem>>, vector<4x16xbf16>
    %cst_6 = arith.constant dense<0.000000e+00> : vector<512x16xf32>
    %12 = tpu.matmul %10, %11, %cst_6 {dimension_numbers = #tpu.dot_dimension_numbers<[1], [0], [0], [1], [0, 0, 1, 1], [], []>} : vector<512x4xbf16>, vector<4x16xbf16>, vector<512x16xf32> -> vector<512x16xf32>
    %13 = arith.truncf %12 : vector<512x16xf32> to vector<512x16xbf16>
    %c0_7 = arith.constant 0 : index
    %c0_8 = arith.constant 0 : index
    %14 = vector.load %arg4[%c0_7, %c0_8] : memref<512x16xbf16, #tpu.memory_space<vmem>>, vector<512x16xbf16>
    tpu.vector_store %arg4[%c0_7, %c0_8], %13 {strides = array<i32>} : memref<512x16xbf16, #tpu.memory_space<vmem>>, vector<512x16xbf16>,
    %cst_9 = arith.constant dense<0.000000e+00> : vector<16xf32>
    %15 = vector.multi_reduction <add>, %12, %cst_9 [0] : vector<512x16xf32> to vector<16xf32>
    %16 = vector.shape_cast %15 : vector<16xf32> to vector<1x16xf32>
    %17 = arith.mulf %12, %12 : vector<512x16xf32>
    %cst_10 = arith.constant dense<0.000000e+00> : vector<16xf32>
    %18 = vector.multi_reduction <add>, %17, %cst_10 [0] : vector<512x16xf32> to vector<16xf32>
    %19 = vector.shape_cast %18 : vector<16xf32> to vector<1x16xf32>
    %20 = tpu.concatenate %16, %19 in 0 : vector<1x16xf32>, vector<1x16xf32> -> vector<2x16xf32>
    %21 = vector.shape_cast %20 : vector<2x16xf32> to vector<1x2x16xf32>
    %c0_11 = arith.constant 0 : index
    %c0_12 = arith.constant 0 : index
    %c0_13 = arith.constant 0 : index
    %22 = vector.load %arg5[%c0_11, %c0_12, %c0_13] : memref<1x2x16xf32, #tpu.memory_space<vmem>>, vector<1x2x16xf32>
    tpu.vector_store %arg5[%c0_11, %c0_12, %c0_13], %21 {strides = array<i32>} : memref<1x2x16xf32, #tpu.memory_space<vmem>>, vector<1x2x16xf32>,
    return
  }
  func.func @transform_0(%arg0: i32) -> (i32, i32) {
    %c0_i32 = arith.constant 0 : i32
    %c0_i32_0 = arith.constant 0 : i32
    return %arg0, %c0_i32 : i32, i32
  }
  func.func @transform_1(%arg0: i32) -> (i32, i32) {
    %c0_i32 = arith.constant 0 : i32
    %c0_i32_0 = arith.constant 0 : i32
    %c0_i32_1 = arith.constant 0 : i32
    return %c0_i32, %c0_i32_0 : i32, i32
  }
  func.func @transform_2(%arg0: i32) -> (i32, i32) {
    %c0_i32 = arith.constant 0 : i32
    %c0_i32_0 = arith.constant 0 : i32
    %c0_i32_1 = arith.constant 0 : i32
    return %c0_i32, %c0_i32_0 : i32, i32
  }
  func.func @transform_3(%arg0: i32) -> (i32, i32) {
    %c0_i32 = arith.constant 0 : i32
    %c0_i32_0 = arith.constant 0 : i32
    return %arg0, %c0_i32 : i32, i32
  }
  func.func @transform_4(%arg0: i32) -> (i32, i32, i32) {
    %c0_i32 = arith.constant 0 : i32
    %c0_i32_0 = arith.constant 0 : i32
    %c0_i32_1 = arith.constant 0 : i32
    return %arg0, %c0_i32, %c0_i32_0 : i32, i32, i32
  }
}

module attributes {stable_mosaic.version = 11 : i64} {
  func.func @_bn_residual_relu_kernel(%arg0: i32, %arg1: memref<512x16xbf16, #tpu.memory_space<vmem>>, %arg2: memref<2x16xf32, #tpu.memory_space<vmem>>, %arg3: memref<512x16xbf16, #tpu.memory_space<vmem>>, %arg4: memref<512x16xf32, #tpu.memory_space<vmem>>) attributes {dimension_semantics = [#tpu.dimension_semantics<parallel>], iteration_bounds = array<i64: 1>, scalar_prefetch = 0 : i64, scratch_operands = 0 : i64, tpu.core_type = #tpu.core_type<tc>, window_params = [{transform_indices = @transform_0, window_bounds = array<i64: 512, 16>}, {pipeline_mode = #tpu.pipeline_mode<synchronous>, transform_indices = @transform_1, window_bounds = array<i64: 2, 16>}, {transform_indices = @transform_2, window_bounds = array<i64: 512, 16>}, {transform_indices = @transform_3, window_bounds = array<i64: 512, 16>}]} {
    %c0 = arith.constant 0 : index
    %c0_0 = arith.constant 0 : index
    %0 = vector.load %arg1[%c0, %c0_0] : memref<512x16xbf16, #tpu.memory_space<vmem>>, vector<512x16xbf16>
    %1 = arith.extf %0 : vector<512x16xbf16> to vector<512x16xf32>
    %c0_1 = arith.constant 0 : index
    %c0_2 = arith.constant 0 : index
    %2 = vector.load %arg2[%c0_1, %c0_2] : memref<2x16xf32, #tpu.memory_space<vmem>>, vector<1x16xf32>
    %3 = vector.broadcast %2 : vector<1x16xf32> to vector<512x16xf32>
    %4 = arith.mulf %1, %3 : vector<512x16xf32>
    %c1 = arith.constant 1 : index
    %c0_3 = arith.constant 0 : index
    %5 = vector.load %arg2[%c1, %c0_3] : memref<2x16xf32, #tpu.memory_space<vmem>>, vector<1x16xf32>
    %6 = vector.broadcast %5 : vector<1x16xf32> to vector<512x16xf32>
    %7 = arith.addf %4, %6 : vector<512x16xf32>
    %c0_4 = arith.constant 0 : index
    %c0_5 = arith.constant 0 : index
    %8 = vector.load %arg3[%c0_4, %c0_5] : memref<512x16xbf16, #tpu.memory_space<vmem>>, vector<512x16xbf16>
    %9 = arith.extf %8 : vector<512x16xbf16> to vector<512x16xf32>
    %10 = arith.addf %7, %9 : vector<512x16xf32>
    %cst = arith.constant 0.000000e+00 : f32
    %11 = vector.broadcast %cst : f32 to vector<512x16xf32>
    %12 = arith.maximumf %10, %11 : vector<512x16xf32>
    %c0_6 = arith.constant 0 : index
    %c0_7 = arith.constant 0 : index
    %13 = vector.load %arg4[%c0_6, %c0_7] : memref<512x16xf32, #tpu.memory_space<vmem>>, vector<512x16xf32>
    tpu.vector_store %arg4[%c0_6, %c0_7], %12 {strides = array<i32>} : memref<512x16xf32, #tpu.memory_space<vmem>>, vector<512x16xf32>,
    return
  }
  func.func @transform_0(%arg0: i32) -> (i32, i32) {
    %c0_i32 = arith.constant 0 : i32
    %c0_i32_0 = arith.constant 0 : i32
    return %arg0, %c0_i32 : i32, i32
  }
  func.func @transform_1(%arg0: i32) -> (i32, i32) {
    %c0_i32 = arith.constant 0 : i32
    %c0_i32_0 = arith.constant 0 : i32
    %c0_i32_1 = arith.constant 0 : i32
    return %c0_i32, %c0_i32_0 : i32, i32
  }
  func.func @transform_2(%arg0: i32) -> (i32, i32) {
    %c0_i32 = arith.constant 0 : i32
    %c0_i32_0 = arith.constant 0 : i32
    return %arg0, %c0_i32 : i32, i32
  }
  func.func @transform_3(%arg0: i32) -> (i32, i32) {
    %c0_i32 = arith.constant 0 : i32
    %c0_i32_0 = arith.constant 0 : i32
    return %arg0, %c0_i32 : i32, i32
  }
}

</mosaic_0001>

<bundles_post_ra>
// kernel: bottleneck_forward.6
= control target key start
LH: loop header
LB: loop body
LE: loop exit
PB: predicated region body
PF: predicated region fallthrough
CT: control target
= control target key end

     0   :  { %vm471_vm0 = vcmask 1041408   ;;  %vm374_vm1 = vcmask 31744   ;;  %vm708_vm2 = vcmask 125952   ;;  %vm773_vm3 = vcmask 130048   ;;  %s2377_s2 = inlined_call_operand.vmem [shape: bf16[4,16], index: 2, kind: input, shape index: {}]   ;;  %s2378_s0 = inlined_call_operand.vmem [shape: bf16[512,4], index: 0, kind: input, shape index: {}]   ;;  %s2379_s1 = inlined_call_operand.vmem [shape: f32[2,4], index: 1, kind: input, shape index: {}]   ;;  %s2380_s3 = inlined_call_operand.vmem [shape: bf16[512,16], index: 3, kind: output, shape index: {0}]   ;;  %s2381_s4 = inlined_call_operand.vmem [shape: f32[1,2,16], index: 4, kind: output, shape index: {1}]  }
   0x1   :  { %v373_v0 = vld [vmem:[%s2377_s2] sm:$0x3]  ;;  %v1276_v10 = vld [vmem:[%s2378_s0 + $0x8] sm:$0xff]   ;;  %v1277_v41 = vld [vmem:[%s2378_s0 + $0x10] sm:$0xff]   ;;  %vm1104_vm4 = vcmask 1040384   ;;  %vm1106_vm5 = vcmask 123904  }
   0x2   :  { %v1149_v1 = vld [vmem:[%s2378_s0] sm:$0xff]   ;;  %v473_v2 = vsel %vm471_vm0, %v373_v0, 0  ;;  %v1154_v17 = vunpack.c.l.bf16 %v1276_v10  ;;  %v1155_v18 = vunpack.c.h.bf16 %v1276_v10  ;;  %v1284_v23 = vld [vmem:[%s2378_s0 + $0x48] sm:$0xff]   ;;  %v1158_v48 = vunpack.c.l.bf16 %v1277_v41  ;;  %v1285_v54 = vld [vmem:[%s2378_s0 + $0x50] sm:$0xff]  }
   0x3   :  { %v1150_v3 = vunpack.c.l.bf16 %v1149_v1  ;;  %v1151_v4 = vunpack.c.h.bf16 %v1149_v1  ;;  %v1346_v5 = vld [vmem:[%s2379_s1] ss:$0 sm:$0xff]  ;;  %482 = vmatpush.bf16.msra.mxu0 %v473_v2  ;;  %v1351_v6 = vld [vmem:[%s2379_s1 + $0x1] ss:$0 sm:$0xff]  ;;  %1307 = vmatpush.bf16.msra.mxu1 %v473_v2  ;;  %v1186_v27 = vunpack.c.l.bf16 %v1284_v23  ;;  %v1187_v28 = vunpack.c.h.bf16 %v1284_v23 }
   0x4   :  { %v1283_v7 = vld [vmem:[%s2378_s0 + $0x40] sm:$0xff]   ;;  %1308 = vmatpush.bf16.msra.mxu2 %v473_v2  ;;  %1309 = vmatpush.bf16.msra.mxu3 %v473_v2  ;;  %v149_v29 = vmul.f32 %v1346_v5, %v1154_v17  ;;  %v150_v30 = vmul.f32 %v1346_v5, %v1155_v18  ;;  %v1159_v50 = vunpack.c.h.bf16 %v1277_v41  ;;  %v1190_v57 = vunpack.c.l.bf16 %v1285_v54 }
   0x5   :  { %v147_v8 = vmul.f32 %v1346_v5, %v1150_v3  ;;  %v148_v9 = vmul.f32 %v1346_v5, %v1151_v4  ;;  %v1182_v11 = vunpack.c.l.bf16 %v1283_v7  ;;  %v1183_v12 = vunpack.c.h.bf16 %v1283_v7  ;;  %v1291_v38 = vld [vmem:[%s2378_s0 + $0x80] sm:$0xff]   ;;  %v1292_v4 = vld [vmem:[%s2378_s0 + $0x88] sm:$0xff]  }
   0x6   :  { %v165_v32 = vmul.f32 %v1346_v5, %v1186_v27  ;;  %v166_v33 = vmul.f32 %v1346_v5, %v1187_v28  ;;  %v215_v34 = vadd.f32 %v1351_v6, %v149_v29  ;;  %v216_v35 = vadd.f32 %v1351_v6, %v150_v30 }
   0x7   :  { %v213_v13 = vadd.f32 %v1351_v6, %v147_v8  ;;  %v214_v14 = vadd.f32 %v1351_v6, %v148_v9  ;;  %v163_v15 = vmul.f32 %v1346_v5, %v1182_v11  ;;  %v164_v16 = vmul.f32 %v1346_v5, %v1183_v12  ;;  %v1278_v9 = vld [vmem:[%s2378_s0 + $0x18] sm:$0xff]  }
   0x8   :  { %v231_v36 = vadd.f32 %v1351_v6, %v165_v32  ;;  %v232_v37 = vadd.f32 %v1351_v6, %v166_v33  ;;  %v279_v39 = vmax.f32 %v215_v34, 0.0  ;;  %v280_v40 = vmax.f32 %v216_v35, 0.0 }
   0x9   :  { %v277_v19 = vmax.f32 %v213_v13, 0.0  ;;  %v278_v20 = vmax.f32 %v214_v14, 0.0  ;;  %v229_v21 = vadd.f32 %v1351_v6, %v163_v15  ;;  %v230_v22 = vadd.f32 %v1351_v6, %v164_v16 }
   0xa   :  { %v1214_v42 = vunpack.c.l.bf16 %v1291_v38  ;;  %v1215_v43 = vunpack.c.h.bf16 %v1291_v38  ;;  %v295_v44 = vmax.f32 %v231_v36, 0.0  ;;  %v296_v45 = vmax.f32 %v232_v37, 0.0  ;;  %v1293_v38 = vld [vmem:[%s2378_s0 + $0x90] sm:$0xff]  }
   0xb   :  { %v341_v24 = vpack.c.bf16 %v278_v20, %v277_v19  ;;  %v293_v25 = vmax.f32 %v229_v21, 0.0  ;;  %v294_v26 = vmax.f32 %v230_v22, 0.0  ;;  %v342_v49 = vpack.c.bf16 %v280_v40, %v279_v39  ;;  %v1286_v22 = vld [vmem:[%s2378_s0 + $0x58] sm:$0xff]   ;;  %v1299_v39 = vld [vmem:[%s2378_s0 + $0xc0] sm:$0xff]  }
   0xc   :  { %v179_v46 = vmul.f32 %v1346_v5, %v1214_v42  ;;  %v180_v47 = vmul.f32 %v1346_v5, %v1215_v43  ;;  %v350_v53 = vpack.c.bf16 %v296_v45, %v295_v44  ;;  %v1191_v58 = vunpack.c.h.bf16 %v1285_v54  ;;  %v1279_v40 = vld [vmem:[%s2378_s0 + $0x20] sm:$0xff]  }
   0xd   :  { %1116 = vmatmul.msk.bf16.vlgmr.msra.gmra.mxu0 %vm374_vm1, %v341_v24  ;;  %v349_v31 = vpack.c.bf16 %v294_v26, %v293_v25  ;;  %v151_v59 = vmul.f32 %v1346_v5, %v1158_v48  ;;  %v152_v60 = vmul.f32 %v1346_v5, %v1159_v50  ;;  %v167_v62 = vmul.f32 %v1346_v5, %v1190_v57 }
   0xe   :  { %v245_v51 = vadd.f32 %v1351_v6, %v179_v46  ;;  %v246_v52 = vadd.f32 %v1351_v6, %v180_v47  ;;  %v168_v63 = vmul.f32 %v1346_v5, %v1191_v58  ;;  %v1218_v10 = vunpack.c.l.bf16 %v1292_v4 }
   0xf   :  { %1124 = vmatmul.msk.bf16.vlgmr.msra.gmra.mxu1 %vm374_vm1, %v349_v31  ;;  %v217_v0 = vadd.f32 %v1351_v6, %v151_v59  ;;  %v218_v1 = vadd.f32 %v1351_v6, %v152_v60  ;;  %v233_v2 = vadd.f32 %v1351_v6, %v167_v62  ;;  %v1219_v11 = vunpack.c.h.bf16 %v1292_v4  ;;  %v1287_v59 = vld [vmem:[%s2378_s0 + $0x60] sm:$0xff]  }
  0x10   :  { %v309_v55 = vmax.f32 %v245_v51, 0.0  ;;  %v310_v56 = vmax.f32 %v246_v52, 0.0  ;;  %v234_v3 = vadd.f32 %v1351_v6, %v168_v63  ;;  %v181_v14 = vmul.f32 %v1346_v5, %v1218_v10 }
  0x11   :  { %v281_v7 = vmax.f32 %v217_v0, 0.0  ;;  %v282_v8 = vmax.f32 %v218_v1, 0.0  ;;  %v297_v12 = vmax.f32 %v233_v2, 0.0  ;;  %v182_v15 = vmul.f32 %v1346_v5, %v1219_v11 }
  0x12   :  { %v357_v61 = vpack.c.bf16 %v310_v56, %v309_v55  ;;  %v298_v13 = vmax.f32 %v234_v3, 0.0  ;;  %v1162_v16 = vunpack.c.l.bf16 %v1278_v9  ;;  %v1163_v17 = vunpack.c.h.bf16 %v1278_v9 }
  0x13   :  { %v343_v18 = vpack.c.bf16 %v282_v8, %v281_v7  ;;  %v247_v19 = vadd.f32 %v1351_v6, %v181_v14  ;;  %v248_v20 = vadd.f32 %v1351_v6, %v182_v15  ;;  %v1194_v25 = vunpack.c.l.bf16 %v1286_v22 }
  0x14   :  { %1132 = vmatmul.msk.bf16.vlgmr.msra.gmra.mxu2 %vm374_vm1, %v357_v61  ;;  %v351_v21 = vpack.c.bf16 %v298_v13, %v297_v12  ;;  %v1195_v26 = vunpack.c.h.bf16 %v1286_v22  ;;  %v153_v27 = vmul.f32 %v1346_v5, %v1162_v16  ;;  %v154_v28 = vmul.f32 %v1346_v5, %v1163_v17  ;;  %v1294_v16 = vld [vmem:[%s2378_s0 + $0x98] sm:$0xff]   ;;  %v1300_v17 = vld [vmem:[%s2378_s0 + $0xc8] sm:$0xff]  }
  0x15   :  { %v311_v23 = vmax.f32 %v247_v19, 0.0  ;;  %v312_v24 = vmax.f32 %v248_v20, 0.0  ;;  %v169_v30 = vmul.f32 %v1346_v5, %v1194_v25  ;;  %v1222_v41 = vunpack.c.l.bf16 %v1293_v38 }
  0x16   :  { %v170_v31 = vmul.f32 %v1346_v5, %v1195_v26  ;;  %v219_v32 = vadd.f32 %v1351_v6, %v153_v27  ;;  %v220_v33 = vadd.f32 %v1351_v6, %v154_v28  ;;  %v1223_v42 = vunpack.c.h.bf16 %v1293_v38 }
  0x17   :  { %v358_v29 = vpack.c.bf16 %v312_v24, %v311_v23  ;;  %v235_v34 = vadd.f32 %v1351_v6, %v169_v30  ;;  %v1246_v43 = vunpack.c.l.bf16 %v1299_v39  ;;  %v1247_v44 = vunpack.c.h.bf16 %v1299_v39 }
  0x18   :  { %v236_v35 = vadd.f32 %v1351_v6, %v170_v31  ;;  %v283_v36 = vmax.f32 %v219_v32, 0.0  ;;  %v284_v37 = vmax.f32 %v220_v33, 0.0  ;;  %v183_v47 = vmul.f32 %v1346_v5, %v1222_v41 }
  0x19   :  { %v299_v45 = vmax.f32 %v235_v34, 0.0  ;;  %v184_v48 = vmul.f32 %v1346_v5, %v1223_v42  ;;  %v196_v50 = vmul.f32 %v1346_v5, %v1247_v44  ;;  %v1166_v52 = vunpack.c.l.bf16 %v1279_v40 }
  0x1a   :  { %v300_v46 = vmax.f32 %v236_v35, 0.0  ;;  %v344_v51 = vpack.c.bf16 %v284_v37, %v283_v36  ;;  %v249_v54 = vadd.f32 %v1351_v6, %v183_v47  ;;  %v1198_v2 = vunpack.c.l.bf16 %v1287_v59  ;;  %v1288_v37 = vld [vmem:[%s2378_s0 + $0x68] sm:$0xff]  }
  0x1b   :  { %v250_v55 = vadd.f32 %v1351_v6, %v184_v48  ;;  %v262_v57 = vadd.f32 %v1351_v6, %v196_v50  ;;  %v155_v0 = vmul.f32 %v1346_v5, %v1166_v52  ;;  %v1199_v3 = vunpack.c.h.bf16 %v1287_v59 }
  0x1c   :  { %v352_v58 = vpack.c.bf16 %v300_v46, %v299_v45  ;;  %v313_v60 = vmax.f32 %v249_v54, 0.0  ;;  %v171_v8 = vmul.f32 %v1346_v5, %v1198_v2  ;;  %v1226_v19 = vunpack.c.l.bf16 %v1294_v16 }
  0x1d   :  { %1117 = vmatmul.msk.bf16.gmra.mxu0 %vm374_vm1, %v342_v49  ;;  %v195_v49 = vmul.f32 %v1346_v5, %v1246_v43  ;;  %v314_v61 = vmax.f32 %v250_v55, 0.0  ;;  %v326_v63 = vmax.f32 %v262_v57, 0.0  ;;  %v172_v9 = vmul.f32 %v1346_v5, %v1199_v3  ;;  %v1301_v57 = vld [vmem:[%s2378_s0 + $0xd0] sm:$0xff]  }
  0x1e   :  { %v221_v10 = vadd.f32 %v1351_v6, %v155_v0  ;;  %v237_v12 = vadd.f32 %v1351_v6, %v171_v8  ;;  %v1227_v20 = vunpack.c.h.bf16 %v1294_v16  ;;  %v1251_v22 = vunpack.c.h.bf16 %v1300_v17 }
  0x1f   :  { %1125 = vmatmul.msk.bf16.gmra.mxu1 %vm374_vm1, %v350_v53  ;;  %v1167_v53 = vunpack.c.h.bf16 %v1279_v40  ;;  %v261_v56 = vadd.f32 %v1351_v6, %v195_v49  ;;  %v359_v4 = vpack.c.bf16 %v314_v61, %v313_v60  ;;  %v238_v13 = vadd.f32 %v1351_v6, %v172_v9 }
  0x20   :  { %v285_v14 = vmax.f32 %v221_v10, 0.0  ;;  %v301_v23 = vmax.f32 %v237_v12, 0.0  ;;  %v185_v25 = vmul.f32 %v1346_v5, %v1226_v19  ;;  %v186_v26 = vmul.f32 %v1346_v5, %v1227_v20 }
  0x21   :  { %v325_v62 = vmax.f32 %v261_v56, 0.0  ;;  %v156_v1 = vmul.f32 %v1346_v5, %v1167_v53  ;;  %v302_v24 = vmax.f32 %v238_v13, 0.0  ;;  %v198_v28 = vmul.f32 %v1346_v5, %v1251_v22  ;;  %v1295_v56 = vld [vmem:[%s2378_s0 + $0xa0] sm:$0xff]  }
  0x22   :  { %v251_v32 = vadd.f32 %v1351_v6, %v185_v25  ;;  %v252_v33 = vadd.f32 %v1351_v6, %v186_v26  ;;  %v1202_v44 = vunpack.c.l.bf16 %v1288_v37  ;;  %v1203_v45 = vunpack.c.h.bf16 %v1288_v37 }
  0x23   :  { %v365_v7 = vpack.c.bf16 %v326_v63, %v325_v62  ;;  %v222_v11 = vadd.f32 %v1351_v6, %v156_v1  ;;  %v264_v35 = vadd.f32 %v1351_v6, %v198_v28  ;;  %v353_v36 = vpack.c.bf16 %v302_v24, %v301_v23 }
  0x24   :  { %1133 = vmatmul.msk.bf16.gmra.mxu2 %vm374_vm1, %v358_v29  ;;  %v315_v38 = vmax.f32 %v251_v32, 0.0  ;;  %v316_v39 = vmax.f32 %v252_v33, 0.0  ;;  %v173_v48 = vmul.f32 %v1346_v5, %v1202_v44  ;;  %v174_v49 = vmul.f32 %v1346_v5, %v1203_v45  ;;  %v1282_v32 = vld [vmem:[%s2378_s0 + $0x38] sm:$0xff]  }
  0x25   :  { %1140 = vmatmul.msk.bf16.vlgmr.msra.gmra.mxu3 %vm374_vm1, %v365_v7  ;;  %v286_v15 = vmax.f32 %v222_v11, 0.0  ;;  %v328_v41 = vmax.f32 %v264_v35, 0.0  ;;  %v1230_v59 = vunpack.c.l.bf16 %v1295_v56  ;;  %v1231_v60 = vunpack.c.h.bf16 %v1295_v56  ;;  %v1296_v35 = vld [vmem:[%s2378_s0 + $0xa8] sm:$0xff]  }
  0x26   :  { %v360_v46 = vpack.c.bf16 %v316_v39, %v315_v38  ;;  %v239_v52 = vadd.f32 %v1351_v6, %v173_v48  ;;  %v240_v53 = vadd.f32 %v1351_v6, %v174_v49  ;;  %v1254_v61 = vunpack.c.l.bf16 %v1301_v57 }
  0x27   :  { %v345_v29 = vpack.c.bf16 %v286_v15, %v285_v14  ;;  %v1255_v62 = vunpack.c.h.bf16 %v1301_v57  ;;  %v187_v1 = vmul.f32 %v1346_v5, %v1230_v59  ;;  %v188_v2 = vmul.f32 %v1346_v5, %v1231_v60  ;;  %v1289_v15 = vld [vmem:[%s2378_s0 + $0x70] sm:$0xff]  }
  0x28   :  { %v303_v63 = vmax.f32 %v239_v52, 0.0  ;;  %v304_v0 = vmax.f32 %v240_v53, 0.0  ;;  %v199_v3 = vmul.f32 %v1346_v5, %v1254_v61  ;;  %v1206_v22 = vunpack.c.l.bf16 %v1289_v15 }
  0x29   :  { %v253_v10 = vadd.f32 %v1351_v6, %v187_v1  ;;  %v254_v11 = vadd.f32 %v1351_v6, %v188_v2  ;;  %v1207_v23 = vunpack.c.h.bf16 %v1289_v15  ;;  %v1234_v37 = vunpack.c.l.bf16 %v1296_v35 }
  0x2a   :  { %v265_v12 = vadd.f32 %v1351_v6, %v199_v3  ;;  %v354_v14 = vpack.c.bf16 %v304_v0, %v303_v63  ;;  %v175_v26 = vmul.f32 %v1346_v5, %v1206_v22  ;;  %v1235_v38 = vunpack.c.h.bf16 %v1296_v35 }
  0x2b   :  { %v317_v16 = vmax.f32 %v253_v10, 0.0  ;;  %v189_v44 = vmul.f32 %v1346_v5, %v1234_v37  ;;  %v1179_v49 = vunpack.c.h.bf16 %v1282_v32  ;;  %v1304_v37 = vld [vmem:[%s2378_s0 + $0xe8] sm:$0xff]  }
  0x2c   :  { %v190_v45 = vmul.f32 %v1346_v5, %v1235_v38 }
  0x2d   :  { %1118 = vmatmul.msk.bf16.gmra.mxu0 %vm374_vm1, %v343_v18  ;;  %v1280_v18 = vld [vmem:[%s2378_s0 + $0x28] sm:$0xff]   ;;  %v162_v60 = vmul.f32 %v1346_v5, %v1179_v49 }
  0x2e   :  { %v1170_v30 = vunpack.c.l.bf16 %v1280_v18  ;;  %v1171_v31 = vunpack.c.h.bf16 %v1280_v18  ;;  %v329_v18 = vmax.f32 %v265_v12, 0.0  ;;  %v1297_v12 = vld [vmem:[%s2378_s0 + $0xb0] sm:$0xff]  }
  0x2f   :  { %1126 = vmatmul.msk.bf16.gmra.mxu1 %vm374_vm1, %v351_v21  ;;  %v1250_v21 = vunpack.c.l.bf16 %v1300_v17  ;;  %v318_v17 = vmax.f32 %v254_v11, 0.0  ;;  %v1239_v15 = vunpack.c.h.bf16 %v1297_v12 }
  0x30   :  { %v157_v42 = vmul.f32 %v1346_v5, %v1170_v30  ;;  %v158_v43 = vmul.f32 %v1346_v5, %v1171_v31  ;;  %v241_v30 = vadd.f32 %v1351_v6, %v175_v26 }
  0x31   :  { %v197_v27 = vmul.f32 %v1346_v5, %v1250_v21  ;;  %v361_v24 = vpack.c.bf16 %v318_v17, %v317_v16 }
  0x32   :  { %v223_v50 = vadd.f32 %v1351_v6, %v157_v42  ;;  %v305_v42 = vmax.f32 %v241_v30, 0.0 }
  0x33   :  { %v263_v34 = vadd.f32 %v1351_v6, %v197_v27  ;;  %v176_v27 = vmul.f32 %v1346_v5, %v1207_v23 }
  0x34   :  { %1134 = vmatmul.msk.bf16.gmra.mxu2 %vm374_vm1, %v359_v4  ;;  %v287_v54 = vmax.f32 %v223_v50, 0.0  ;;  %v200_v4 = vmul.f32 %v1346_v5, %v1255_v62  ;;  %v255_v50 = vadd.f32 %v1351_v6, %v189_v44 }
  0x35   :  { %v327_v40 = vmax.f32 %v263_v34, 0.0  ;;  %v242_v31 = vadd.f32 %v1351_v6, %v176_v27 }
  0x36   :  { %v266_v13 = vadd.f32 %v1351_v6, %v200_v4  ;;  %v319_v57 = vmax.f32 %v255_v50, 0.0 }
  0x37   :  { %v366_v47 = vpack.c.bf16 %v328_v41, %v327_v40  ;;  %v1178_v41 = vunpack.c.l.bf16 %v1282_v32 }
  0x38   :  { %v330_v19 = vmax.f32 %v266_v13, 0.0  ;;  %v1303_v13 = vld [vmem:[%s2378_s0 + $0xe0] sm:$0xff]  }
  0x39   :  { %1141 = vmatmul.msk.bf16.gmra.mxu3 %vm374_vm1, %v366_v47  ;;  %v1262_v16 = vunpack.c.l.bf16 %v1303_v13  ;;  %v1263_v17 = vunpack.c.h.bf16 %v1303_v13 }
  0x3a   :  { %v367_v25 = vpack.c.bf16 %v330_v19, %v329_v18 }
  0x3b   :  { %v203_v22 = vmul.f32 %v1346_v5, %v1262_v16  ;;  %v204_v23 = vmul.f32 %v1346_v5, %v1263_v17 }
  0x3d   :  { %1119 = vmatmul.msk.bf16.gmra.mxu0 %vm374_vm1, %v344_v51  ;;  %v224_v51 = vadd.f32 %v1351_v6, %v158_v43  ;;  %v306_v43 = vmax.f32 %v242_v31, 0.0  ;;  %v269_v27 = vadd.f32 %v1351_v6, %v203_v22 }
  0x3f   :  { %1127 = vmatmul.msk.bf16.gmra.mxu1 %vm374_vm1, %v352_v58  ;;  %v288_v55 = vmax.f32 %v224_v51, 0.0  ;;  %v1281_v58 = vld [vmem:[%s2378_s0 + $0x30] sm:$0xff]   ;;  %v256_v51 = vadd.f32 %v1351_v6, %v190_v45  ;;  %v355_v56 = vpack.c.bf16 %v306_v43, %v305_v42  ;;  %v333_v32 = vmax.f32 %v269_v27, 0.0 }
  0x40   :  { %v1174_v8 = vunpack.c.l.bf16 %v1281_v58  ;;  %v1175_v9 = vunpack.c.h.bf16 %v1281_v58 }
  0x41   :  { %v346_v7 = vpack.c.bf16 %v288_v55, %v287_v54  ;;  %v161_v54 = vmul.f32 %v1346_v5, %v1178_v41  ;;  %v1290_v55 = vld [vmem:[%s2378_s0 + $0x78] sm:$0xff]   ;;  %v320_v58 = vmax.f32 %v256_v51, 0.0  ;;  %v1267_v41 = vunpack.c.h.bf16 %v1304_v37 }
  0x42   :  { %v159_v20 = vmul.f32 %v1346_v5, %v1174_v8  ;;  %v160_v21 = vmul.f32 %v1346_v5, %v1175_v9  ;;  %v1210_v62 = vunpack.c.l.bf16 %v1290_v55  ;;  %v1211_v63 = vunpack.c.h.bf16 %v1290_v55 }
  0x43   :  { %v362_v0 = vpack.c.bf16 %v320_v58, %v319_v57  ;;  %v227_v4 = vadd.f32 %v1351_v6, %v161_v54  ;;  %v206_v45 = vmul.f32 %v1346_v5, %v1267_v41 }
  0x44   :  { %1135 = vmatmul.msk.bf16.gmra.mxu2 %vm374_vm1, %v360_v46  ;;  %v225_v28 = vadd.f32 %v1351_v6, %v159_v20  ;;  %v177_v2 = vmul.f32 %v1346_v5, %v1210_v62  ;;  %v178_v3 = vmul.f32 %v1346_v5, %v1211_v63 }
  0x45   :  { %v291_v10 = vmax.f32 %v227_v4, 0.0  ;;  %v272_v49 = vadd.f32 %v1351_v6, %v206_v45  ;;  %v1305_v4 = vld [vmem:[%s2378_s0 + $0xf0] sm:$0xff]  }
  0x46   :  { %v289_v33 = vmax.f32 %v225_v28, 0.0  ;;  %v243_v8 = vadd.f32 %v1351_v6, %v177_v2  ;;  %v244_v9 = vadd.f32 %v1351_v6, %v178_v3  ;;  %v270_v28 = vadd.f32 %v1351_v6, %v204_v23 }
  0x48   :  { %v307_v18 = vmax.f32 %v243_v8, 0.0  ;;  %v308_v19 = vmax.f32 %v244_v9, 0.0 }
  0x49   :  { %1142 = vmatmul.msk.bf16.gmra.mxu3 %vm374_vm1, %v367_v25 }
  0x4d   :  { %1120 = vmatmul.msk.bf16.gmra.mxu0 %vm374_vm1, %v345_v29  ;;  %v226_v29 = vadd.f32 %v1351_v6, %v160_v21  ;;  %v192_v21 = vmul.f32 %v1346_v5, %v1239_v15 }
  0x4f   :  { %1128 = vmatmul.msk.bf16.gmra.mxu1 %vm374_vm1, %v353_v36  ;;  %v290_v34 = vmax.f32 %v226_v29, 0.0  ;;  %v1302_v36 = vld [vmem:[%s2378_s0 + $0xd8] sm:$0xff]   ;;  %v258_v26 = vadd.f32 %v1351_v6, %v192_v21  ;;  %v356_v29 = vpack.c.bf16 %v308_v19, %v307_v18 }
  0x50   :  { %v1258_v39 = vunpack.c.l.bf16 %v1302_v36  ;;  %v1259_v40 = vunpack.c.h.bf16 %v1302_v36  ;;  %v1298_v36 = vld [vmem:[%s2378_s0 + $0xb8] sm:$0xff]  }
  0x51   :  { %v347_v48 = vpack.c.bf16 %v290_v34, %v289_v33  ;;  %v322_v31 = vmax.f32 %v258_v26, 0.0  ;;  %v334_v33 = vmax.f32 %v270_v28, 0.0  ;;  %v1242_v38 = vunpack.c.l.bf16 %v1298_v36 }
  0x52   :  { %v201_v46 = vmul.f32 %v1346_v5, %v1258_v39  ;;  %v202_v47 = vmul.f32 %v1346_v5, %v1259_v40  ;;  %v1243_v39 = vunpack.c.h.bf16 %v1298_v36  ;;  %v1266_v40 = vunpack.c.l.bf16 %v1304_v37  ;;  %v1306_v36 = vld [vmem:[%s2378_s0 + $0xf8] sm:$0xff]  }
  0x53   :  { %v369_v35 = vpack.c.bf16 %v334_v33, %v333_v32  ;;  %v193_v42 = vmul.f32 %v1346_v5, %v1242_v38  ;;  %v1274_v41 = vunpack.c.l.bf16 %v1306_v36 }
  0x54   :  { %1136 = vmatmul.msk.bf16.gmra.mxu2 %vm374_vm1, %v361_v24  ;;  %v267_v52 = vadd.f32 %v1351_v6, %v201_v46  ;;  %v268_v53 = vadd.f32 %v1351_v6, %v202_v47  ;;  %v194_v43 = vmul.f32 %v1346_v5, %v1243_v39  ;;  %v205_v44 = vmul.f32 %v1346_v5, %v1266_v40 }
  0x55   :  { %v259_v46 = vadd.f32 %v1351_v6, %v193_v42  ;;  %v1275_v42 = vunpack.c.h.bf16 %v1306_v36 }
  0x56   :  { %v331_v59 = vmax.f32 %v267_v52, 0.0  ;;  %v332_v61 = vmax.f32 %v268_v53, 0.0  ;;  %v260_v47 = vadd.f32 %v1351_v6, %v194_v43  ;;  %v209_v43 = vmul.f32 %v1346_v5, %v1274_v41 }
  0x57   :  { %v323_v52 = vmax.f32 %v259_v46, 0.0  ;;  %v210_v46 = vmul.f32 %v1346_v5, %v1275_v42 }
  0x58   :  { %v368_v1 = vpack.c.bf16 %v332_v61, %v331_v59  ;;  %v324_v54 = vmax.f32 %v260_v47, 0.0 }
  0x5a   :  { %1143 = vmatmul.msk.bf16.gmra.mxu3 %vm374_vm1, %v368_v1  ;;  %v364_v58 = vpack.c.bf16 %v324_v54, %v323_v52  ;;  %v275_v54 = vadd.f32 %v1351_v6, %v209_v43 }
  0x5d   :  { %1121 = vmatmul.msk.bf16.gmra.mxu0 %vm374_vm1, %v346_v7  ;;  %v228_v7 = vadd.f32 %v1351_v6, %v162_v60 }
  0x5f   :  { %1129 = vmatmul.msk.bf16.gmra.mxu1 %vm374_vm1, %v354_v14  ;;  %v292_v11 = vmax.f32 %v228_v7, 0.0  ;;  %v1238_v14 = vunpack.c.l.bf16 %v1297_v12  ;;  %v1271_v12 = vunpack.c.h.bf16 %v1305_v4 }
  0x61   :  { %v191_v20 = vmul.f32 %v1346_v5, %v1238_v14  ;;  %v348_v24 = vpack.c.bf16 %v292_v11, %v291_v10  ;;  %v1270_v11 = vunpack.c.l.bf16 %v1305_v4  ;;  %v208_v14 = vmul.f32 %v1346_v5, %v1271_v12 }
  0x63   :  { %v257_v25 = vadd.f32 %v1351_v6, %v191_v20  ;;  %v207_v13 = vmul.f32 %v1346_v5, %v1270_v11  ;;  %v274_v17 = vadd.f32 %v1351_v6, %v208_v14 }
  0x64   :  { %1137 = vmatmul.msk.bf16.gmra.mxu2 %vm374_vm1, %v362_v0 }
  0x65   :  { %v321_v30 = vmax.f32 %v257_v25, 0.0  ;;  %v273_v16 = vadd.f32 %v1351_v6, %v207_v13 }
  0x67   :  { %v363_v34 = vpack.c.bf16 %v322_v31, %v321_v30  ;;  %v337_v23 = vmax.f32 %v273_v16, 0.0 }
  0x6a   :  { %1144 = vmatmul.msk.bf16.gmra.mxu3 %vm374_vm1, %v369_v35 }
  0x6d   :  { %1122 = vmatmul.msk.bf16.gmra.mxu0 %vm374_vm1, %v347_v48  ;;  %v271_v48 = vadd.f32 %v1351_v6, %v205_v44 }
  0x6f   :  { %1130 = vmatmul.msk.bf16.gmra.mxu1 %vm374_vm1, %v355_v56  ;;  %v335_v55 = vmax.f32 %v271_v48, 0.0  ;;  %v336_v56 = vmax.f32 %v272_v49, 0.0 }
  0x71   :  { %v370_v59 = vpack.c.bf16 %v336_v56, %v335_v55 }
  0x74   :  { %1138 = vmatmul.msk.bf16.gmra.mxu2 %vm374_vm1, %v363_v34 }
  0x7a   :  { %1145 = vmatmul.msk.bf16.gmra.mxu3 %vm374_vm1, %v370_v59 }
  0x7d   :  { %1123 = vmatmul.msk.bf16.gmra.mxu0 %vm374_vm1, %v348_v24  ;;  %v338_v24 = vmax.f32 %v274_v17, 0.0 }
  0x7f   :  { %1131 = vmatmul.msk.bf16.gmra.mxu1 %vm374_vm1, %v356_v29  ;;  %v371_v28 = vpack.c.bf16 %v338_v24, %v337_v23 }
  0x84   :  { %1139 = vmatmul.msk.bf16.gmra.mxu2 %vm374_vm1, %v364_v58  ;;  %v339_v58 = vmax.f32 %v275_v54, 0.0 }
  0x8a   :  { %v484_v50 = vpop.f32.mrf.mxu0  ;;  %1146 = vmatmul.msk.bf16.gmra.mxu3 %vm374_vm1, %v371_v28 }
  0x8b   :  { %v644_v51 = vpack.c.bf16 %v484_v50, %v484_v50  ;;  %v907_v60 = vmul.f32 %v484_v50, %v484_v50  ;;  %v774_v62 = vsel %vm773_vm3, %v484_v50, 0.0 }
  0x8c   :  { %v1588_v53 = vpop.f32.mrf.mxu1 }
  0x8d   :  { %709 = vst.msk [vmem:[%s2380_s3] sm:$0xf] %vm708_vm2, %v644_v51  ;;  %v660_v57 = vpack.c.bf16 %v1588_v53, %v1588_v53  ;;  %v971_v7 = vsel %vm773_vm3, %v907_v60, 0.0 }
  0x8f   :  { %725 = vst.msk [vmem:[%s2380_s3 + $0x40] sm:$0xf] %vm708_vm2, %v660_v57  ;;  %v276_v57 = vadd.f32 %v1351_v6, %v210_v46 }
  0x91   :  { %v340_v59 = vmax.f32 %v276_v57, 0.0 }
  0x92   :  { %v486_v61 = vpop.f32.mrf.mxu0 }
  0x93   :  { %v645_v63 = vpack.c.bf16 %v486_v61, %v486_v61  ;;  %v775_v0 = vsel %vm773_vm3, %v486_v61, 0.0  ;;  %v908_v1 = vmul.f32 %v486_v61, %v486_v61  ;;  %v372_v61 = vpack.c.bf16 %v340_v59, %v339_v58 }
  0x94   :  { %v776_v2 = vadd.f32 %v775_v0, %v774_v62  ;;  %v1604_v3 = vpop.f32.mrf.mxu1 }
  0x95   :  { %710 = vst.msk [vmem:[%s2380_s3 + $0x4] sm:$0xf] %vm708_vm2, %v645_v63  ;;  %v972_v8 = vsel %vm773_vm3, %v908_v1, 0.0  ;;  %v661_v9 = vpack.c.bf16 %v1604_v3, %v1604_v3 }
  0x96   :  { %v973_v10 = vadd.f32 %v972_v8, %v971_v7 }
  0x97   :  { %726 = vst.msk [vmem:[%s2380_s3 + $0x44] sm:$0xf] %vm708_vm2, %v661_v9  ;;  %v1640_v30 = vpop.f32.mrf.mxu2 }
  0x98   :  { %v676_v40 = vpack.c.bf16 %v1640_v30, %v1640_v30 }
  0x9a   :  { %v489_v15 = vpop.f32.mrf.mxu0  ;;  %741 = vst.msk [vmem:[%s2380_s3 + $0x80] sm:$0xf] %vm708_vm2, %v676_v40  ;;  %1147 = vmatmul.msk.bf16.gmra.mxu3 %vm374_vm1, %v372_v61 }
  0x9b   :  { %v646_v18 = vpack.c.bf16 %v489_v15, %v489_v15  ;;  %v777_v19 = vsel %vm773_vm3, %v489_v15, 0.0  ;;  %v909_v20 = vmul.f32 %v489_v15, %v489_v15 }
  0x9c   :  { %v778_v21 = vadd.f32 %v777_v19, %v776_v2  ;;  %v1626_v22 = vpop.f32.mrf.mxu1 }
  0x9d   :  { %711 = vst.msk [vmem:[%s2380_s3 + $0x8] sm:$0xf] %vm708_vm2, %v646_v18  ;;  %v974_v25 = vsel %vm773_vm3, %v909_v20, 0.0  ;;  %v662_v26 = vpack.c.bf16 %v1626_v22, %v1626_v22 }
  0x9e   :  { %v975_v27 = vadd.f32 %v974_v25, %v973_v10 }
  0x9f   :  { %727 = vst.msk [vmem:[%s2380_s3 + $0x48] sm:$0xf] %vm708_vm2, %v662_v26  ;;  %v1666_v45 = vpop.f32.mrf.mxu2 }
  0xa0   :  { %v677_v50 = vpack.c.bf16 %v1666_v45, %v1666_v45 }
  0xa2   :  { %v491_v29 = vpop.f32.mrf.mxu0  ;;  %742 = vst.msk [vmem:[%s2380_s3 + $0x84] sm:$0xf] %vm708_vm2, %v677_v50 }
  0xa3   :  { %v647_v31 = vpack.c.bf16 %v491_v29, %v491_v29  ;;  %v779_v32 = vsel %vm773_vm3, %v491_v29, 0.0  ;;  %v910_v33 = vmul.f32 %v491_v29, %v491_v29 }
  0xa4   :  { %v780_v34 = vadd.f32 %v779_v32, %v778_v21  ;;  %v1643_v35 = vpop.f32.mrf.mxu1 }
  0xa5   :  { %712 = vst.msk [vmem:[%s2380_s3 + $0xc] sm:$0xf] %vm708_vm2, %v647_v31  ;;  %v976_v37 = vsel %vm773_vm3, %v910_v33, 0.0  ;;  %v663_v38 = vpack.c.bf16 %v1643_v35, %v1643_v35 }
  0xa6   :  { %v977_v39 = vadd.f32 %v976_v37, %v975_v27 }
  0xa7   :  { %728 = vst.msk [vmem:[%s2380_s3 + $0x4c] sm:$0xf] %vm708_vm2, %v663_v38  ;;  %v1697_v62 = vpop.f32.mrf.mxu2 }
  0xa8   :  { %v678_v1 = vpack.c.bf16 %v1697_v62, %v1697_v62  ;;  %v1750_v14 = vpop.f32.mrf.mxu3 }
  0xa9   :  { %v692_v18 = vpack.c.bf16 %v1750_v14, %v1750_v14 }
  0xaa   :  { %v494_v44 = vpop.f32.mrf.mxu0  ;;  %743 = vst.msk [vmem:[%s2380_s3 + $0x88] sm:$0xf] %vm708_vm2, %v678_v1 }
  0xab   :  { %v648_v47 = vpack.c.bf16 %v494_v44, %v494_v44  ;;  %v781_v48 = vsel %vm773_vm3, %v494_v44, 0.0  ;;  %v911_v49 = vmul.f32 %v494_v44, %v494_v44  ;;  %757 = vst.msk [vmem:[%s2380_s3 + $0xc0] sm:$0xf] %vm708_vm2, %v692_v18 }
  0xac   :  { %v1672_v51 = vadd.f32 %v781_v48, %v780_v34  ;;  %v1674_v52 = vpop.f32.mrf.mxu1 }
  0xad   :  { %713 = vst.msk [vmem:[%s2380_s3 + $0x10] sm:$0xf] %vm708_vm2, %v648_v47  ;;  %v978_v5 = vsel %vm773_vm3, %v911_v49, 0.0  ;;  %v664_v55 = vpack.c.bf16 %v1674_v52, %v1674_v52 }
  0xae   :  { %v1684_v56 = vadd.f32 %v978_v5, %v977_v39 }
  0xaf   :  { %729 = vst.msk [vmem:[%s2380_s3 + $0x50] sm:$0xf] %vm708_vm2, %v664_v55  ;;  %v1722_v4 = vpop.f32.mrf.mxu2 }
  0xb0   :  { %v679_v8 = vpack.c.bf16 %v1722_v4, %v1722_v4  ;;  %v1784_v24 = vpop.f32.mrf.mxu3 }
  0xb1   :  { %v693_v26 = vpack.c.bf16 %v1784_v24, %v1784_v24 }
  0xb2   :  { %v1695_v60 = vpop.f32.mrf.mxu0  ;;  %744 = vst.msk [vmem:[%s2380_s3 + $0x8c] sm:$0xf] %vm708_vm2, %v679_v8 }
  0xb3   :  { %v649_v63 = vpack.c.bf16 %v1695_v60, %v1695_v60  ;;  %758 = vst.msk [vmem:[%s2380_s3 + $0xc4] sm:$0xf] %vm708_vm2, %v693_v26  ;;  %v912_v58 = vmul.f32 %v1695_v60, %v1695_v60 }
  0xb4   :  { %v1701_v0 = vpop.f32.mrf.mxu1 }
  0xb5   :  { %714 = vst.msk [vmem:[%s2380_s3 + $0x14] sm:$0xf] %vm708_vm2, %v649_v63  ;;  %v665_v6 = vpack.c.bf16 %v1701_v0, %v1701_v0 }
  0xb7   :  { %730 = vst.msk [vmem:[%s2380_s3 + $0x54] sm:$0xf] %vm708_vm2, %v665_v6  ;;  %v1746_v12 = vpop.f32.mrf.mxu2 }
  0xb8   :  { %v680_v17 = vpack.c.bf16 %v1746_v12, %v1746_v12 }
  0xba   :  { %v1720_v2 = vpop.f32.mrf.mxu0  ;;  %745 = vst.msk [vmem:[%s2380_s3 + $0x90] sm:$0xf] %vm708_vm2, %v680_v17 }
  0xbb   :  { %v650_v7 = vpack.c.bf16 %v1720_v2, %v1720_v2  ;;  %v913_v8 = vmul.f32 %v1720_v2, %v1720_v2 }
  0xbc   :  { %v1728_v9 = vpop.f32.mrf.mxu1  ;;  %v1814_v32 = vpop.f32.mrf.mxu3 }
  0xbd   :  { %715 = vst.msk [vmem:[%s2380_s3 + $0x18] sm:$0xf] %vm708_vm2, %v650_v7  ;;  %v666_v10 = vpack.c.bf16 %v1728_v9, %v1728_v9  ;;  %v694_v37 = vpack.c.bf16 %v1814_v32, %v1814_v32  ;;  %v783_v7 = vsel %vm773_vm3, %v1695_v60, 0.0  ;;  %v785_v60 = vsel %vm773_vm3, %v1720_v2, 0.0 }
  0xbe   :  { %v784_v18 = vadd.f32 %v783_v7, %v1672_v51 }
  0xbf   :  { %731 = vst.msk [vmem:[%s2380_s3 + $0x58] sm:$0xf] %vm708_vm2, %v666_v10  ;;  %v1778_v20 = vpop.f32.mrf.mxu2 }
  0xc0   :  { %v681_v23 = vpack.c.bf16 %v1778_v20, %v1778_v20  ;;  %759 = vst.msk [vmem:[%s2380_s3 + $0xc8] sm:$0xf] %vm708_vm2, %v694_v37 }
  0xc2   :  { %v1744_v11 = vpop.f32.mrf.mxu0  ;;  %746 = vst.msk [vmem:[%s2380_s3 + $0x94] sm:$0xf] %vm708_vm2, %v681_v23 }
  0xc3   :  { %v651_v13 = vpack.c.bf16 %v1744_v11, %v1744_v11  ;;  %v787_v23 = vsel %vm773_vm3, %v1744_v11, 0.0 }
  0xc4   :  { %v1752_v15 = vpop.f32.mrf.mxu1  ;;  %v1848_v42 = vpop.f32.mrf.mxu3 }
  0xc5   :  { %716 = vst.msk [vmem:[%s2380_s3 + $0x1c] sm:$0xf] %vm708_vm2, %v651_v13  ;;  %v667_v16 = vpack.c.bf16 %v1752_v15, %v1752_v15  ;;  %v695_v44 = vpack.c.bf16 %v1848_v42, %v1848_v42  ;;  %v980_v13 = vsel %vm773_vm3, %v912_v58, 0.0 }
  0xc6   :  { %v981_v51 = vadd.f32 %v980_v13, %v1684_v56 }
  0xc7   :  { %732 = vst.msk [vmem:[%s2380_s3 + $0x5c] sm:$0xf] %vm708_vm2, %v667_v16  ;;  %v1810_v29 = vpop.f32.mrf.mxu2  ;;  %v914_v16 = vmul.f32 %v1744_v11, %v1744_v11 }
  0xc8   :  { %v682_v36 = vpack.c.bf16 %v1810_v29, %v1810_v29  ;;  %760 = vst.msk [vmem:[%s2380_s3 + $0xcc] sm:$0xf] %vm708_vm2, %v695_v44 }
  0xc9   :  { %v984_v11 = vsel %vm773_vm3, %v914_v16, 0.0 }
  0xca   :  { %v1776_v19 = vpop.f32.mrf.mxu0  ;;  %747 = vst.msk [vmem:[%s2380_s3 + $0x98] sm:$0xf] %vm708_vm2, %v682_v36 }
  0xcb   :  { %v652_v21 = vpack.c.bf16 %v1776_v19, %v1776_v19  ;;  %v915_v26 = vmul.f32 %v1776_v19, %v1776_v19  ;;  %v789_v36 = vsel %vm773_vm3, %v1776_v19, 0.0 }
  0xcc   :  { %v1786_v25 = vpop.f32.mrf.mxu1  ;;  %v1874_v50 = vpop.f32.mrf.mxu3 }
  0xcd   :  { %717 = vst.msk [vmem:[%s2380_s3 + $0x20] sm:$0xf] %vm708_vm2, %v652_v21  ;;  %v668_v27 = vpack.c.bf16 %v1786_v25, %v1786_v25  ;;  %v696_v1 = vpack.c.bf16 %v1874_v50, %v1874_v50  ;;  %v982_v21 = vsel %vm773_vm3, %v913_v8, 0.0 }
  0xce   :  { %v983_v56 = vadd.f32 %v982_v21, %v981_v51 }
  0xcf   :  { %733 = vst.msk [vmem:[%s2380_s3 + $0x60] sm:$0xf] %vm708_vm2, %v668_v27  ;;  %v1842_v39 = vpop.f32.mrf.mxu2  ;;  %v786_v27 = vadd.f32 %v785_v60, %v784_v18 }
  0xd0   :  { %v683_v41 = vpack.c.bf16 %v1842_v39, %v1842_v39  ;;  %761 = vst.msk [vmem:[%s2380_s3 + $0xd0] sm:$0xf] %vm708_vm2, %v696_v1 }
  0xd1   :  { %v788_v44 = vadd.f32 %v787_v23, %v786_v27 }
  0xd2   :  { %v1808_v28 = vpop.f32.mrf.mxu0  ;;  %748 = vst.msk [vmem:[%s2380_s3 + $0x9c] sm:$0xf] %vm708_vm2, %v683_v41 }
  0xd3   :  { %v653_v31 = vpack.c.bf16 %v1808_v28, %v1808_v28  ;;  %v916_v37 = vmul.f32 %v1808_v28, %v1808_v28 }
  0xd4   :  { %v1816_v33 = vpop.f32.mrf.mxu1  ;;  %v1894_v63 = vpop.f32.mrf.mxu3 }
  0xd5   :  { %718 = vst.msk [vmem:[%s2380_s3 + $0x24] sm:$0xf] %vm708_vm2, %v653_v31  ;;  %v669_v34 = vpack.c.bf16 %v1816_v33, %v1816_v33  ;;  %v697_v2 = vpack.c.bf16 %v1894_v63, %v1894_v63  ;;  %v988_v7 = vsel %vm773_vm3, %v916_v37, 0.0 }
  0xd7   :  { %734 = vst.msk [vmem:[%s2380_s3 + $0x64] sm:$0xf] %vm708_vm2, %v669_v34  ;;  %v1872_v48 = vpop.f32.mrf.mxu2 }
  0xd8   :  { %v684_v61 = vpack.c.bf16 %v1872_v48, %v1872_v48  ;;  %762 = vst.msk [vmem:[%s2380_s3 + $0xd4] sm:$0xf] %vm708_vm2, %v697_v2 }
  0xda   :  { %v1840_v38 = vpop.f32.mrf.mxu0  ;;  %749 = vst.msk [vmem:[%s2380_s3 + $0xa0] sm:$0xf] %vm708_vm2, %v684_v61  ;;  %v790_v61 = vadd.f32 %v789_v36, %v788_v44 }
  0xdb   :  { %v654_v40 = vpack.c.bf16 %v1840_v38, %v1840_v38  ;;  %v917_v58 = vmul.f32 %v1840_v38, %v1840_v38  ;;  %v793_v8 = vsel %vm773_vm3, %v1840_v38, 0.0 }
  0xdc   :  { %v1850_v43 = vpop.f32.mrf.mxu1 }
  0xdd   :  { %719 = vst.msk [vmem:[%s2380_s3 + $0x28] sm:$0xf] %vm708_vm2, %v654_v40  ;;  %v670_v46 = vpack.c.bf16 %v1850_v43, %v1850_v43  ;;  %v1953_v41 = vpop.f32.mrf.mxu3  ;;  %v990_v13 = vsel %vm773_vm3, %v917_v58, 0.0 }
  0xdf   :  { %735 = vst.msk [vmem:[%s2380_s3 + $0x68] sm:$0xf] %vm708_vm2, %v670_v46  ;;  %v1888_v57 = vpop.f32.mrf.mxu2 }
  0xe0   :  { %v685_v17 = vpack.c.bf16 %v1888_v57, %v1888_v57 }
  0xe2   :  { %v511_v47 = vpop.f32.mrf.mxu0  ;;  %750 = vst.msk [vmem:[%s2380_s3 + $0xa4] sm:$0xf] %vm708_vm2, %v685_v17 }
  0xe3   :  { %v655_v49 = vpack.c.bf16 %v511_v47, %v511_v47  ;;  %v918_v1 = vmul.f32 %v511_v47, %v511_v47  ;;  %v795_v60 = vsel %vm773_vm3, %v511_v47, 0.0 }
  0xe4   :  { %v1876_v54 = vpop.f32.mrf.mxu1 }
  0xe5   :  { %720 = vst.msk [vmem:[%s2380_s3 + $0x2c] sm:$0xf] %vm708_vm2, %v655_v49  ;;  %v671_v5 = vpack.c.bf16 %v1876_v54, %v1876_v54  ;;  %v986_v49 = vsel %vm773_vm3, %v915_v26, 0.0  ;;  %v992_v2 = vsel %vm773_vm3, %v918_v1, 0.0 }
  0xe7   :  { %736 = vst.msk [vmem:[%s2380_s3 + $0x6c] sm:$0xf] %vm708_vm2, %v671_v5  ;;  %v1946_v34 = vpop.f32.mrf.mxu2  ;;  %v791_v5 = vsel %vm773_vm3, %v1808_v28, 0.0 }
  0xe8   :  { %v686_v27 = vpack.c.bf16 %v1946_v34, %v1946_v34 }
  0xea   :  { %v514_v55 = vpop.f32.mrf.mxu0  ;;  %751 = vst.msk [vmem:[%s2380_s3 + $0xa8] sm:$0xf] %vm708_vm2, %v686_v27  ;;  %v805_v27 = vsel %vm773_vm3, %v1588_v53, 0.0 }
  0xeb   :  { %v656_v59 = vpack.c.bf16 %v514_v55, %v514_v55  ;;  %v919_v16 = vmul.f32 %v514_v55, %v514_v55  ;;  %v797_v38 = vsel %vm773_vm3, %v514_v55, 0.0 }
  0xec   :  { %v1896_v6 = vpop.f32.mrf.mxu1 }
  0xed   :  { %721 = vst.msk [vmem:[%s2380_s3 + $0x30] sm:$0xf] %vm708_vm2, %v656_v59  ;;  %v672_v10 = vpack.c.bf16 %v1896_v6, %v1896_v6  ;;  %v985_v59 = vadd.f32 %v984_v11, %v983_v56  ;;  %v1983_v11 = vpop.f32.mrf.mxu3  ;;  %v994_v56 = vsel %vm773_vm3, %v919_v16, 0.0  ;;  %v923_v16 = vmul.f32 %v1588_v53, %v1588_v53 }
  0xef   :  { %737 = vst.msk [vmem:[%s2380_s3 + $0x70] sm:$0xf] %vm708_vm2, %v672_v10  ;;  %v987_v28 = vadd.f32 %v986_v49, %v985_v59  ;;  %v792_v10 = vadd.f32 %v791_v5, %v790_v61  ;;  %v1978_v23 = vpop.f32.mrf.mxu2  ;;  %v1002_v53 = vsel %vm773_vm3, %v923_v16, 0.0 }
  0xf0   :  { %v687_v59 = vpack.c.bf16 %v1978_v23, %v1978_v23 }
  0xf1   :  { %v989_v17 = vadd.f32 %v988_v7, %v987_v28  ;;  %v794_v18 = vadd.f32 %v793_v8, %v792_v10  ;;  %v699_v7 = vpack.c.bf16 %v1983_v11, %v1983_v11 }
  0xf2   :  { %v516_v31 = vpop.f32.mrf.mxu0  ;;  %752 = vst.msk [vmem:[%s2380_s3 + $0xac] sm:$0xf] %vm708_vm2, %v687_v59  ;;  %v926_v59 = vmul.f32 %v1643_v35, %v1643_v35 }
  0xf3   :  { %v657_v40 = vpack.c.bf16 %v516_v31, %v516_v31  ;;  %v920_v26 = vmul.f32 %v516_v31, %v516_v31  ;;  %v991_v36 = vadd.f32 %v990_v13, %v989_v17  ;;  %v796_v37 = vadd.f32 %v795_v60, %v794_v18  ;;  %764 = vst.msk [vmem:[%s2380_s3 + $0xdc] sm:$0xf] %vm708_vm2, %v699_v7 }
  0xf4   :  { %v1955_v46 = vpop.f32.mrf.mxu1  ;;  %v799_v44 = vsel %vm773_vm3, %v516_v31, 0.0 }
  0xf5   :  { %722 = vst.msk [vmem:[%s2380_s3 + $0x34] sm:$0xf] %vm708_vm2, %v657_v40  ;;  %v673_v19 = vpack.c.bf16 %v1955_v46, %v1955_v46  ;;  %v698_v40 = vpack.c.bf16 %v1953_v41, %v1953_v41  ;;  %v993_v5 = vadd.f32 %v992_v2, %v991_v36  ;;  %v798_v58 = vadd.f32 %v797_v38, %v796_v37 }
  0xf6   :  { %v924_v36 = vmul.f32 %v1604_v3, %v1604_v3 }
  0xf7   :  { %738 = vst.msk [vmem:[%s2380_s3 + $0x74] sm:$0xf] %vm708_vm2, %v673_v19  ;;  %v996_v19 = vsel %vm773_vm3, %v920_v26, 0.0  ;;  %v995_v61 = vadd.f32 %v994_v56, %v993_v5  ;;  %v800_v1 = vadd.f32 %v799_v44, %v798_v58  ;;  %v2024_v60 = vpop.f32.mrf.mxu2  ;;  %v925_v56 = vmul.f32 %v1626_v22, %v1626_v22 }
  0xf8   :  { %763 = vst.msk [vmem:[%s2380_s3 + $0xd8] sm:$0xf] %vm708_vm2, %v698_v40 }
  0xf9   :  { %v997_v28 = vadd.f32 %v996_v19, %v995_v61  ;;  %v1004_v19 = vsel %vm773_vm3, %v924_v36, 0.0  ;;  %v1006_v61 = vsel %vm773_vm3, %v925_v56, 0.0 }
  0xfa   :  { %v519_v21 = vpop.f32.mrf.mxu0 }
  0xfb   :  { %v658_v51 = vpack.c.bf16 %v519_v21, %v519_v21  ;;  %v921_v55 = vmul.f32 %v519_v21, %v519_v21  ;;  %v801_v31 = vsel %vm773_vm3, %v519_v21, 0.0  ;;  %v2029_v21 = vpop.f32.mrf.mxu3 }
  0xfc   :  { %v1985_v47 = vpop.f32.mrf.mxu1  ;;  %v802_v10 = vadd.f32 %v801_v31, %v800_v1  ;;  %v809_v31 = vsel %vm773_vm3, %v1626_v22, 0.0  ;;  %v700_v22 = vpack.c.bf16 %v2029_v21, %v2029_v21 }
  0xfd   :  { %723 = vst.msk [vmem:[%s2380_s3 + $0x38] sm:$0xf] %vm708_vm2, %v658_v51  ;;  %v674_v49 = vpack.c.bf16 %v1985_v47, %v1985_v47  ;;  %v998_v8 = vsel %vm773_vm3, %v921_v55, 0.0 }
  0xfe   :  { %v999_v38 = vadd.f32 %v998_v8, %v997_v28  ;;  %v811_v8 = vsel %vm773_vm3, %v1643_v35, 0.0  ;;  %v927_v28 = vmul.f32 %v1674_v52, %v1674_v52  ;;  %v928_v35 = vmul.f32 %v1701_v0, %v1701_v0  ;;  %765 = vst.msk [vmem:[%s2380_s3 + $0xe0] sm:$0xf] %vm708_vm2, %v700_v22 }
  0xff   :  { %739 = vst.msk [vmem:[%s2380_s3 + $0x78] sm:$0xf] %vm708_vm2, %v674_v49  ;;  %v807_v49 = vsel %vm773_vm3, %v1604_v3, 0.0  ;;  %v2059_v3 = vpop.f32.mrf.mxu2 }
 0x100   :  { %v1010_v36 = vsel %vm773_vm3, %v927_v28, 0.0  ;;  %v932_v28 = vmul.f32 %v1816_v33, %v1816_v33 }
 0x102   :  { %v521_v13 = vpop.f32.mrf.mxu0 }
 0x103   :  { %v659_v17 = vpack.c.bf16 %v521_v13, %v521_v13  ;;  %v803_v18 = vsel %vm773_vm3, %v521_v13, 0.0  ;;  %v922_v2 = vmul.f32 %v521_v13, %v521_v13  ;;  %v2069_v13 = vpop.f32.mrf.mxu3 }
 0x104   :  { %v804_v26 = vadd.f32 %v803_v18, %v802_v10  ;;  %v2031_v51 = vpop.f32.mrf.mxu1  ;;  %v688_v10 = vpack.c.bf16 %v2024_v60, %v2024_v60  ;;  %v1008_v18 = vsel %vm773_vm3, %v926_v59, 0.0 }
 0x105   :  { %724 = vst.msk [vmem:[%s2380_s3 + $0x3c] sm:$0xf] %vm708_vm2, %v659_v17  ;;  %v1000_v37 = vsel %vm773_vm3, %v922_v2, 0.0  ;;  %v675_v40 = vpack.c.bf16 %v2031_v51, %v2031_v51  ;;  %v813_v2 = vsel %vm773_vm3, %v1674_v52, 0.0  ;;  %v701_v52 = vpack.c.bf16 %v2069_v13, %v2069_v13 }
 0x106   :  { %v806_v44 = vadd.f32 %v805_v27, %v804_v26  ;;  %v1001_v55 = vadd.f32 %v1000_v37, %v999_v38  ;;  %753 = vst.msk [vmem:[%s2380_s3 + $0xb0] sm:$0xf] %vm708_vm2, %v688_v10  ;;  %v689_v38 = vpack.c.bf16 %v2059_v3, %v2059_v3  ;;  %v815_v37 = vsel %vm773_vm3, %v1701_v0, 0.0 }
 0x107   :  { %740 = vst.msk [vmem:[%s2380_s3 + $0x7c] sm:$0xf] %vm708_vm2, %v675_v40  ;;  %v929_v40 = vmul.f32 %v1728_v9, %v1728_v9  ;;  %v817_v0 = vsel %vm773_vm3, %v1728_v9, 0.0  ;;  %v2111_v59 = vpop.f32.mrf.mxu2 }
 0x108   :  { %v808_v5 = vadd.f32 %v807_v49, %v806_v44  ;;  %v1003_v58 = vadd.f32 %v1002_v53, %v1001_v55  ;;  %754 = vst.msk [vmem:[%s2380_s3 + $0xb4] sm:$0xf] %vm708_vm2, %v689_v38  ;;  %v1012_v55 = vsel %vm773_vm3, %v928_v35, 0.0  ;;  %v930_v53 = vmul.f32 %v1752_v15, %v1752_v15 }
 0x109   :  { %766 = vst.msk [vmem:[%s2380_s3 + $0xe4] sm:$0xf] %vm708_vm2, %v701_v52  ;;  %v1020_v35 = vsel %vm773_vm3, %v932_v28, 0.0  ;;  %v934_v38 = vmul.f32 %v1876_v54, %v1876_v54  ;;  %v938_v28 = vmul.f32 %v2031_v51, %v2031_v51 }
 0x10a   :  { %v810_v1 = vadd.f32 %v809_v31, %v808_v5  ;;  %v1005_v7 = vadd.f32 %v1004_v19, %v1003_v58  ;;  %v1014_v58 = vsel %vm773_vm3, %v929_v40, 0.0  ;;  %v819_v19 = vsel %vm773_vm3, %v1752_v15, 0.0 }
 0x10b   :  { %v931_v31 = vmul.f32 %v1786_v25, %v1786_v25  ;;  %v1016_v9 = vsel %vm773_vm3, %v930_v53, 0.0  ;;  %v933_v15 = vmul.f32 %v1850_v43, %v1850_v43  ;;  %v936_v53 = vmul.f32 %v1955_v46, %v1955_v46 }
 0x10c   :  { %v812_v16 = vadd.f32 %v811_v8, %v810_v1  ;;  %v1007_v17 = vadd.f32 %v1006_v61, %v1005_v7  ;;  %v2113_v61 = vpop.f32.mrf.mxu3  ;;  %v821_v8 = vsel %vm773_vm3, %v1786_v25, 0.0  ;;  %v825_v25 = vsel %vm773_vm3, %v1850_v43, 0.0 }
 0x10d   :  { %v702_v40 = vpack.c.bf16 %v2113_v61, %v2113_v61 }
 0x10e   :  { %v814_v26 = vadd.f32 %v813_v2, %v812_v16  ;;  %v1009_v27 = vadd.f32 %v1008_v18, %v1007_v17  ;;  %v1018_v16 = vsel %vm773_vm3, %v931_v31, 0.0  ;;  %v823_v17 = vsel %vm773_vm3, %v1816_v33, 0.0 }
 0x10f   :  { %v935_v33 = vmul.f32 %v1896_v6, %v1896_v6  ;;  %v2139_v43 = vpop.f32.mrf.mxu2  ;;  %767 = vst.msk [vmem:[%s2380_s3 + $0xe8] sm:$0xf] %vm708_vm2, %v702_v40  ;;  %v831_v31 = vsel %vm773_vm3, %v1955_v46, 0.0  ;;  %v833_v46 = vsel %vm773_vm3, %v1985_v47, 0.0 }
 0x110   :  { %v816_v56 = vadd.f32 %v815_v37, %v814_v26  ;;  %v1011_v44 = vadd.f32 %v1010_v36, %v1009_v27  ;;  %v1022_v26 = vsel %vm773_vm3, %v933_v15, 0.0  ;;  %v827_v36 = vsel %vm773_vm3, %v1876_v54, 0.0 }
 0x111   :  { %v690_v37 = vpack.c.bf16 %v2111_v59, %v2111_v59  ;;  %v829_v54 = vsel %vm773_vm3, %v1896_v6, 0.0 }
 0x112   :  { %v1013_v49 = vadd.f32 %v1012_v55, %v1011_v44  ;;  %v818_v5 = vadd.f32 %v817_v0, %v816_v56  ;;  %v1024_v0 = vsel %vm773_vm3, %v934_v38, 0.0  ;;  %v1032_v38 = vsel %vm773_vm3, %v938_v28, 0.0 }
 0x113   :  { %755 = vst.msk [vmem:[%s2380_s3 + $0xb8] sm:$0xf] %vm708_vm2, %v690_v37 }
 0x114   :  { %v820_v1 = vadd.f32 %v819_v19, %v818_v5  ;;  %v1015_v7 = vadd.f32 %v1014_v58, %v1013_v49  ;;  %v2141_v56 = vpop.f32.mrf.mxu3  ;;  %v691_v49 = vpack.c.bf16 %v2139_v43, %v2139_v43  ;;  %v1026_v19 = vsel %vm773_vm3, %v935_v33, 0.0 }
 0x115   :  { %v703_v6 = vpack.c.bf16 %v2141_v56, %v2141_v56 }
 0x116   :  { %v822_v10 = vadd.f32 %v821_v8, %v820_v1  ;;  %v1017_v22 = vadd.f32 %v1016_v9, %v1015_v7  ;;  %v937_v1 = vmul.f32 %v1985_v47, %v1985_v47  ;;  %756 = vst.msk [vmem:[%s2380_s3 + $0xbc] sm:$0xf] %vm708_vm2, %v691_v49  ;;  %v1028_v8 = vsel %vm773_vm3, %v936_v53, 0.0 }
 0x117   :  { %768 = vst.msk [vmem:[%s2380_s3 + $0xec] sm:$0xf] %vm708_vm2, %v703_v6  ;;  %v837_v47 = vsel %vm773_vm3, %v1640_v30, 0.0  ;;  %v943_v53 = vmul.f32 %v1746_v12, %v1746_v12 }
 0x118   :  { %v824_v18 = vadd.f32 %v823_v17, %v822_v10  ;;  %v1019_v2 = vadd.f32 %v1018_v16, %v1017_v22  ;;  %v939_v22 = vmul.f32 %v1640_v30, %v1640_v30  ;;  %v1030_v16 = vsel %vm773_vm3, %v937_v1, 0.0 }
 0x119   :  { %v835_v17 = vsel %vm773_vm3, %v2031_v51, 0.0  ;;  %v941_v51 = vmul.f32 %v1697_v62, %v1697_v62  ;;  %v841_v30 = vsel %vm773_vm3, %v1697_v62, 0.0 }
 0x11a   :  { %v826_v27 = vadd.f32 %v825_v25, %v824_v18  ;;  %v1021_v52 = vadd.f32 %v1020_v35, %v1019_v2  ;;  %v940_v25 = vmul.f32 %v1666_v45, %v1666_v45 }
 0x11c   :  { %v828_v44 = vadd.f32 %v827_v36, %v826_v27  ;;  %v1023_v55 = vadd.f32 %v1022_v26, %v1021_v52  ;;  %v2183_v18 = vpop.f32.mrf.mxu3  ;;  %v1034_v52 = vsel %vm773_vm3, %v939_v22, 0.0  ;;  %v839_v36 = vsel %vm773_vm3, %v1666_v45, 0.0 }
 0x11d   :  { %v1036_v40 = vsel %vm773_vm3, %v940_v25, 0.0  ;;  %v843_v45 = vsel %vm773_vm3, %v1722_v4, 0.0  ;;  %v704_v49 = vpack.c.bf16 %v2183_v18, %v2183_v18  ;;  %v946_v22 = vmul.f32 %v1842_v39, %v1842_v39 }
 0x11e   :  { %v830_v5 = vadd.f32 %v829_v54, %v828_v44  ;;  %v1025_v58 = vadd.f32 %v1024_v0, %v1023_v55  ;;  %v942_v44 = vmul.f32 %v1722_v4, %v1722_v4  ;;  %v1038_v54 = vsel %vm773_vm3, %v941_v51, 0.0 }
 0x11f   :  { %v944_v4 = vmul.f32 %v1778_v20, %v1778_v20  ;;  %769 = vst.msk [vmem:[%s2380_s3 + $0xf0] sm:$0xf] %vm708_vm2, %v704_v49  ;;  %v949_v51 = vmul.f32 %v1946_v34, %v1946_v34 }
 0x120   :  { %v1027_v7 = vadd.f32 %v1026_v19, %v1025_v58  ;;  %v832_v9 = vadd.f32 %v831_v31, %v830_v5  ;;  %v1040_v19 = vsel %vm773_vm3, %v942_v44, 0.0  ;;  %v845_v31 = vsel %vm773_vm3, %v1746_v12, 0.0 }
 0x121   :  { %v847_v12 = vsel %vm773_vm3, %v1778_v20, 0.0  ;;  %v851_v20 = vsel %vm773_vm3, %v1842_v39, 0.0  ;;  %v855_v39 = vsel %vm773_vm3, %v1888_v57, 0.0  ;;  %v950_v44 = vmul.f32 %v1978_v23, %v1978_v23 }
 0x122   :  { %v1029_v15 = vadd.f32 %v1028_v8, %v1027_v7  ;;  %v834_v10 = vadd.f32 %v833_v46, %v832_v9  ;;  %v1042_v9 = vsel %vm773_vm3, %v943_v53, 0.0  ;;  %v945_v8 = vmul.f32 %v1810_v29, %v1810_v29 }
 0x124   :  { %v1031_v2 = vadd.f32 %v1030_v16, %v1029_v15  ;;  %v836_v35 = vadd.f32 %v835_v17, %v834_v10  ;;  %v2207_v5 = vpop.f32.mrf.mxu3  ;;  %v1044_v15 = vsel %vm773_vm3, %v944_v4, 0.0  ;;  %v849_v10 = vsel %vm773_vm3, %v1810_v29, 0.0 }
 0x125   :  { %v705_v6 = vpack.c.bf16 %v2207_v5, %v2207_v5  ;;  %v853_v29 = vsel %vm773_vm3, %v1872_v48, 0.0  ;;  %v863_v4 = vsel %vm773_vm3, %v2059_v3, 0.0 }
 0x126   :  { %v838_v26 = vadd.f32 %v837_v47, %v836_v35  ;;  %v1033_v27 = vadd.f32 %v1032_v38, %v1031_v2  ;;  %v1046_v2 = vsel %vm773_vm3, %v945_v8, 0.0  ;;  %v947_v35 = vmul.f32 %v1872_v48, %v1872_v48 }
 0x127   :  { %770 = vst.msk [vmem:[%s2380_s3 + $0xf4] sm:$0xf] %vm708_vm2, %v705_v6  ;;  %v1048_v38 = vsel %vm773_vm3, %v946_v22, 0.0  ;;  %v857_v48 = vsel %vm773_vm3, %v1946_v34, 0.0  ;;  %v1056_v34 = vsel %vm773_vm3, %v950_v44, 0.0  ;;  %v952_v6 = vmul.f32 %v2059_v3, %v2059_v3 }
 0x128   :  { %v840_v33 = vadd.f32 %v839_v36, %v838_v26  ;;  %v1035_v37 = vadd.f32 %v1034_v52, %v1033_v27  ;;  %v948_v26 = vmul.f32 %v1888_v57, %v1888_v57  ;;  %v1050_v36 = vsel %vm773_vm3, %v947_v35, 0.0 }
 0x129   :  { %v859_v57 = vsel %vm773_vm3, %v1978_v23, 0.0  ;;  %v1060_v8 = vsel %vm773_vm3, %v952_v6, 0.0 }
 0x12a   :  { %v842_v55 = vadd.f32 %v841_v30, %v840_v33  ;;  %v1037_v0 = vadd.f32 %v1036_v40, %v1035_v37  ;;  %v1052_v30 = vsel %vm773_vm3, %v948_v26, 0.0 }
 0x12c   :  { %v844_v58 = vadd.f32 %v843_v45, %v842_v55  ;;  %v1039_v62 = vadd.f32 %v1038_v54, %v1037_v0  ;;  %v2249_v33 = vpop.f32.mrf.mxu3  ;;  %v1054_v54 = vsel %vm773_vm3, %v949_v51, 0.0  ;;  %v951_v45 = vmul.f32 %v2024_v60, %v2024_v60 }
 0x12d   :  { %v706_v53 = vpack.c.bf16 %v2249_v33, %v2249_v33 }
 0x12e   :  { %v846_v1 = vadd.f32 %v845_v31, %v844_v58  ;;  %v1041_v7 = vadd.f32 %v1040_v19, %v1039_v62  ;;  %v861_v62 = vsel %vm773_vm3, %v2024_v60, 0.0  ;;  %v1058_v31 = vsel %vm773_vm3, %v951_v45, 0.0 }
 0x12f   :  { %771 = vst.msk [vmem:[%s2380_s3 + $0xf8] sm:$0xf] %vm708_vm2, %v706_v53  ;;  %v961_v45 = vmul.f32 %v1953_v41, %v1953_v41 }
 0x130   :  { %v848_v46 = vadd.f32 %v847_v12, %v846_v1  ;;  %v1043_v28 = vadd.f32 %v1042_v9, %v1041_v7  ;;  %v953_v1 = vmul.f32 %v2111_v59, %v2111_v59 }
 0x132   :  { %v1045_v16 = vadd.f32 %v1044_v15, %v1043_v28  ;;  %v850_v17 = vadd.f32 %v849_v10, %v848_v46  ;;  %v865_v46 = vsel %vm773_vm3, %v2111_v59, 0.0  ;;  %v954_v28 = vmul.f32 %v2139_v43, %v2139_v43 }
 0x133   :  { %v955_v10 = vmul.f32 %v1750_v14, %v1750_v14  ;;  %v1062_v22 = vsel %vm773_vm3, %v953_v1, 0.0 }
 0x134   :  { %v852_v47 = vadd.f32 %v851_v20, %v850_v17  ;;  %v1047_v25 = vadd.f32 %v1046_v2, %v1045_v16  ;;  %v2277_v7 = vpop.f32.mrf.mxu3  ;;  %v867_v16 = vsel %vm773_vm3, %v2139_v43, 0.0  ;;  %v869_v2 = vsel %vm773_vm3, %v1750_v14, 0.0 }
 0x135   :  { %v707_v12 = vpack.c.bf16 %v2277_v7, %v2277_v7  ;;  %v956_v20 = vmul.f32 %v1784_v24, %v1784_v24  ;;  %v1064_v35 = vsel %vm773_vm3, %v954_v28, 0.0  ;;  %v957_v43 = vmul.f32 %v1814_v32, %v1814_v32 }
 0x136   :  { %v854_v27 = vadd.f32 %v853_v29, %v852_v47  ;;  %v1049_v52 = vadd.f32 %v1048_v38, %v1047_v25  ;;  %v1066_v38 = vsel %vm773_vm3, %v955_v10, 0.0  ;;  %v871_v29 = vsel %vm773_vm3, %v1784_v24, 0.0 }
 0x137   :  { %772 = vst.msk [vmem:[%s2380_s3 + $0xfc] sm:$0xf] %vm708_vm2, %v707_v12  ;;  %v873_v14 = vsel %vm773_vm3, %v1814_v32, 0.0  ;;  %v875_v24 = vsel %vm773_vm3, %v1848_v42, 0.0  ;;  %v877_v32 = vsel %vm773_vm3, %v1874_v50, 0.0  ;;  %v966_v10 = vmul.f32 %v2141_v56, %v2141_v56 }
 0x138   :  { %v856_v37 = vadd.f32 %v855_v39, %v854_v27  ;;  %v1051_v40 = vadd.f32 %v1050_v36, %v1049_v52  ;;  %v1068_v52 = vsel %vm773_vm3, %v956_v20, 0.0  ;;  %v958_v36 = vmul.f32 %v1848_v42, %v1848_v42 }
 0x139   :  { %v879_v42 = vsel %vm773_vm3, %v1894_v63, 0.0 }
 0x13a   :  { %v858_v55 = vadd.f32 %v857_v48, %v856_v37  ;;  %v1053_v0 = vadd.f32 %v1052_v30, %v1051_v40  ;;  %v1070_v37 = vsel %vm773_vm3, %v957_v43, 0.0  ;;  %v959_v40 = vmul.f32 %v1874_v50, %v1874_v50 }
 0x13b   :  { %v1072_v44 = vsel %vm773_vm3, %v958_v36, 0.0  ;;  %v881_v50 = vsel %vm773_vm3, %v1953_v41, 0.0  ;;  %v885_v41 = vsel %vm773_vm3, %v2029_v21, 0.0  ;;  %v969_v43 = vmul.f32 %v2249_v33, %v2249_v33 }
 0x13c   :  { %v860_v49 = vadd.f32 %v859_v57, %v858_v55  ;;  %v1055_v58 = vadd.f32 %v1054_v54, %v1053_v0  ;;  %v960_v55 = vmul.f32 %v1894_v63, %v1894_v63  ;;  %v1074_v57 = vsel %vm773_vm3, %v959_v40, 0.0 }
 0x13d   :  { %v883_v63 = vsel %vm773_vm3, %v1983_v11, 0.0 }
 0x13e   :  { %v1057_v23 = vadd.f32 %v1056_v34, %v1055_v58  ;;  %v862_v19 = vadd.f32 %v861_v62, %v860_v49  ;;  %v1076_v58 = vsel %vm773_vm3, %v960_v55, 0.0  ;;  %v962_v34 = vmul.f32 %v1983_v11, %v1983_v11 }
 0x13f   :  { %v887_v11 = vsel %vm773_vm3, %v2069_v13, 0.0 }
 0x140   :  { %v1059_v60 = vadd.f32 %v1058_v31, %v1057_v23  ;;  %v864_v9 = vadd.f32 %v863_v4, %v862_v19  ;;  %v1078_v23 = vsel %vm773_vm3, %v961_v45, 0.0  ;;  %v963_v19 = vmul.f32 %v2029_v21, %v2029_v21 }
 0x141   :  { %v1080_v1 = vsel %vm773_vm3, %v962_v34, 0.0  ;;  %v889_v21 = vsel %vm773_vm3, %v2113_v61, 0.0 }
 0x142   :  { %v1061_v15 = vadd.f32 %v1060_v8, %v1059_v60  ;;  %v866_v3 = vadd.f32 %v865_v46, %v864_v9  ;;  %v964_v60 = vmul.f32 %v2069_v13, %v2069_v13  ;;  %v1082_v8 = vsel %vm773_vm3, %v963_v19, 0.0 }
 0x143   :  { %v965_v46 = vmul.f32 %v2113_v61, %v2113_v61  ;;  %v891_v13 = vsel %vm773_vm3, %v2141_v56, 0.0  ;;  %v893_v61 = vsel %vm773_vm3, %v2183_v18, 0.0  ;;  %v895_v56 = vsel %vm773_vm3, %v2207_v5, 0.0 }
 0x144   :  { %v1063_v17 = vadd.f32 %v1062_v22, %v1061_v15  ;;  %v868_v59 = vadd.f32 %v867_v16, %v866_v3  ;;  %v1084_v3 = vsel %vm773_vm3, %v964_v60, 0.0 }
 0x146   :  { %v870_v47 = vadd.f32 %v869_v2, %v868_v59  ;;  %v1065_v25 = vadd.f32 %v1064_v35, %v1063_v17  ;;  %v1086_v17 = vsel %vm773_vm3, %v965_v46, 0.0  ;;  %v967_v59 = vmul.f32 %v2183_v18, %v2183_v18 }
 0x147   :  { %v1088_v35 = vsel %vm773_vm3, %v966_v10, 0.0  ;;  %v897_v18 = vsel %vm773_vm3, %v2249_v33, 0.0 }
 0x148   :  { %v872_v26 = vadd.f32 %v871_v29, %v870_v47  ;;  %v1067_v27 = vadd.f32 %v1066_v38, %v1065_v25  ;;  %v968_v47 = vmul.f32 %v2207_v5, %v2207_v5  ;;  %v1090_v29 = vsel %vm773_vm3, %v967_v59, 0.0 }
 0x149   :  { %v899_v5 = vsel %vm773_vm3, %v2277_v7, 0.0 }
 0x14a   :  { %v874_v39 = vadd.f32 %v873_v14, %v872_v26  ;;  %v1069_v51 = vadd.f32 %v1068_v52, %v1067_v27  ;;  %v1092_v52 = vsel %vm773_vm3, %v968_v47, 0.0  ;;  %v970_v14 = vmul.f32 %v2277_v7, %v2277_v7 }
 0x14c   :  { %v876_v30 = vadd.f32 %v875_v24, %v874_v39  ;;  %v1071_v48 = vadd.f32 %v1070_v37, %v1069_v51  ;;  %v1094_v51 = vsel %vm773_vm3, %v969_v43, 0.0  ;;  %v1096_v40 = vsel %vm773_vm3, %v970_v14, 0.0 }
 0x14e   :  { %v878_v0 = vadd.f32 %v877_v32, %v876_v30  ;;  %v1073_v54 = vadd.f32 %v1072_v44, %v1071_v48 }
 0x150   :  { %v880_v53 = vadd.f32 %v879_v42, %v878_v0  ;;  %v1075_v49 = vadd.f32 %v1074_v57, %v1073_v54 }
 0x152   :  { %v1077_v62 = vadd.f32 %v1076_v58, %v1075_v49  ;;  %v882_v6 = vadd.f32 %v881_v50, %v880_v53 }
 0x154   :  { %v884_v31 = vadd.f32 %v883_v63, %v882_v6  ;;  %v1079_v4 = vadd.f32 %v1078_v23, %v1077_v62 }
 0x156   :  { %v886_v9 = vadd.f32 %v885_v41, %v884_v31  ;;  %v1081_v12 = vadd.f32 %v1080_v1, %v1079_v4 }
 0x158   :  { %v888_v28 = vadd.f32 %v887_v11, %v886_v9  ;;  %v1083_v15 = vadd.f32 %v1082_v8, %v1081_v12 }
 0x15a   :  { %v890_v22 = vadd.f32 %v889_v21, %v888_v28  ;;  %v1085_v16 = vadd.f32 %v1084_v3, %v1083_v15 }
 0x15c   :  { %v892_v2 = vadd.f32 %v891_v13, %v890_v22  ;;  %v1087_v20 = vadd.f32 %v1086_v17, %v1085_v16 }
 0x15e   :  { %v1089_v25 = vadd.f32 %v1088_v35, %v1087_v20  ;;  %v894_v38 = vadd.f32 %v893_v61, %v892_v2 }
 0x160   :  { %v1091_v26 = vadd.f32 %v1090_v29, %v1089_v25  ;;  %v896_v27 = vadd.f32 %v895_v56, %v894_v38 }
 0x162   :  { %v1093_v36 = vadd.f32 %v1092_v52, %v1091_v26  ;;  %v898_v39 = vadd.f32 %v897_v18, %v896_v27 }
 0x164   :  { %v1095_v37 = vadd.f32 %v1094_v51, %v1093_v36  ;;  %v900_v24 = vadd.f32 %v899_v5, %v898_v39 }
 0x166   :  { %v901_v30 = vrot.slane %v900_v24, 4  ;;  %v1097_v48 = vadd.f32 %v1096_v40, %v1095_v37 }
 0x168   :  { %v902_v44 = vadd.f32 %v901_v30, %v900_v24  ;;  %v1098_v32 = vrot.slane %v1097_v48, 4 }
 0x16a   :  { %v903_v55 = vrot.slane %v902_v44, 2  ;;  %v1099_v33 = vadd.f32 %v1098_v32, %v1097_v48 }
 0x16c   :  { %v904_v0 = vadd.f32 %v903_v55, %v902_v44  ;;  %v1100_v54 = vrot.slane %v1099_v33, 2 }
 0x16e   :  { %v905_v57 = vrot.slane %v904_v0, 1  ;;  %v1101_v42 = vadd.f32 %v1100_v54, %v1099_v33 }
 0x170   :  { %v1102_v45 = vrot.slane %v1101_v42, 1  ;;  %v906_v53 = vadd.f32 %v905_v57, %v904_v0 }
 0x172   :  { %v1103_v49 = vadd.f32 %v1102_v45, %v1101_v42 }
 0x174   :  { %v1105_v7 = vsel %vm1104_vm4, %v906_v53, %v1103_v49 }
 0x175   :  { %1107 = vst.msk [vmem:[%s2381_s4] sm:$0x3] %vm1106_vm5, %v1105_v7 }

// kernel: bottleneck_forward.4
= control target key start
LH: loop header
LB: loop body
LE: loop exit
PB: predicated region body
PF: predicated region fallthrough
CT: control target
= control target key end

     0   :  { %vm246_vm0 = vcmask 130048   ;;  %vm576_vm1 = vcmask 27648   ;;  %vm641_vm2 = vcmask 31744   ;;  %vm972_vm3 = vcmask 1040384   ;;  %s2106_s1 = inlined_call_operand.vmem [shape: bf16[16,4], index: 1, kind: input, shape index: {}]   ;;  %s2107_s0 = inlined_call_operand.vmem [shape: bf16[512,16], index: 0, kind: input, shape index: {}]   ;;  %s2108_s2 = inlined_call_operand.vmem [shape: bf16[512,4], index: 2, kind: output, shape index: {0}]   ;;  %s2109_s3 = inlined_call_operand.vmem [shape: f32[1,2,4], index: 3, kind: output, shape index: {1}]  }
   0x1   :  { %v1180_v0 = vld [vmem:[%s2106_s1] sm:$0xff]  ;;  %v1149_v3 = vld [vmem:[%s2107_s0 + $0x8] sm:$0xff]  ;;  %v1150_v6 = vld [vmem:[%s2107_s0 + $0x10] sm:$0xff]  ;;  %vm974_vm4 = vcmask 25600  }
   0x2   :  { %v1148_v1 = vld [vmem:[%s2107_s0] sm:$0xff]  ;;  %350 = vmatpush.bf16.msra.mxu0 %v1180_v0  ;;  %1181 = vmatpush.bf16.msra.mxu1 %v1180_v0  ;;  %v1157_v4 = vld [vmem:[%s2107_s0 + $0x48] sm:$0xff]  ;;  %v1158_v7 = vld [vmem:[%s2107_s0 + $0x50] sm:$0xff] }
   0x3   :  { %v1156_v2 = vld [vmem:[%s2107_s0 + $0x40] sm:$0xff]  ;;  %1182 = vmatpush.bf16.msra.mxu2 %v1180_v0  ;;  %1183 = vmatpush.bf16.msra.mxu3 %v1180_v0  ;;  %v1165_v8 = vld [vmem:[%s2107_s0 + $0x88] sm:$0xff]  ;;  %v1151_v9 = vld [vmem:[%s2107_s0 + $0x18] sm:$0xff] }
   0x4   :  { %v1164_v5 = vld [vmem:[%s2107_s0 + $0x80] sm:$0xff]  ;;  %v1159_v10 = vld [vmem:[%s2107_s0 + $0x58] sm:$0xff]  ;;  %v1166_v11 = vld [vmem:[%s2107_s0 + $0x90] sm:$0xff] }
   0x5   :  { %1116 = vmatmul.msk.bf16.vlgmr.msra.gmra.mxu0 %vm246_vm0, %v1148_v1  ;;  %1124 = vmatmul.msk.bf16.vlgmr.msra.gmra.mxu1 %vm246_vm0, %v1156_v2  ;;  %v1172_v12 = vld [vmem:[%s2107_s0 + $0xc0] sm:$0xff]  ;;  %v1167_v15 = vld [vmem:[%s2107_s0 + $0x98] sm:$0xff]  ;;  %v1173_v16 = vld [vmem:[%s2107_s0 + $0xc8] sm:$0xff] }
   0x6   :  { %1132 = vmatmul.msk.bf16.vlgmr.msra.gmra.mxu2 %vm246_vm0, %v1164_v5  ;;  %1140 = vmatmul.msk.bf16.vlgmr.msra.gmra.mxu3 %vm246_vm0, %v1172_v12  ;;  %v1152_v13 = vld [vmem:[%s2107_s0 + $0x20] sm:$0xff]  ;;  %v1153_v17 = vld [vmem:[%s2107_s0 + $0x28] sm:$0xff]  ;;  %v1174_v20 = vld [vmem:[%s2107_s0 + $0xd0] sm:$0xff] }
   0x7   :  { %v1160_v14 = vld [vmem:[%s2107_s0 + $0x60] sm:$0xff]  ;;  %v1161_v18 = vld [vmem:[%s2107_s0 + $0x68] sm:$0xff]  ;;  %v1154_v21 = vld [vmem:[%s2107_s0 + $0x30] sm:$0xff] }
   0x8   :  { %v1168_v19 = vld [vmem:[%s2107_s0 + $0xa0] sm:$0xff]  ;;  %v1162_v22 = vld [vmem:[%s2107_s0 + $0x70] sm:$0xff]  ;;  %v1169_v23 = vld [vmem:[%s2107_s0 + $0xa8] sm:$0xff] }
   0x9   :  { %v1175_v24 = vld [vmem:[%s2107_s0 + $0xd8] sm:$0xff]  ;;  %v1170_v27 = vld [vmem:[%s2107_s0 + $0xb0] sm:$0xff]  ;;  %v1176_v28 = vld [vmem:[%s2107_s0 + $0xe0] sm:$0xff] }
   0xa   :  { %v1155_v25 = vld [vmem:[%s2107_s0 + $0x38] sm:$0xff]  ;;  %v1177_v34 = vld [vmem:[%s2107_s0 + $0xe8] sm:$0xff]  ;;  %v1178_v55 = vld [vmem:[%s2107_s0 + $0xf0] sm:$0xff] }
   0xb   :  { %v1163_v26 = vld [vmem:[%s2107_s0 + $0x78] sm:$0xff] }
   0xc   :  { %v1171_v33 = vld [vmem:[%s2107_s0 + $0xb8] sm:$0xff] }
  0x15   :  { %1117 = vmatmul.msk.bf16.gmra.mxu0 %vm246_vm0, %v1149_v3  ;;  %1125 = vmatmul.msk.bf16.gmra.mxu1 %vm246_vm0, %v1157_v4 }
  0x16   :  { %1133 = vmatmul.msk.bf16.gmra.mxu2 %vm246_vm0, %v1165_v8  ;;  %1141 = vmatmul.msk.bf16.gmra.mxu3 %vm246_vm0, %v1173_v16 }
  0x25   :  { %1118 = vmatmul.msk.bf16.gmra.mxu0 %vm246_vm0, %v1150_v6  ;;  %1126 = vmatmul.msk.bf16.gmra.mxu1 %vm246_vm0, %v1158_v7 }
  0x26   :  { %1134 = vmatmul.msk.bf16.gmra.mxu2 %vm246_vm0, %v1166_v11  ;;  %1142 = vmatmul.msk.bf16.gmra.mxu3 %vm246_vm0, %v1174_v20 }
  0x35   :  { %1119 = vmatmul.msk.bf16.gmra.mxu0 %vm246_vm0, %v1151_v9  ;;  %1127 = vmatmul.msk.bf16.gmra.mxu1 %vm246_vm0, %v1159_v10 }
  0x36   :  { %1135 = vmatmul.msk.bf16.gmra.mxu2 %vm246_vm0, %v1167_v15  ;;  %1143 = vmatmul.msk.bf16.gmra.mxu3 %vm246_vm0, %v1175_v24 }
  0x45   :  { %1120 = vmatmul.msk.bf16.gmra.mxu0 %vm246_vm0, %v1152_v13  ;;  %1128 = vmatmul.msk.bf16.gmra.mxu1 %vm246_vm0, %v1160_v14  ;;  %v1179_v14 = vld [vmem:[%s2107_s0 + $0xf8] sm:$0xff] }
  0x46   :  { %1136 = vmatmul.msk.bf16.gmra.mxu2 %vm246_vm0, %v1168_v19  ;;  %1144 = vmatmul.msk.bf16.gmra.mxu3 %vm246_vm0, %v1176_v28 }
  0x55   :  { %1121 = vmatmul.msk.bf16.gmra.mxu0 %vm246_vm0, %v1153_v17  ;;  %1129 = vmatmul.msk.bf16.gmra.mxu1 %vm246_vm0, %v1161_v18 }
  0x56   :  { %1137 = vmatmul.msk.bf16.gmra.mxu2 %vm246_vm0, %v1169_v23  ;;  %1145 = vmatmul.msk.bf16.gmra.mxu3 %vm246_vm0, %v1177_v34 }
  0x65   :  { %1122 = vmatmul.msk.bf16.gmra.mxu0 %vm246_vm0, %v1154_v21  ;;  %1130 = vmatmul.msk.bf16.gmra.mxu1 %vm246_vm0, %v1162_v22 }
  0x66   :  { %1138 = vmatmul.msk.bf16.gmra.mxu2 %vm246_vm0, %v1170_v27  ;;  %1146 = vmatmul.msk.bf16.gmra.mxu3 %vm246_vm0, %v1178_v55 }
  0x75   :  { %1123 = vmatmul.msk.bf16.gmra.mxu0 %vm246_vm0, %v1155_v25  ;;  %1131 = vmatmul.msk.bf16.gmra.mxu1 %vm246_vm0, %v1163_v26 }
  0x76   :  { %1139 = vmatmul.msk.bf16.gmra.mxu2 %vm246_vm0, %v1171_v33  ;;  %1147 = vmatmul.msk.bf16.gmra.mxu3 %vm246_vm0, %v1179_v14 }
  0x82   :  { %v352_v29 = vpop.f32.mrf.mxu0  ;;  %v1319_v30 = vpop.f32.mrf.mxu1 }
  0x83   :  { %v512_v31 = vpack.c.bf16 %v352_v29, %v352_v29  ;;  %v528_v32 = vpack.c.bf16 %v1319_v30, %v1319_v30  ;;  %v775_v35 = vmul.f32 %v352_v29, %v352_v29  ;;  %v642_v36 = vsel %vm641_vm2, %v352_v29, 0.0 }
  0x85   :  { %577 = vst.msk [vmem:[%s2108_s2] sm:$0xf] %vm576_vm1, %v512_v31  ;;  %v839_v44 = vsel %vm641_vm2, %v775_v35, 0.0 }
  0x86   :  { %593 = vst.msk [vmem:[%s2108_s2 + $0x40] sm:$0xf] %vm576_vm1, %v528_v32 }
  0x89   :  { %v1378_v63 = vpop.f32.mrf.mxu2  ;;  %v1483_v34 = vpop.f32.mrf.mxu3 }
  0x8a   :  { %v354_v37 = vpop.f32.mrf.mxu0  ;;  %v1340_v38 = vpop.f32.mrf.mxu1  ;;  %v544_v3 = vpack.c.bf16 %v1378_v63, %v1378_v63 }
  0x8b   :  { %v513_v39 = vpack.c.bf16 %v354_v37, %v354_v37  ;;  %v643_v40 = vsel %vm641_vm2, %v354_v37, 0.0  ;;  %v776_v41 = vmul.f32 %v354_v37, %v354_v37  ;;  %v529_v42 = vpack.c.bf16 %v1340_v38, %v1340_v38 }
  0x8c   :  { %v644_v43 = vadd.f32 %v643_v40, %v642_v36  ;;  %609 = vst.msk [vmem:[%s2108_s2 + $0x80] sm:$0xf] %vm576_vm1, %v544_v3  ;;  %v560_v36 = vpack.c.bf16 %v1483_v34, %v1483_v34 }
  0x8d   :  { %578 = vst.msk [vmem:[%s2108_s2 + $0x4] sm:$0xf] %vm576_vm1, %v513_v39  ;;  %v840_v45 = vsel %vm641_vm2, %v776_v41, 0.0 }
  0x8e   :  { %v841_v46 = vadd.f32 %v840_v45, %v839_v44  ;;  %594 = vst.msk [vmem:[%s2108_s2 + $0x44] sm:$0xf] %vm576_vm1, %v529_v42 }
  0x8f   :  { %625 = vst.msk [vmem:[%s2108_s2 + $0xc0] sm:$0xf] %vm576_vm1, %v560_v36 }
  0x91   :  { %v1400_v10 = vpop.f32.mrf.mxu2 }
  0x92   :  { %v357_v47 = vpop.f32.mrf.mxu0  ;;  %v1355_v48 = vpop.f32.mrf.mxu1  ;;  %v545_v12 = vpack.c.bf16 %v1400_v10, %v1400_v10 }
  0x93   :  { %v514_v49 = vpack.c.bf16 %v357_v47, %v357_v47  ;;  %v645_v50 = vsel %vm641_vm2, %v357_v47, 0.0  ;;  %v777_v51 = vmul.f32 %v357_v47, %v357_v47  ;;  %v530_v52 = vpack.c.bf16 %v1355_v48, %v1355_v48 }
  0x94   :  { %v646_v53 = vadd.f32 %v645_v50, %v644_v43  ;;  %610 = vst.msk [vmem:[%s2108_s2 + $0x84] sm:$0xf] %vm576_vm1, %v545_v12  ;;  %v1515_v43 = vpop.f32.mrf.mxu3 }
  0x95   :  { %579 = vst.msk [vmem:[%s2108_s2 + $0x8] sm:$0xf] %vm576_vm1, %v514_v49  ;;  %v842_v54 = vsel %vm641_vm2, %v777_v51, 0.0  ;;  %v561_v45 = vpack.c.bf16 %v1515_v43, %v1515_v43 }
  0x96   :  { %v843_v56 = vadd.f32 %v842_v54, %v841_v46  ;;  %595 = vst.msk [vmem:[%s2108_s2 + $0x48] sm:$0xf] %vm576_vm1, %v530_v52 }
  0x97   :  { %626 = vst.msk [vmem:[%s2108_s2 + $0xc4] sm:$0xf] %vm576_vm1, %v561_v45 }
  0x99   :  { %v1433_v20 = vpop.f32.mrf.mxu2 }
  0x9a   :  { %v359_v57 = vpop.f32.mrf.mxu0  ;;  %v1373_v58 = vpop.f32.mrf.mxu1  ;;  %v546_v21 = vpack.c.bf16 %v1433_v20, %v1433_v20 }
  0x9b   :  { %v515_v59 = vpack.c.bf16 %v359_v57, %v359_v57  ;;  %v647_v60 = vsel %vm641_vm2, %v359_v57, 0.0  ;;  %v778_v61 = vmul.f32 %v359_v57, %v359_v57  ;;  %v531_v62 = vpack.c.bf16 %v1373_v58, %v1373_v58 }
  0x9c   :  { %v648_v0 = vadd.f32 %v647_v60, %v646_v53  ;;  %611 = vst.msk [vmem:[%s2108_s2 + $0x88] sm:$0xf] %vm576_vm1, %v546_v21  ;;  %v1547_v52 = vpop.f32.mrf.mxu3 }
  0x9d   :  { %580 = vst.msk [vmem:[%s2108_s2 + $0xc] sm:$0xf] %vm576_vm1, %v515_v59  ;;  %v844_v1 = vsel %vm641_vm2, %v778_v61, 0.0  ;;  %v562_v54 = vpack.c.bf16 %v1547_v52, %v1547_v52 }
  0x9e   :  { %v845_v2 = vadd.f32 %v844_v1, %v843_v56  ;;  %596 = vst.msk [vmem:[%s2108_s2 + $0x4c] sm:$0xf] %vm576_vm1, %v531_v62 }
  0x9f   :  { %627 = vst.msk [vmem:[%s2108_s2 + $0xc8] sm:$0xf] %vm576_vm1, %v562_v54 }
  0xa1   :  { %v1457_v26 = vpop.f32.mrf.mxu2 }
  0xa2   :  { %v362_v4 = vpop.f32.mrf.mxu0  ;;  %v1395_v5 = vpop.f32.mrf.mxu1  ;;  %v547_v27 = vpack.c.bf16 %v1457_v26, %v1457_v26 }
  0xa3   :  { %v516_v6 = vpack.c.bf16 %v362_v4, %v362_v4  ;;  %v649_v7 = vsel %vm641_vm2, %v362_v4, 0.0  ;;  %v779_v8 = vmul.f32 %v362_v4, %v362_v4  ;;  %v532_v9 = vpack.c.bf16 %v1395_v5, %v1395_v5 }
  0xa4   :  { %v1402_v11 = vadd.f32 %v649_v7, %v648_v0  ;;  %612 = vst.msk [vmem:[%s2108_s2 + $0x8c] sm:$0xf] %vm576_vm1, %v547_v27  ;;  %v1579_v61 = vpop.f32.mrf.mxu3 }
  0xa5   :  { %581 = vst.msk [vmem:[%s2108_s2 + $0x10] sm:$0xf] %vm576_vm1, %v516_v6  ;;  %v846_v13 = vsel %vm641_vm2, %v779_v8, 0.0  ;;  %v563_v0 = vpack.c.bf16 %v1579_v61, %v1579_v61 }
  0xa6   :  { %v1414_v15 = vadd.f32 %v846_v13, %v845_v2  ;;  %597 = vst.msk [vmem:[%s2108_s2 + $0x50] sm:$0xf] %vm576_vm1, %v532_v9 }
  0xa7   :  { %628 = vst.msk [vmem:[%s2108_s2 + $0xcc] sm:$0xf] %vm576_vm1, %v563_v0 }
  0xa9   :  { %v1481_v33 = vpop.f32.mrf.mxu2 }
  0xaa   :  { %v1425_v16 = vpop.f32.mrf.mxu0  ;;  %v1427_v17 = vpop.f32.mrf.mxu1  ;;  %v548_v35 = vpack.c.bf16 %v1481_v33, %v1481_v33 }
  0xab   :  { %v517_v18 = vpack.c.bf16 %v1425_v16, %v1425_v16  ;;  %v533_v19 = vpack.c.bf16 %v1427_v17, %v1427_v17  ;;  %v780_v12 = vmul.f32 %v1425_v16, %v1425_v16 }
  0xac   :  { %613 = vst.msk [vmem:[%s2108_s2 + $0x90] sm:$0xf] %vm576_vm1, %v548_v35  ;;  %v1607_v7 = vpop.f32.mrf.mxu3 }
  0xad   :  { %582 = vst.msk [vmem:[%s2108_s2 + $0x14] sm:$0xf] %vm576_vm1, %v517_v18  ;;  %v564_v27 = vpack.c.bf16 %v1607_v7, %v1607_v7 }
  0xae   :  { %598 = vst.msk [vmem:[%s2108_s2 + $0x54] sm:$0xf] %vm576_vm1, %v533_v19 }
  0xaf   :  { %629 = vst.msk [vmem:[%s2108_s2 + $0xd0] sm:$0xf] %vm576_vm1, %v564_v27 }
  0xb1   :  { %v1513_v42 = vpop.f32.mrf.mxu2 }
  0xb2   :  { %v1449_v22 = vpop.f32.mrf.mxu0  ;;  %v1451_v23 = vpop.f32.mrf.mxu1  ;;  %v549_v44 = vpack.c.bf16 %v1513_v42, %v1513_v42 }
  0xb3   :  { %v518_v24 = vpack.c.bf16 %v1449_v22, %v1449_v22  ;;  %v534_v25 = vpack.c.bf16 %v1451_v23, %v1451_v23 }
  0xb4   :  { %614 = vst.msk [vmem:[%s2108_s2 + $0x94] sm:$0xf] %vm576_vm1, %v549_v44  ;;  %v1625_v19 = vpop.f32.mrf.mxu3 }
  0xb5   :  { %583 = vst.msk [vmem:[%s2108_s2 + $0x18] sm:$0xf] %vm576_vm1, %v518_v24  ;;  %v651_v24 = vsel %vm641_vm2, %v1425_v16, 0.0  ;;  %v848_v16 = vsel %vm641_vm2, %v780_v12, 0.0 }
  0xb6   :  { %599 = vst.msk [vmem:[%s2108_s2 + $0x58] sm:$0xf] %vm576_vm1, %v534_v25  ;;  %v781_v25 = vmul.f32 %v1449_v22, %v1449_v22  ;;  %v652_v36 = vadd.f32 %v651_v24, %v1402_v11  ;;  %v849_v11 = vadd.f32 %v848_v16, %v1414_v15 }
  0xb9   :  { %v1545_v51 = vpop.f32.mrf.mxu2 }
  0xba   :  { %v1473_v28 = vpop.f32.mrf.mxu0  ;;  %v1475_v29 = vpop.f32.mrf.mxu1  ;;  %v550_v53 = vpack.c.bf16 %v1545_v51, %v1545_v51 }
  0xbb   :  { %v519_v31 = vpack.c.bf16 %v1473_v28, %v1473_v28  ;;  %v535_v32 = vpack.c.bf16 %v1475_v29, %v1475_v29 }
  0xbc   :  { %615 = vst.msk [vmem:[%s2108_s2 + $0x98] sm:$0xf] %vm576_vm1, %v550_v53 }
  0xbd   :  { %584 = vst.msk [vmem:[%s2108_s2 + $0x1c] sm:$0xf] %vm576_vm1, %v519_v31  ;;  %v782_v31 = vmul.f32 %v1473_v28, %v1473_v28 }
  0xbe   :  { %600 = vst.msk [vmem:[%s2108_s2 + $0x5c] sm:$0xf] %vm576_vm1, %v535_v32  ;;  %v653_v32 = vsel %vm641_vm2, %v1449_v22, 0.0  ;;  %v850_v22 = vsel %vm641_vm2, %v781_v25, 0.0 }
  0xbf   :  { %v654_v45 = vadd.f32 %v653_v32, %v652_v36  ;;  %v851_v0 = vadd.f32 %v850_v22, %v849_v11 }
  0xc1   :  { %v1577_v60 = vpop.f32.mrf.mxu2 }
  0xc2   :  { %v1505_v37 = vpop.f32.mrf.mxu0  ;;  %v1507_v39 = vpop.f32.mrf.mxu1  ;;  %v551_v62 = vpack.c.bf16 %v1577_v60, %v1577_v60 }
  0xc3   :  { %v520_v40 = vpack.c.bf16 %v1505_v37, %v1505_v37  ;;  %v536_v41 = vpack.c.bf16 %v1507_v39, %v1507_v39  ;;  %v783_v44 = vmul.f32 %v1505_v37, %v1505_v37 }
  0xc4   :  { %616 = vst.msk [vmem:[%s2108_s2 + $0x9c] sm:$0xf] %vm576_vm1, %v551_v62  ;;  %v1686_v62 = vpop.f32.mrf.mxu3 }
  0xc5   :  { %585 = vst.msk [vmem:[%s2108_s2 + $0x20] sm:$0xf] %vm576_vm1, %v520_v40  ;;  %v565_v40 = vpack.c.bf16 %v1625_v19, %v1625_v19 }
  0xc6   :  { %601 = vst.msk [vmem:[%s2108_s2 + $0x60] sm:$0xf] %vm576_vm1, %v536_v41  ;;  %v655_v41 = vsel %vm641_vm2, %v1473_v28, 0.0  ;;  %v657_v28 = vsel %vm641_vm2, %v1505_v37, 0.0 }
  0xc7   :  { %630 = vst.msk [vmem:[%s2108_s2 + $0xd4] sm:$0xf] %vm576_vm1, %v565_v40 }
  0xc9   :  { %v1605_v6 = vpop.f32.mrf.mxu2 }
  0xca   :  { %v1537_v46 = vpop.f32.mrf.mxu0  ;;  %v1539_v47 = vpop.f32.mrf.mxu1  ;;  %v552_v21 = vpack.c.bf16 %v1605_v6, %v1605_v6 }
  0xcb   :  { %v521_v49 = vpack.c.bf16 %v1537_v46, %v1537_v46  ;;  %v537_v50 = vpack.c.bf16 %v1539_v47, %v1539_v47  ;;  %v784_v54 = vmul.f32 %v1537_v46, %v1537_v46  ;;  %v659_v12 = vsel %vm641_vm2, %v1537_v46, 0.0 }
  0xcc   :  { %617 = vst.msk [vmem:[%s2108_s2 + $0xa0] sm:$0xf] %vm576_vm1, %v552_v21 }
  0xcd   :  { %586 = vst.msk [vmem:[%s2108_s2 + $0x24] sm:$0xf] %vm576_vm1, %v521_v49  ;;  %v852_v49 = vsel %vm641_vm2, %v782_v31, 0.0  ;;  %v856_v24 = vsel %vm641_vm2, %v784_v54, 0.0 }
  0xce   :  { %602 = vst.msk [vmem:[%s2108_s2 + $0x64] sm:$0xf] %vm576_vm1, %v537_v50 }
  0xd1   :  { %v1623_v18 = vpop.f32.mrf.mxu2 }
  0xd2   :  { %v1569_v55 = vpop.f32.mrf.mxu0  ;;  %v1571_v56 = vpop.f32.mrf.mxu1  ;;  %v553_v35 = vpack.c.bf16 %v1623_v18, %v1623_v18 }
  0xd3   :  { %v522_v57 = vpack.c.bf16 %v1569_v55, %v1569_v55  ;;  %v538_v59 = vpack.c.bf16 %v1571_v56, %v1571_v56  ;;  %v785_v37 = vmul.f32 %v1569_v55, %v1569_v55  ;;  %v661_v46 = vsel %vm641_vm2, %v1569_v55, 0.0 }
  0xd4   :  { %618 = vst.msk [vmem:[%s2108_s2 + $0xa4] sm:$0xf] %vm576_vm1, %v553_v35 }
  0xd5   :  { %587 = vst.msk [vmem:[%s2108_s2 + $0x28] sm:$0xf] %vm576_vm1, %v522_v57  ;;  %v858_v31 = vsel %vm641_vm2, %v785_v37, 0.0 }
  0xd6   :  { %603 = vst.msk [vmem:[%s2108_s2 + $0x68] sm:$0xf] %vm576_vm1, %v538_v59 }
  0xd9   :  { %v1684_v59 = vpop.f32.mrf.mxu2 }
  0xda   :  { %v379_v1 = vpop.f32.mrf.mxu0  ;;  %v1601_v2 = vpop.f32.mrf.mxu1 }
  0xdb   :  { %v523_v3 = vpack.c.bf16 %v379_v1, %v379_v1  ;;  %v539_v4 = vpack.c.bf16 %v1601_v2, %v1601_v2  ;;  %v786_v21 = vmul.f32 %v379_v1, %v379_v1  ;;  %v663_v16 = vsel %vm641_vm2, %v379_v1, 0.0 }
  0xdd   :  { %588 = vst.msk [vmem:[%s2108_s2 + $0x2c] sm:$0xf] %vm576_vm1, %v523_v3  ;;  %v656_v3 = vadd.f32 %v655_v41, %v654_v45  ;;  %v860_v40 = vsel %vm641_vm2, %v786_v21, 0.0 }
  0xde   :  { %604 = vst.msk [vmem:[%s2108_s2 + $0x6c] sm:$0xf] %vm576_vm1, %v539_v4  ;;  %v854_v4 = vsel %vm641_vm2, %v783_v44, 0.0 }
  0xe2   :  { %v382_v8 = vpop.f32.mrf.mxu0  ;;  %v1617_v9 = vpop.f32.mrf.mxu1 }
  0xe3   :  { %v524_v13 = vpack.c.bf16 %v382_v8, %v382_v8  ;;  %v540_v14 = vpack.c.bf16 %v1617_v9, %v1617_v9  ;;  %v787_v32 = vmul.f32 %v382_v8, %v382_v8  ;;  %v665_v44 = vsel %vm641_vm2, %v382_v8, 0.0 }
  0xe5   :  { %589 = vst.msk [vmem:[%s2108_s2 + $0x30] sm:$0xf] %vm576_vm1, %v524_v13  ;;  %v853_v13 = vadd.f32 %v852_v49, %v851_v0  ;;  %v1712_v49 = vpop.f32.mrf.mxu2 }
  0xe6   :  { %605 = vst.msk [vmem:[%s2108_s2 + $0x70] sm:$0xf] %vm576_vm1, %v540_v14  ;;  %v658_v14 = vadd.f32 %v657_v28, %v656_v3  ;;  %v1714_v28 = vpop.f32.mrf.mxu3  ;;  %v566_v3 = vpack.c.bf16 %v1686_v62, %v1686_v62 }
  0xe7   :  { %v855_v25 = vadd.f32 %v854_v4, %v853_v13  ;;  %v555_v13 = vpack.c.bf16 %v1712_v49, %v1712_v49 }
  0xe8   :  { %v660_v27 = vadd.f32 %v659_v12, %v658_v14  ;;  %631 = vst.msk [vmem:[%s2108_s2 + $0xd8] sm:$0xf] %vm576_vm1, %v566_v3  ;;  %v675_v3 = vsel %vm641_vm2, %v1340_v38, 0.0 }
  0xe9   :  { %v857_v35 = vadd.f32 %v856_v24, %v855_v25  ;;  %v567_v24 = vpack.c.bf16 %v1714_v28, %v1714_v28  ;;  %620 = vst.msk [vmem:[%s2108_s2 + $0xac] sm:$0xf] %vm576_vm1, %v555_v13  ;;  %v791_v25 = vmul.f32 %v1319_v30, %v1319_v30  ;;  %v794_v13 = vmul.f32 %v1373_v58, %v1373_v58 }
  0xea   :  { %v384_v50 = vpop.f32.mrf.mxu0  ;;  %v1672_v53 = vpop.f32.mrf.mxu1  ;;  %v662_v36 = vadd.f32 %v661_v46, %v660_v27 }
  0xeb   :  { %v525_v57 = vpack.c.bf16 %v384_v50, %v384_v50  ;;  %v541_v15 = vpack.c.bf16 %v1672_v53, %v1672_v53  ;;  %v788_v11 = vmul.f32 %v384_v50, %v384_v50  ;;  %v859_v1 = vadd.f32 %v858_v31, %v857_v35  ;;  %632 = vst.msk [vmem:[%s2108_s2 + $0xdc] sm:$0xf] %vm576_vm1, %v567_v24 }
  0xec   :  { %v664_v54 = vadd.f32 %v663_v16, %v662_v36  ;;  %v667_v0 = vsel %vm641_vm2, %v384_v50, 0.0 }
  0xed   :  { %590 = vst.msk [vmem:[%s2108_s2 + $0x34] sm:$0xf] %vm576_vm1, %v525_v57  ;;  %v554_v57 = vpack.c.bf16 %v1684_v59, %v1684_v59  ;;  %v861_v4 = vadd.f32 %v860_v40, %v859_v1  ;;  %v864_v37 = vsel %vm641_vm2, %v788_v11, 0.0  ;;  %v673_v1 = vsel %vm641_vm2, %v1319_v30, 0.0 }
  0xee   :  { %606 = vst.msk [vmem:[%s2108_s2 + $0x74] sm:$0xf] %vm576_vm1, %v541_v15  ;;  %v862_v15 = vsel %vm641_vm2, %v787_v32, 0.0  ;;  %v666_v12 = vadd.f32 %v665_v44, %v664_v54  ;;  %v1760_v44 = vpop.f32.mrf.mxu2  ;;  %v1762_v11 = vpop.f32.mrf.mxu3  ;;  %v792_v54 = vmul.f32 %v1340_v38, %v1340_v38  ;;  %v870_v30 = vsel %vm641_vm2, %v791_v25, 0.0 }
  0xef   :  { %619 = vst.msk [vmem:[%s2108_s2 + $0xa8] sm:$0xf] %vm576_vm1, %v554_v57  ;;  %v863_v14 = vadd.f32 %v862_v15, %v861_v4  ;;  %v793_v15 = vmul.f32 %v1355_v48, %v1355_v48  ;;  %v795_v38 = vmul.f32 %v1395_v5, %v1395_v5  ;;  %v556_v25 = vpack.c.bf16 %v1760_v44, %v1760_v44 }
  0xf0   :  { %v668_v21 = vadd.f32 %v667_v0, %v666_v12 }
  0xf1   :  { %v865_v27 = vadd.f32 %v864_v37, %v863_v14  ;;  %v872_v37 = vsel %vm641_vm2, %v792_v54, 0.0  ;;  %v874_v14 = vsel %vm641_vm2, %v793_v15, 0.0  ;;  %621 = vst.msk [vmem:[%s2108_s2 + $0xb0] sm:$0xf] %vm576_vm1, %v556_v25  ;;  %v683_v54 = vsel %vm641_vm2, %v1427_v17, 0.0 }
  0xf2   :  { %v387_v22 = vpop.f32.mrf.mxu0  ;;  %v1707_v41 = vpop.f32.mrf.mxu1 }
  0xf3   :  { %v526_v45 = vpack.c.bf16 %v387_v22, %v387_v22  ;;  %v542_v55 = vpack.c.bf16 %v1707_v41, %v1707_v41  ;;  %v789_v8 = vmul.f32 %v387_v22, %v387_v22  ;;  %v669_v50 = vsel %vm641_vm2, %v387_v22, 0.0 }
  0xf4   :  { %v670_v31 = vadd.f32 %v669_v50, %v668_v21  ;;  %v677_v50 = vsel %vm641_vm2, %v1355_v48, 0.0 }
  0xf5   :  { %591 = vst.msk [vmem:[%s2108_s2 + $0x38] sm:$0xf] %vm576_vm1, %v526_v45  ;;  %v866_v46 = vsel %vm641_vm2, %v789_v8, 0.0 }
  0xf6   :  { %607 = vst.msk [vmem:[%s2108_s2 + $0x78] sm:$0xf] %vm576_vm1, %v542_v55  ;;  %v867_v45 = vadd.f32 %v866_v46, %v865_v27  ;;  %v679_v46 = vsel %vm641_vm2, %v1373_v58, 0.0  ;;  %v568_v27 = vpack.c.bf16 %v1762_v11, %v1762_v11  ;;  %v1796_v48 = vpop.f32.mrf.mxu2  ;;  %v681_v58 = vsel %vm641_vm2, %v1395_v5, 0.0 }
  0xf8   :  { %633 = vst.msk [vmem:[%s2108_s2 + $0xe0] sm:$0xf] %vm576_vm1, %v568_v27 }
  0xfa   :  { %v389_v16 = vpop.f32.mrf.mxu0  ;;  %v1751_v32 = vpop.f32.mrf.mxu1 }
  0xfb   :  { %v527_v35 = vpack.c.bf16 %v389_v16, %v389_v16  ;;  %v671_v36 = vsel %vm641_vm2, %v389_v16, 0.0  ;;  %v790_v40 = vmul.f32 %v389_v16, %v389_v16  ;;  %v543_v22 = vpack.c.bf16 %v1751_v32, %v1751_v32 }
  0xfc   :  { %v672_v55 = vadd.f32 %v671_v36, %v670_v31  ;;  %v1798_v31 = vpop.f32.mrf.mxu3  ;;  %v876_v36 = vsel %vm641_vm2, %v794_v13, 0.0 }
  0xfd   :  { %592 = vst.msk [vmem:[%s2108_s2 + $0x3c] sm:$0xf] %vm576_vm1, %v527_v35  ;;  %v868_v57 = vsel %vm641_vm2, %v790_v40, 0.0  ;;  %v796_v40 = vmul.f32 %v1427_v17, %v1427_v17  ;;  %v569_v5 = vpack.c.bf16 %v1798_v31, %v1798_v31  ;;  %v685_v17 = vsel %vm641_vm2, %v1451_v23, 0.0 }
  0xfe   :  { %v674_v0 = vadd.f32 %v673_v1, %v672_v55  ;;  %v869_v8 = vadd.f32 %v868_v57, %v867_v45  ;;  %608 = vst.msk [vmem:[%s2108_s2 + $0x7c] sm:$0xf] %vm576_vm1, %v543_v22  ;;  %v557_v22 = vpack.c.bf16 %v1796_v48, %v1796_v48  ;;  %v878_v1 = vsel %vm641_vm2, %v795_v38, 0.0  ;;  %v1840_v13 = vpop.f32.mrf.mxu2 }
  0xff   :  { %v797_v57 = vmul.f32 %v1451_v23, %v1451_v23  ;;  %634 = vst.msk [vmem:[%s2108_s2 + $0xe4] sm:$0xf] %vm576_vm1, %v569_v5  ;;  %v800_v38 = vmul.f32 %v1539_v47, %v1539_v47 }
 0x100   :  { %v676_v4 = vadd.f32 %v675_v3, %v674_v0  ;;  %v871_v12 = vadd.f32 %v870_v30, %v869_v8  ;;  %622 = vst.msk [vmem:[%s2108_s2 + $0xb4] sm:$0xf] %vm576_vm1, %v557_v22  ;;  %v880_v8 = vsel %vm641_vm2, %v796_v40, 0.0  ;;  %v798_v30 = vmul.f32 %v1475_v29, %v1475_v29 }
 0x101   :  { %v888_v40 = vsel %vm641_vm2, %v800_v38, 0.0  ;;  %v802_v22 = vmul.f32 %v1601_v2, %v1601_v2  ;;  %v806_v38 = vmul.f32 %v1751_v32, %v1751_v32 }
 0x102   :  { %v678_v21 = vadd.f32 %v677_v50, %v676_v4  ;;  %v873_v24 = vadd.f32 %v872_v37, %v871_v12  ;;  %v882_v12 = vsel %vm641_vm2, %v797_v57, 0.0  ;;  %v687_v37 = vsel %vm641_vm2, %v1475_v29, 0.0 }
 0x103   :  { %v799_v50 = vmul.f32 %v1507_v39, %v1507_v39  ;;  %v884_v23 = vsel %vm641_vm2, %v798_v30, 0.0  ;;  %v801_v29 = vmul.f32 %v1571_v56, %v1571_v56  ;;  %v804_v30 = vmul.f32 %v1672_v53, %v1672_v53 }
 0x104   :  { %v680_v16 = vadd.f32 %v679_v46, %v678_v21  ;;  %v875_v35 = vadd.f32 %v874_v14, %v873_v24  ;;  %v1842_v14 = vpop.f32.mrf.mxu3  ;;  %v689_v46 = vsel %vm641_vm2, %v1507_v39, 0.0  ;;  %v693_v39 = vsel %vm641_vm2, %v1571_v56, 0.0 }
 0x105   :  { %v570_v57 = vpack.c.bf16 %v1842_v14, %v1842_v14 }
 0x106   :  { %v682_v45 = vadd.f32 %v681_v58, %v680_v16  ;;  %v877_v55 = vadd.f32 %v876_v36, %v875_v35  ;;  %v886_v16 = vsel %vm641_vm2, %v799_v50, 0.0  ;;  %v691_v35 = vsel %vm641_vm2, %v1539_v47, 0.0  ;;  %v1868_v56 = vpop.f32.mrf.mxu2 }
 0x107   :  { %v803_v47 = vmul.f32 %v1617_v9, %v1617_v9  ;;  %635 = vst.msk [vmem:[%s2108_s2 + $0xe8] sm:$0xf] %vm576_vm1, %v570_v57  ;;  %v699_v50 = vsel %vm641_vm2, %v1672_v53, 0.0  ;;  %v701_v53 = vsel %vm641_vm2, %v1707_v41, 0.0 }
 0x108   :  { %v684_v15 = vadd.f32 %v683_v54, %v682_v45  ;;  %v879_v0 = vadd.f32 %v878_v1, %v877_v55  ;;  %v890_v45 = vsel %vm641_vm2, %v801_v29, 0.0  ;;  %v695_v1 = vsel %vm641_vm2, %v1601_v2, 0.0 }
 0x109   :  { %v558_v54 = vpack.c.bf16 %v1840_v13, %v1840_v13  ;;  %v697_v2 = vsel %vm641_vm2, %v1617_v9, 0.0 }
 0x10a   :  { %v881_v3 = vadd.f32 %v880_v8, %v879_v0  ;;  %v686_v4 = vadd.f32 %v685_v17, %v684_v15  ;;  %v892_v17 = vsel %vm641_vm2, %v802_v22, 0.0  ;;  %v900_v22 = vsel %vm641_vm2, %v806_v38, 0.0 }
 0x10b   :  { %623 = vst.msk [vmem:[%s2108_s2 + $0xb8] sm:$0xf] %vm576_vm1, %v558_v54 }
 0x10c   :  { %v688_v21 = vadd.f32 %v687_v37, %v686_v4  ;;  %v883_v24 = vadd.f32 %v882_v12, %v881_v3  ;;  %v1870_v15 = vpop.f32.mrf.mxu3  ;;  %v559_v3 = vpack.c.bf16 %v1868_v56, %v1868_v56  ;;  %v894_v37 = vsel %vm641_vm2, %v803_v47, 0.0 }
 0x10d   :  { %v571_v9 = vpack.c.bf16 %v1870_v15, %v1870_v15 }
 0x10e   :  { %v690_v25 = vadd.f32 %v689_v46, %v688_v21  ;;  %v885_v27 = vadd.f32 %v884_v23, %v883_v24  ;;  %v805_v21 = vmul.f32 %v1707_v41, %v1707_v41  ;;  %624 = vst.msk [vmem:[%s2108_s2 + $0xbc] sm:$0xf] %vm576_vm1, %v559_v3  ;;  %v896_v46 = vsel %vm641_vm2, %v804_v30, 0.0 }
 0x10f   :  { %636 = vst.msk [vmem:[%s2108_s2 + $0xec] sm:$0xf] %vm576_vm1, %v571_v9  ;;  %v705_v41 = vsel %vm641_vm2, %v1378_v63, 0.0  ;;  %v811_v30 = vmul.f32 %v1481_v33, %v1481_v33 }
 0x110   :  { %v692_v36 = vadd.f32 %v691_v35, %v690_v25  ;;  %v887_v58 = vadd.f32 %v886_v16, %v885_v27  ;;  %v807_v27 = vmul.f32 %v1378_v63, %v1378_v63  ;;  %v898_v16 = vsel %vm641_vm2, %v805_v21, 0.0 }
 0x111   :  { %v703_v35 = vsel %vm641_vm2, %v1751_v32, 0.0  ;;  %v809_v32 = vmul.f32 %v1433_v20, %v1433_v20  ;;  %v709_v63 = vsel %vm641_vm2, %v1433_v20, 0.0 }
 0x112   :  { %v694_v55 = vadd.f32 %v693_v39, %v692_v36  ;;  %v889_v5 = vadd.f32 %v888_v40, %v887_v58  ;;  %v808_v39 = vmul.f32 %v1400_v10, %v1400_v10 }
 0x114   :  { %v696_v0 = vadd.f32 %v695_v1, %v694_v55  ;;  %v891_v8 = vadd.f32 %v890_v45, %v889_v5  ;;  %v1912_v36 = vpop.f32.mrf.mxu3  ;;  %v902_v5 = vsel %vm641_vm2, %v807_v27, 0.0  ;;  %v707_v1 = vsel %vm641_vm2, %v1400_v10, 0.0 }
 0x115   :  { %v904_v57 = vsel %vm641_vm2, %v808_v39, 0.0  ;;  %v711_v10 = vsel %vm641_vm2, %v1457_v26, 0.0  ;;  %v572_v3 = vpack.c.bf16 %v1912_v36, %v1912_v36  ;;  %v814_v27 = vmul.f32 %v1577_v60, %v1577_v60 }
 0x116   :  { %v698_v4 = vadd.f32 %v697_v2, %v696_v0  ;;  %v893_v12 = vadd.f32 %v892_v17, %v891_v8  ;;  %v810_v0 = vmul.f32 %v1457_v26, %v1457_v26  ;;  %v906_v2 = vsel %vm641_vm2, %v809_v32, 0.0 }
 0x117   :  { %v812_v26 = vmul.f32 %v1513_v42, %v1513_v42  ;;  %637 = vst.msk [vmem:[%s2108_s2 + $0xf0] sm:$0xf] %vm576_vm1, %v572_v3 }
 0x118   :  { %v895_v24 = vadd.f32 %v894_v37, %v893_v12  ;;  %v700_v23 = vadd.f32 %v699_v50, %v698_v4  ;;  %v908_v37 = vsel %vm641_vm2, %v810_v0, 0.0  ;;  %v713_v50 = vsel %vm641_vm2, %v1481_v33, 0.0 }
 0x119   :  { %v715_v33 = vsel %vm641_vm2, %v1513_v42, 0.0  ;;  %v719_v42 = vsel %vm641_vm2, %v1577_v60, 0.0  ;;  %v723_v60 = vsel %vm641_vm2, %v1623_v18, 0.0  ;;  %v818_v0 = vmul.f32 %v1712_v49, %v1712_v49 }
 0x11a   :  { %v897_v29 = vadd.f32 %v896_v46, %v895_v24  ;;  %v702_v25 = vadd.f32 %v701_v53, %v700_v23  ;;  %v910_v23 = vsel %vm641_vm2, %v811_v30, 0.0  ;;  %v813_v46 = vmul.f32 %v1545_v51, %v1545_v51 }
 0x11c   :  { %v899_v58 = vadd.f32 %v898_v16, %v897_v29  ;;  %v704_v40 = vadd.f32 %v703_v35, %v702_v25  ;;  %v1936_v4 = vpop.f32.mrf.mxu3  ;;  %v912_v29 = vsel %vm641_vm2, %v812_v26, 0.0  ;;  %v717_v25 = vsel %vm641_vm2, %v1545_v51, 0.0 }
 0x11d   :  { %v573_v9 = vpack.c.bf16 %v1936_v4, %v1936_v4  ;;  %v721_v51 = vsel %vm641_vm2, %v1605_v6, 0.0 }
 0x11e   :  { %v706_v45 = vadd.f32 %v705_v41, %v704_v40  ;;  %v901_v55 = vadd.f32 %v900_v22, %v899_v58  ;;  %v914_v58 = vsel %vm641_vm2, %v813_v46, 0.0  ;;  %v815_v40 = vmul.f32 %v1605_v6, %v1605_v6 }
 0x11f   :  { %638 = vst.msk [vmem:[%s2108_s2 + $0xf4] sm:$0xf] %vm576_vm1, %v573_v9  ;;  %v725_v6 = vsel %vm641_vm2, %v1684_v59, 0.0  ;;  %v924_v9 = vsel %vm641_vm2, %v818_v0, 0.0 }
 0x120   :  { %v708_v47 = vadd.f32 %v707_v1, %v706_v45  ;;  %v903_v54 = vadd.f32 %v902_v5, %v901_v55  ;;  %v916_v45 = vsel %vm641_vm2, %v814_v27, 0.0  ;;  %v816_v55 = vmul.f32 %v1623_v18, %v1623_v18 }
 0x121   :  { %v918_v32 = vsel %vm641_vm2, %v815_v40, 0.0  ;;  %v727_v18 = vsel %vm641_vm2, %v1712_v49, 0.0  ;;  %v820_v49 = vmul.f32 %v1796_v48, %v1796_v48  ;;  %v823_v27 = vmul.f32 %v1483_v34, %v1483_v34 }
 0x122   :  { %v710_v8 = vadd.f32 %v709_v63, %v708_v47  ;;  %v905_v17 = vadd.f32 %v904_v57, %v903_v54  ;;  %v817_v47 = vmul.f32 %v1684_v59, %v1684_v59  ;;  %v920_v63 = vsel %vm641_vm2, %v816_v55, 0.0 }
 0x123   :  { %v928_v46 = vsel %vm641_vm2, %v820_v49, 0.0 }
 0x124   :  { %v712_v12 = vadd.f32 %v711_v10, %v710_v8  ;;  %v907_v20 = vadd.f32 %v906_v2, %v905_v17  ;;  %v1968_v41 = vpop.f32.mrf.mxu3  ;;  %v922_v2 = vsel %vm641_vm2, %v817_v47, 0.0  ;;  %v819_v10 = vmul.f32 %v1760_v44, %v1760_v44 }
 0x125   :  { %v574_v30 = vpack.c.bf16 %v1968_v41, %v1968_v41 }
 0x126   :  { %v714_v21 = vadd.f32 %v713_v50, %v712_v12  ;;  %v909_v24 = vadd.f32 %v908_v37, %v907_v20  ;;  %v729_v37 = vsel %vm641_vm2, %v1760_v44, 0.0  ;;  %v731_v44 = vsel %vm641_vm2, %v1796_v48, 0.0 }
 0x127   :  { %639 = vst.msk [vmem:[%s2108_s2 + $0xf8] sm:$0xf] %vm576_vm1, %v574_v30 }
 0x128   :  { %v716_v53 = vadd.f32 %v715_v33, %v714_v21  ;;  %v911_v38 = vadd.f32 %v910_v23, %v909_v24  ;;  %v926_v21 = vsel %vm641_vm2, %v819_v10, 0.0  ;;  %v821_v24 = vmul.f32 %v1840_v13, %v1840_v13 }
 0x129   :  { %v829_v10 = vmul.f32 %v1686_v62, %v1686_v62 }
 0x12a   :  { %v913_v16 = vadd.f32 %v912_v29, %v911_v38  ;;  %v718_v35 = vadd.f32 %v717_v25, %v716_v53  ;;  %v733_v53 = vsel %vm641_vm2, %v1840_v13, 0.0  ;;  %v822_v38 = vmul.f32 %v1868_v56, %v1868_v56 }
 0x12b   :  { %v930_v48 = vsel %vm641_vm2, %v821_v24, 0.0  ;;  %v824_v13 = vmul.f32 %v1515_v43, %v1515_v43  ;;  %v946_v49 = vsel %vm641_vm2, %v829_v10, 0.0  ;;  %v832_v24 = vmul.f32 %v1798_v31, %v1798_v31 }
 0x12c   :  { %v720_v39 = vadd.f32 %v719_v42, %v718_v35  ;;  %v915_v22 = vadd.f32 %v914_v58, %v913_v16  ;;  %v1992_v3 = vpop.f32.mrf.mxu3  ;;  %v735_v16 = vsel %vm641_vm2, %v1868_v56, 0.0  ;;  %v737_v42 = vsel %vm641_vm2, %v1483_v34, 0.0 }
 0x12d   :  { %v575_v20 = vpack.c.bf16 %v1992_v3, %v1992_v3  ;;  %v932_v40 = vsel %vm641_vm2, %v822_v38, 0.0  ;;  %v825_v56 = vmul.f32 %v1547_v52, %v1547_v52  ;;  %v741_v34 = vsel %vm641_vm2, %v1547_v52, 0.0 }
 0x12e   :  { %v722_v5 = vadd.f32 %v721_v51, %v720_v39  ;;  %v917_v1 = vadd.f32 %v916_v45, %v915_v22  ;;  %v934_v45 = vsel %vm641_vm2, %v823_v27, 0.0  ;;  %v739_v51 = vsel %vm641_vm2, %v1515_v43, 0.0 }
 0x12f   :  { %640 = vst.msk [vmem:[%s2108_s2 + $0xfc] sm:$0xf] %vm576_vm1, %v575_v20  ;;  %v743_v43 = vsel %vm641_vm2, %v1579_v61, 0.0  ;;  %v745_v52 = vsel %vm641_vm2, %v1607_v7, 0.0  ;;  %v830_v20 = vmul.f32 %v1714_v28, %v1714_v28  ;;  %v834_v27 = vmul.f32 %v1870_v15, %v1870_v15 }
 0x130   :  { %v724_v54 = vadd.f32 %v723_v60, %v722_v5  ;;  %v919_v57 = vadd.f32 %v918_v32, %v917_v1  ;;  %v936_v1 = vsel %vm641_vm2, %v824_v13, 0.0  ;;  %v826_v32 = vmul.f32 %v1579_v61, %v1579_v61 }
 0x131   :  { %v747_v61 = vsel %vm641_vm2, %v1625_v19, 0.0 }
 0x132   :  { %v726_v8 = vadd.f32 %v725_v6, %v724_v54  ;;  %v921_v17 = vadd.f32 %v920_v63, %v919_v57  ;;  %v938_v54 = vsel %vm641_vm2, %v825_v56, 0.0  ;;  %v827_v57 = vmul.f32 %v1607_v7, %v1607_v7 }
 0x133   :  { %v940_v0 = vsel %vm641_vm2, %v826_v32, 0.0  ;;  %v749_v7 = vsel %vm641_vm2, %v1686_v62, 0.0  ;;  %v753_v62 = vsel %vm641_vm2, %v1762_v11, 0.0  ;;  %v837_v56 = vmul.f32 %v1968_v41, %v1968_v41 }
 0x134   :  { %v728_v12 = vadd.f32 %v727_v18, %v726_v8  ;;  %v923_v59 = vadd.f32 %v922_v2, %v921_v17  ;;  %v828_v8 = vmul.f32 %v1625_v19, %v1625_v19  ;;  %v942_v18 = vsel %vm641_vm2, %v827_v57, 0.0 }
 0x135   :  { %v751_v19 = vsel %vm641_vm2, %v1714_v28, 0.0  ;;  %v755_v28 = vsel %vm641_vm2, %v1798_v31, 0.0  ;;  %v759_v31 = vsel %vm641_vm2, %v1870_v15, 0.0  ;;  %v763_v15 = vsel %vm641_vm2, %v1936_v4, 0.0 }
 0x136   :  { %v925_v50 = vadd.f32 %v924_v9, %v923_v59  ;;  %v730_v26 = vadd.f32 %v729_v37, %v728_v12  ;;  %v944_v59 = vsel %vm641_vm2, %v828_v8, 0.0 }
 0x138   :  { %v927_v23 = vadd.f32 %v926_v21, %v925_v50  ;;  %v732_v33 = vadd.f32 %v731_v44, %v730_v26  ;;  %v831_v50 = vmul.f32 %v1762_v11, %v1762_v11  ;;  %v948_v44 = vsel %vm641_vm2, %v830_v20, 0.0 }
 0x139   :  { %v757_v11 = vsel %vm641_vm2, %v1842_v14, 0.0 }
 0x13a   :  { %v929_v29 = vadd.f32 %v928_v46, %v927_v23  ;;  %v734_v25 = vadd.f32 %v733_v53, %v732_v33  ;;  %v950_v46 = vsel %vm641_vm2, %v831_v50, 0.0  ;;  %v833_v53 = vmul.f32 %v1842_v14, %v1842_v14 }
 0x13b   :  { %v761_v14 = vsel %vm641_vm2, %v1912_v36, 0.0 }
 0x13c   :  { %v931_v35 = vadd.f32 %v930_v48, %v929_v29  ;;  %v736_v58 = vadd.f32 %v735_v16, %v734_v25  ;;  %v952_v25 = vsel %vm641_vm2, %v832_v24, 0.0 }
 0x13e   :  { %v738_v39 = vadd.f32 %v737_v42, %v736_v58  ;;  %v933_v22 = vadd.f32 %v932_v40, %v931_v35  ;;  %v954_v35 = vsel %vm641_vm2, %v833_v53, 0.0  ;;  %v835_v58 = vmul.f32 %v1912_v36, %v1912_v36 }
 0x13f   :  { %v956_v40 = vsel %vm641_vm2, %v834_v27, 0.0  ;;  %v765_v36 = vsel %vm641_vm2, %v1968_v41, 0.0 }
 0x140   :  { %v740_v55 = vadd.f32 %v739_v51, %v738_v39  ;;  %v935_v5 = vadd.f32 %v934_v45, %v933_v22  ;;  %v836_v39 = vmul.f32 %v1936_v4, %v1936_v4  ;;  %v958_v51 = vsel %vm641_vm2, %v835_v58, 0.0 }
 0x141   :  { %v767_v4 = vsel %vm641_vm2, %v1992_v3, 0.0 }
 0x142   :  { %v742_v60 = vadd.f32 %v741_v34, %v740_v55  ;;  %v937_v47 = vadd.f32 %v936_v1, %v935_v5  ;;  %v960_v1 = vsel %vm641_vm2, %v836_v39, 0.0  ;;  %v838_v34 = vmul.f32 %v1992_v3, %v1992_v3 }
 0x144   :  { %v744_v63 = vadd.f32 %v743_v43, %v742_v60  ;;  %v939_v6 = vadd.f32 %v938_v54, %v937_v47  ;;  %v962_v47 = vsel %vm641_vm2, %v837_v56, 0.0  ;;  %v964_v57 = vsel %vm641_vm2, %v838_v34, 0.0 }
 0x146   :  { %v746_v17 = vadd.f32 %v745_v52, %v744_v63  ;;  %v941_v2 = vadd.f32 %v940_v0, %v939_v6 }
 0x148   :  { %v748_v30 = vadd.f32 %v747_v61, %v746_v17  ;;  %v943_v12 = vadd.f32 %v942_v18, %v941_v2 }
 0x14a   :  { %v945_v9 = vadd.f32 %v944_v59, %v943_v12  ;;  %v750_v37 = vadd.f32 %v749_v7, %v748_v30 }
 0x14c   :  { %v752_v26 = vadd.f32 %v751_v19, %v750_v37  ;;  %v947_v21 = vadd.f32 %v946_v49, %v945_v9 }
 0x14e   :  { %v754_v23 = vadd.f32 %v753_v62, %v752_v26  ;;  %v949_v33 = vadd.f32 %v948_v44, %v947_v21 }
 0x150   :  { %v756_v38 = vadd.f32 %v755_v28, %v754_v23  ;;  %v951_v29 = vadd.f32 %v950_v46, %v949_v33 }
 0x152   :  { %v758_v48 = vadd.f32 %v757_v11, %v756_v38  ;;  %v953_v16 = vadd.f32 %v952_v25, %v951_v29 }
 0x154   :  { %v760_v42 = vadd.f32 %v759_v31, %v758_v48  ;;  %v955_v13 = vadd.f32 %v954_v35, %v953_v16 }
 0x156   :  { %v957_v22 = vadd.f32 %v956_v40, %v955_v13  ;;  %v762_v45 = vadd.f32 %v761_v14, %v760_v42 }
 0x158   :  { %v959_v55 = vadd.f32 %v958_v51, %v957_v22  ;;  %v764_v5 = vadd.f32 %v763_v15, %v762_v45 }
 0x15a   :  { %v961_v32 = vadd.f32 %v960_v1, %v959_v55  ;;  %v766_v60 = vadd.f32 %v765_v36, %v764_v5 }
 0x15c   :  { %v963_v54 = vadd.f32 %v962_v47, %v961_v32  ;;  %v768_v43 = vadd.f32 %v767_v4, %v766_v60 }
 0x15e   :  { %v769_v63 = vrot.slane %v768_v43, 4  ;;  %v965_v6 = vadd.f32 %v964_v57, %v963_v54 }
 0x160   :  { %v770_v0 = vadd.f32 %v769_v63, %v768_v43  ;;  %v966_v52 = vrot.slane %v965_v6, 4 }
 0x162   :  { %v771_v8 = vrot.slane %v770_v0, 2  ;;  %v967_v41 = vadd.f32 %v966_v52, %v965_v6 }
 0x164   :  { %v772_v17 = vadd.f32 %v771_v8, %v770_v0  ;;  %v968_v2 = vrot.slane %v967_v41, 2 }
 0x166   :  { %v773_v18 = vrot.slane %v772_v17, 1  ;;  %v969_v61 = vadd.f32 %v968_v2, %v967_v41 }
 0x168   :  { %v970_v10 = vrot.slane %v969_v61, 1  ;;  %v774_v30 = vadd.f32 %v773_v18, %v772_v17 }
 0x16a   :  { %v971_v12 = vadd.f32 %v970_v10, %v969_v61 }
 0x16c   :  { %v973_v3 = vsel %vm972_vm3, %v774_v30, %v971_v12 }
 0x16d   :  { %975 = vst.msk [vmem:[%s2109_s3] sm:$0x3] %vm974_vm4, %v973_v3 }

// kernel: bottleneck_forward.7
= control target key start
LH: loop header
LB: loop body
LE: loop exit
PB: predicated region body
PF: predicated region fallthrough
CT: control target
= control target key end

     0   :  { %vm530_vm0 = vcmask 130048   ;;  %s1525_s0 = inlined_call_operand.vmem [shape: bf16[512,16], index: 0, kind: input, shape index: {}]   ;;  %s1526_s1 = inlined_call_operand.vmem [shape: f32[2,16], index: 1, kind: input, shape index: {}]   ;;  %s1527_s2 = inlined_call_operand.vmem [shape: bf16[512,16], index: 2, kind: input, shape index: {}]   ;;  %s1528_s3 = inlined_call_operand.vmem [shape: f32[512,16], index: 3, kind: output, shape index: {}]  }
   0x1   :  { %v600_v0 = vld [vmem:[%s1525_s0] sm:$0xff]   ;;  %v855_v8 = vld [vmem:[%s1525_s0 + $0x8] sm:$0xff]   ;;  %v856_v10 = vld [vmem:[%s1525_s0 + $0x10] sm:$0xff]  }
   0x2   :  { %v945_v1 = vld [vmem:[%s1526_s1] ss:$0 sm:$0xff]  ;;  %v601_v2 = vunpack.c.l.bf16 %v600_v0  ;;  %v950_v3 = vld [vmem:[%s1526_s1 + $0x1] ss:$0 sm:$0xff]  ;;  %v602_v5 = vunpack.c.h.bf16 %v600_v0  ;;  %v886_v9 = vld [vmem:[%s1527_s2 + $0x8] sm:$0xff]   ;;  %v605_v13 = vunpack.c.l.bf16 %v855_v8  ;;  %v606_v17 = vunpack.c.h.bf16 %v855_v8 }
   0x3   :  { %v728_v4 = vld [vmem:[%s1527_s2] sm:$0xff]   ;;  %v733_v14 = vunpack.c.l.bf16 %v886_v9  ;;  %v887_v15 = vld [vmem:[%s1527_s2 + $0x10] sm:$0xff]   ;;  %v857_v16 = vld [vmem:[%s1525_s0 + $0x18] sm:$0xff]   ;;  %v734_v18 = vunpack.c.h.bf16 %v886_v9  ;;  %v609_v19 = vunpack.c.l.bf16 %v856_v10  ;;  %v610_v24 = vunpack.c.h.bf16 %v856_v10 }
   0x4   :  { %v729_v6 = vunpack.c.l.bf16 %v728_v4  ;;  %v730_v7 = vunpack.c.h.bf16 %v728_v4  ;;  %v144_v11 = vmul.f32 %v945_v1, %v601_v2  ;;  %v145_v12 = vmul.f32 %v945_v1, %v602_v5  ;;  %v888_v25 = vld [vmem:[%s1527_s2 + $0x18] sm:$0xff]   ;;  %v858_v38 = vld [vmem:[%s1525_s0 + $0x20] sm:$0xff]   ;;  %v859_v52 = vld [vmem:[%s1525_s0 + $0x28] sm:$0xff]  }
   0x5   :  { %v737_v20 = vunpack.c.l.bf16 %v887_v15  ;;  %v146_v23 = vmul.f32 %v945_v1, %v605_v13  ;;  %v147_v26 = vmul.f32 %v945_v1, %v606_v17  ;;  %v148_v27 = vmul.f32 %v945_v1, %v609_v19  ;;  %v889_v47 = vld [vmem:[%s1527_s2 + $0x20] sm:$0xff]   ;;  %v890_v57 = vld [vmem:[%s1527_s2 + $0x28] sm:$0xff]   ;;  %v860_v62 = vld [vmem:[%s1525_s0 + $0x30] sm:$0xff]  }
   0x6   :  { %v210_v21 = vadd.f32 %v950_v3, %v144_v11  ;;  %v211_v22 = vadd.f32 %v950_v3, %v145_v12  ;;  %v738_v28 = vunpack.c.h.bf16 %v887_v15  ;;  %v613_v29 = vunpack.c.l.bf16 %v857_v16  ;;  %v891_v5 = vld [vmem:[%s1527_s2 + $0x30] sm:$0xff]  }
   0x7   :  { %v212_v32 = vadd.f32 %v950_v3, %v146_v23  ;;  %v149_v33 = vmul.f32 %v945_v1, %v610_v24  ;;  %v213_v34 = vadd.f32 %v950_v3, %v147_v26  ;;  %v214_v35 = vadd.f32 %v950_v3, %v148_v27  ;;  %v892_v23 = vld [vmem:[%s1527_s2 + $0x38] sm:$0xff]  }
   0x8   :  { %v402_v30 = vadd.f32 %v729_v6, %v210_v21  ;;  %v403_v31 = vadd.f32 %v730_v7, %v211_v22  ;;  %v150_v36 = vmul.f32 %v945_v1, %v613_v29  ;;  %v741_v37 = vunpack.c.l.bf16 %v888_v25 }
   0x9   :  { %v404_v41 = vadd.f32 %v733_v14, %v212_v32  ;;  %v215_v42 = vadd.f32 %v950_v3, %v149_v33  ;;  %v405_v43 = vadd.f32 %v734_v18, %v213_v34  ;;  %v406_v44 = vadd.f32 %v737_v20, %v214_v35  ;;  %v861_v18 = vld [vmem:[%s1525_s0 + $0x38] sm:$0xff]   ;;  %v862_v32 = vld [vmem:[%s1525_s0 + $0x40] sm:$0xff]  }
   0xa   :  { %v466_v39 = vmax.f32 %v402_v30, 0.0  ;;  %v467_v40 = vmax.f32 %v403_v31, 0.0  ;;  %v216_v45 = vadd.f32 %v950_v3, %v150_v36  ;;  %v614_v46 = vunpack.c.h.bf16 %v857_v16 }
   0xb   :  { %v468_v48 = vmax.f32 %v404_v41, 0.0  ;;  %v407_v49 = vadd.f32 %v738_v28, %v215_v42  ;;  %v742_v50 = vunpack.c.h.bf16 %v888_v25  ;;  %v617_v51 = vunpack.c.l.bf16 %v858_v38 }
   0xc   :  { %531 = vst.msk [vmem:[%s1528_s3] sm:$0xff] %vm530_vm0, %v466_v39  ;;  %v469_v53 = vmax.f32 %v405_v43, 0.0  ;;  %v470_v54 = vmax.f32 %v406_v44, 0.0  ;;  %v408_v55 = vadd.f32 %v741_v37, %v216_v45  ;;  %v151_v56 = vmul.f32 %v945_v1, %v614_v46  ;;  %v893_v37 = vld [vmem:[%s1527_s2 + $0x40] sm:$0xff]   ;;  %v863_v46 = vld [vmem:[%s1525_s0 + $0x48] sm:$0xff]  }
   0xd   :  { %532 = vst.msk [vmem:[%s1528_s3 + $0x8] sm:$0xff] %vm530_vm0, %v467_v40  ;;  %v471_v58 = vmax.f32 %v407_v49, 0.0  ;;  %v152_v59 = vmul.f32 %v945_v1, %v617_v51  ;;  %v745_v60 = vunpack.c.l.bf16 %v889_v47  ;;  %v618_v61 = vunpack.c.h.bf16 %v858_v38 }
   0xe   :  { %533 = vst.msk [vmem:[%s1528_s3 + $0x10] sm:$0xff] %vm530_vm0, %v468_v48  ;;  %v472_v63 = vmax.f32 %v408_v55, 0.0  ;;  %v217_v0 = vadd.f32 %v950_v3, %v151_v56  ;;  %v746_v2 = vunpack.c.h.bf16 %v889_v47  ;;  %v621_v4 = vunpack.c.l.bf16 %v859_v52  ;;  %v894_v47 = vld [vmem:[%s1527_s2 + $0x48] sm:$0xff]   ;;  %v864_v56 = vld [vmem:[%s1525_s0 + $0x50] sm:$0xff]  }
   0xf   :  { %534 = vst.msk [vmem:[%s1528_s3 + $0x18] sm:$0xff] %vm530_vm0, %v469_v53  ;;  %v218_v6 = vadd.f32 %v950_v3, %v152_v59  ;;  %v153_v7 = vmul.f32 %v945_v1, %v618_v61  ;;  %v749_v8 = vunpack.c.l.bf16 %v890_v57  ;;  %v622_v9 = vunpack.c.h.bf16 %v859_v52 }
  0x10   :  { %535 = vst.msk [vmem:[%s1528_s3 + $0x20] sm:$0xff] %vm530_vm0, %v470_v54  ;;  %v409_v10 = vadd.f32 %v742_v50, %v217_v0  ;;  %v154_v11 = vmul.f32 %v945_v1, %v621_v4  ;;  %v750_v12 = vunpack.c.h.bf16 %v890_v57  ;;  %v625_v13 = vunpack.c.l.bf16 %v860_v62 }
  0x11   :  { %536 = vst.msk [vmem:[%s1528_s3 + $0x28] sm:$0xff] %vm530_vm0, %v471_v58  ;;  %v410_v14 = vadd.f32 %v745_v60, %v218_v6  ;;  %v219_v15 = vadd.f32 %v950_v3, %v153_v7  ;;  %v155_v16 = vmul.f32 %v945_v1, %v622_v9  ;;  %v753_v17 = vunpack.c.l.bf16 %v891_v5 }
  0x12   :  { %537 = vst.msk [vmem:[%s1528_s3 + $0x30] sm:$0xff] %vm530_vm0, %v472_v63  ;;  %v473_v19 = vmax.f32 %v409_v10, 0.0  ;;  %v220_v20 = vadd.f32 %v950_v3, %v154_v11  ;;  %v156_v21 = vmul.f32 %v945_v1, %v625_v13  ;;  %v626_v22 = vunpack.c.h.bf16 %v860_v62 }
  0x13   :  { %v474_v24 = vmax.f32 %v410_v14, 0.0  ;;  %v411_v25 = vadd.f32 %v746_v2, %v219_v15  ;;  %v221_v26 = vadd.f32 %v950_v3, %v155_v16  ;;  %v754_v27 = vunpack.c.h.bf16 %v891_v5  ;;  %v895_v2 = vld [vmem:[%s1527_s2 + $0x50] sm:$0xff]  }
  0x14   :  { %538 = vst.msk [vmem:[%s1528_s3 + $0x38] sm:$0xff] %vm530_vm0, %v473_v19  ;;  %v412_v28 = vadd.f32 %v749_v8, %v220_v20  ;;  %v222_v29 = vadd.f32 %v950_v3, %v156_v21  ;;  %v157_v30 = vmul.f32 %v945_v1, %v626_v22  ;;  %v629_v31 = vunpack.c.l.bf16 %v861_v18 }
  0x15   :  { %539 = vst.msk [vmem:[%s1528_s3 + $0x40] sm:$0xff] %vm530_vm0, %v474_v24  ;;  %v475_v33 = vmax.f32 %v411_v25, 0.0  ;;  %v413_v34 = vadd.f32 %v750_v12, %v221_v26  ;;  %v757_v35 = vunpack.c.l.bf16 %v892_v23  ;;  %v630_v36 = vunpack.c.h.bf16 %v861_v18  ;;  %v865_v12 = vld [vmem:[%s1525_s0 + $0x58] sm:$0xff]   ;;  %v866_v26 = vld [vmem:[%s1525_s0 + $0x60] sm:$0xff]  }
  0x16   :  { %v476_v38 = vmax.f32 %v412_v28, 0.0  ;;  %v414_v39 = vadd.f32 %v753_v17, %v222_v29  ;;  %v223_v40 = vadd.f32 %v950_v3, %v157_v30  ;;  %v158_v41 = vmul.f32 %v945_v1, %v629_v31  ;;  %v896_v17 = vld [vmem:[%s1527_s2 + $0x58] sm:$0xff]   ;;  %v897_v31 = vld [vmem:[%s1527_s2 + $0x60] sm:$0xff]  }
  0x17   :  { %540 = vst.msk [vmem:[%s1528_s3 + $0x48] sm:$0xff] %vm530_vm0, %v475_v33  ;;  %v477_v42 = vmax.f32 %v413_v34, 0.0  ;;  %v159_v43 = vmul.f32 %v945_v1, %v630_v36  ;;  %v758_v44 = vunpack.c.h.bf16 %v892_v23  ;;  %v633_v45 = vunpack.c.l.bf16 %v862_v32 }
  0x18   :  { %541 = vst.msk [vmem:[%s1528_s3 + $0x50] sm:$0xff] %vm530_vm0, %v476_v38  ;;  %v478_v48 = vmax.f32 %v414_v39, 0.0  ;;  %v415_v49 = vadd.f32 %v754_v27, %v223_v40  ;;  %v224_v50 = vadd.f32 %v950_v3, %v158_v41  ;;  %v761_v51 = vunpack.c.l.bf16 %v893_v37  ;;  %v867_v40 = vld [vmem:[%s1525_s0 + $0x68] sm:$0xff]  }
  0x19   :  { %542 = vst.msk [vmem:[%s1528_s3 + $0x58] sm:$0xff] %vm530_vm0, %v477_v42  ;;  %v225_v52 = vadd.f32 %v950_v3, %v159_v43  ;;  %v160_v53 = vmul.f32 %v945_v1, %v633_v45  ;;  %v634_v54 = vunpack.c.h.bf16 %v862_v32  ;;  %v762_v55 = vunpack.c.h.bf16 %v893_v37  ;;  %v898_v41 = vld [vmem:[%s1527_s2 + $0x68] sm:$0xff]  }
  0x1a   :  { %543 = vst.msk [vmem:[%s1528_s3 + $0x60] sm:$0xff] %vm530_vm0, %v478_v48  ;;  %v479_v57 = vmax.f32 %v415_v49, 0.0  ;;  %v416_v58 = vadd.f32 %v757_v35, %v224_v50  ;;  %v637_v59 = vunpack.c.l.bf16 %v863_v46  ;;  %v765_v60 = vunpack.c.l.bf16 %v894_v47  ;;  %v868_v50 = vld [vmem:[%s1525_s0 + $0x70] sm:$0xff]  }
  0x1b   :  { %v417_v61 = vadd.f32 %v758_v44, %v225_v52  ;;  %v226_v62 = vadd.f32 %v950_v3, %v160_v53  ;;  %v161_v63 = vmul.f32 %v945_v1, %v634_v54  ;;  %v638_v0 = vunpack.c.h.bf16 %v863_v46 }
  0x1c   :  { %544 = vst.msk [vmem:[%s1528_s3 + $0x68] sm:$0xff] %vm530_vm0, %v479_v57  ;;  %v480_v4 = vmax.f32 %v416_v58, 0.0  ;;  %v162_v5 = vmul.f32 %v945_v1, %v637_v59  ;;  %v766_v6 = vunpack.c.h.bf16 %v894_v47  ;;  %v641_v7 = vunpack.c.l.bf16 %v864_v56  ;;  %v899_v59 = vld [vmem:[%s1527_s2 + $0x70] sm:$0xff]  }
  0x1d   :  { %v481_v8 = vmax.f32 %v417_v61, 0.0  ;;  %v418_v9 = vadd.f32 %v761_v51, %v226_v62  ;;  %v227_v10 = vadd.f32 %v950_v3, %v161_v63  ;;  %v163_v11 = vmul.f32 %v945_v1, %v638_v0 }
  0x1e   :  { %545 = vst.msk [vmem:[%s1528_s3 + $0x70] sm:$0xff] %vm530_vm0, %v480_v4  ;;  %v228_v13 = vadd.f32 %v950_v3, %v162_v5  ;;  %v164_v14 = vmul.f32 %v945_v1, %v641_v7  ;;  %v769_v15 = vunpack.c.l.bf16 %v895_v2  ;;  %v642_v16 = vunpack.c.h.bf16 %v864_v56 }
  0x1f   :  { %546 = vst.msk [vmem:[%s1528_s3 + $0x78] sm:$0xff] %vm530_vm0, %v481_v8  ;;  %v482_v18 = vmax.f32 %v418_v9, 0.0  ;;  %v419_v19 = vadd.f32 %v762_v55, %v227_v10  ;;  %v229_v20 = vadd.f32 %v950_v3, %v163_v11  ;;  %v770_v21 = vunpack.c.h.bf16 %v895_v2  ;;  %v900_v11 = vld [vmem:[%s1527_s2 + $0x78] sm:$0xff]  }
  0x20   :  { %v420_v22 = vadd.f32 %v765_v60, %v228_v13  ;;  %v230_v23 = vadd.f32 %v950_v3, %v164_v14  ;;  %v165_v24 = vmul.f32 %v945_v1, %v642_v16  ;;  %v645_v25 = vunpack.c.l.bf16 %v865_v12 }
  0x21   :  { %547 = vst.msk [vmem:[%s1528_s3 + $0x80] sm:$0xff] %vm530_vm0, %v482_v18  ;;  %v483_v27 = vmax.f32 %v419_v19, 0.0  ;;  %v421_v28 = vadd.f32 %v766_v6, %v229_v20  ;;  %v773_v29 = vunpack.c.l.bf16 %v896_v17  ;;  %v646_v30 = vunpack.c.h.bf16 %v865_v12  ;;  %v869_v6 = vld [vmem:[%s1525_s0 + $0x78] sm:$0xff]   ;;  %v870_v20 = vld [vmem:[%s1525_s0 + $0x80] sm:$0xff]  }
  0x22   :  { %v484_v32 = vmax.f32 %v420_v22, 0.0  ;;  %v422_v33 = vadd.f32 %v769_v15, %v230_v23  ;;  %v231_v34 = vadd.f32 %v950_v3, %v165_v24  ;;  %v166_v35 = vmul.f32 %v945_v1, %v645_v25  ;;  %v901_v25 = vld [vmem:[%s1527_s2 + $0x80] sm:$0xff]  }
  0x23   :  { %548 = vst.msk [vmem:[%s1528_s3 + $0x88] sm:$0xff] %vm530_vm0, %v483_v27  ;;  %v485_v36 = vmax.f32 %v421_v28, 0.0  ;;  %v167_v37 = vmul.f32 %v945_v1, %v646_v30  ;;  %v774_v38 = vunpack.c.h.bf16 %v896_v17  ;;  %v649_v39 = vunpack.c.l.bf16 %v866_v26 }
  0x24   :  { %549 = vst.msk [vmem:[%s1528_s3 + $0x90] sm:$0xff] %vm530_vm0, %v484_v32  ;;  %v486_v42 = vmax.f32 %v422_v33, 0.0  ;;  %v423_v43 = vadd.f32 %v770_v21, %v231_v34  ;;  %v232_v44 = vadd.f32 %v950_v3, %v166_v35  ;;  %v777_v45 = vunpack.c.l.bf16 %v897_v31  ;;  %v871_v34 = vld [vmem:[%s1525_s0 + $0x88] sm:$0xff]  }
  0x25   :  { %550 = vst.msk [vmem:[%s1528_s3 + $0x98] sm:$0xff] %vm530_vm0, %v485_v36  ;;  %v233_v46 = vadd.f32 %v950_v3, %v167_v37  ;;  %v168_v47 = vmul.f32 %v945_v1, %v649_v39  ;;  %v650_v48 = vunpack.c.h.bf16 %v866_v26  ;;  %v778_v49 = vunpack.c.h.bf16 %v897_v31  ;;  %v902_v35 = vld [vmem:[%s1527_s2 + $0x88] sm:$0xff]  }
  0x26   :  { %551 = vst.msk [vmem:[%s1528_s3 + $0xa0] sm:$0xff] %vm530_vm0, %v486_v42  ;;  %v487_v51 = vmax.f32 %v423_v43, 0.0  ;;  %v424_v52 = vadd.f32 %v773_v29, %v232_v44  ;;  %v653_v53 = vunpack.c.l.bf16 %v867_v40  ;;  %v781_v54 = vunpack.c.l.bf16 %v898_v41  ;;  %v872_v44 = vld [vmem:[%s1525_s0 + $0x90] sm:$0xff]  }
  0x27   :  { %v425_v55 = vadd.f32 %v774_v38, %v233_v46  ;;  %v234_v56 = vadd.f32 %v950_v3, %v168_v47  ;;  %v169_v57 = vmul.f32 %v945_v1, %v650_v48  ;;  %v654_v58 = vunpack.c.h.bf16 %v867_v40 }
  0x28   :  { %552 = vst.msk [vmem:[%s1528_s3 + $0xa8] sm:$0xff] %vm530_vm0, %v487_v51  ;;  %v488_v60 = vmax.f32 %v424_v52, 0.0  ;;  %v170_v61 = vmul.f32 %v945_v1, %v653_v53  ;;  %v782_v62 = vunpack.c.h.bf16 %v898_v41  ;;  %v657_v63 = vunpack.c.l.bf16 %v868_v50  ;;  %v903_v53 = vld [vmem:[%s1527_s2 + $0x90] sm:$0xff]  }
  0x29   :  { %v489_v0 = vmax.f32 %v425_v55, 0.0  ;;  %v426_v2 = vadd.f32 %v777_v45, %v234_v56  ;;  %v235_v4 = vadd.f32 %v950_v3, %v169_v57  ;;  %v171_v5 = vmul.f32 %v945_v1, %v654_v58 }
  0x2a   :  { %553 = vst.msk [vmem:[%s1528_s3 + $0xb0] sm:$0xff] %vm530_vm0, %v488_v60  ;;  %v236_v7 = vadd.f32 %v950_v3, %v170_v61  ;;  %v172_v8 = vmul.f32 %v945_v1, %v657_v63  ;;  %v785_v9 = vunpack.c.l.bf16 %v899_v59  ;;  %v658_v10 = vunpack.c.h.bf16 %v868_v50 }
  0x2b   :  { %554 = vst.msk [vmem:[%s1528_s3 + $0xb8] sm:$0xff] %vm530_vm0, %v489_v0  ;;  %v490_v12 = vmax.f32 %v426_v2, 0.0  ;;  %v427_v13 = vadd.f32 %v778_v49, %v235_v4  ;;  %v237_v14 = vadd.f32 %v950_v3, %v171_v5  ;;  %v786_v15 = vunpack.c.h.bf16 %v899_v59  ;;  %v904_v5 = vld [vmem:[%s1527_s2 + $0x98] sm:$0xff]  }
  0x2c   :  { %v428_v16 = vadd.f32 %v781_v54, %v236_v7  ;;  %v238_v17 = vadd.f32 %v950_v3, %v172_v8  ;;  %v173_v18 = vmul.f32 %v945_v1, %v658_v10  ;;  %v661_v19 = vunpack.c.l.bf16 %v869_v6 }
  0x2d   :  { %555 = vst.msk [vmem:[%s1528_s3 + $0xc0] sm:$0xff] %vm530_vm0, %v490_v12  ;;  %v491_v21 = vmax.f32 %v427_v13, 0.0  ;;  %v429_v22 = vadd.f32 %v782_v62, %v237_v14  ;;  %v789_v23 = vunpack.c.l.bf16 %v900_v11  ;;  %v662_v24 = vunpack.c.h.bf16 %v869_v6  ;;  %v873_v62 = vld [vmem:[%s1525_s0 + $0x98] sm:$0xff]   ;;  %v874_v14 = vld [vmem:[%s1525_s0 + $0xa0] sm:$0xff]  }
  0x2e   :  { %v492_v26 = vmax.f32 %v428_v16, 0.0  ;;  %v430_v27 = vadd.f32 %v785_v9, %v238_v17  ;;  %v239_v28 = vadd.f32 %v950_v3, %v173_v18  ;;  %v174_v29 = vmul.f32 %v945_v1, %v661_v19  ;;  %v905_v19 = vld [vmem:[%s1527_s2 + $0xa0] sm:$0xff]  }
  0x2f   :  { %556 = vst.msk [vmem:[%s1528_s3 + $0xc8] sm:$0xff] %vm530_vm0, %v491_v21  ;;  %v493_v30 = vmax.f32 %v429_v22, 0.0  ;;  %v175_v31 = vmul.f32 %v945_v1, %v662_v24  ;;  %v790_v32 = vunpack.c.h.bf16 %v900_v11  ;;  %v665_v33 = vunpack.c.l.bf16 %v870_v20 }
  0x30   :  { %557 = vst.msk [vmem:[%s1528_s3 + $0xd0] sm:$0xff] %vm530_vm0, %v492_v26  ;;  %v494_v36 = vmax.f32 %v430_v27, 0.0  ;;  %v431_v37 = vadd.f32 %v786_v15, %v239_v28  ;;  %v240_v38 = vadd.f32 %v950_v3, %v174_v29  ;;  %v793_v39 = vunpack.c.l.bf16 %v901_v25  ;;  %v875_v28 = vld [vmem:[%s1525_s0 + $0xa8] sm:$0xff]  }
  0x31   :  { %558 = vst.msk [vmem:[%s1528_s3 + $0xd8] sm:$0xff] %vm530_vm0, %v493_v30  ;;  %v241_v40 = vadd.f32 %v950_v3, %v175_v31  ;;  %v176_v41 = vmul.f32 %v945_v1, %v665_v33  ;;  %v666_v42 = vunpack.c.h.bf16 %v870_v20  ;;  %v794_v43 = vunpack.c.h.bf16 %v901_v25  ;;  %v906_v29 = vld [vmem:[%s1527_s2 + $0xa8] sm:$0xff]  }
  0x32   :  { %559 = vst.msk [vmem:[%s1528_s3 + $0xe0] sm:$0xff] %vm530_vm0, %v494_v36  ;;  %v495_v45 = vmax.f32 %v431_v37, 0.0  ;;  %v432_v46 = vadd.f32 %v789_v23, %v240_v38  ;;  %v669_v47 = vunpack.c.l.bf16 %v871_v34  ;;  %v797_v48 = vunpack.c.l.bf16 %v902_v35  ;;  %v876_v38 = vld [vmem:[%s1525_s0 + $0xb0] sm:$0xff]  }
  0x33   :  { %v433_v49 = vadd.f32 %v790_v32, %v241_v40  ;;  %v242_v50 = vadd.f32 %v950_v3, %v176_v41  ;;  %v177_v51 = vmul.f32 %v945_v1, %v666_v42  ;;  %v670_v52 = vunpack.c.h.bf16 %v871_v34 }
  0x34   :  { %560 = vst.msk [vmem:[%s1528_s3 + $0xe8] sm:$0xff] %vm530_vm0, %v495_v45  ;;  %v496_v54 = vmax.f32 %v432_v46, 0.0  ;;  %v178_v55 = vmul.f32 %v945_v1, %v669_v47  ;;  %v798_v56 = vunpack.c.h.bf16 %v902_v35  ;;  %v673_v57 = vunpack.c.l.bf16 %v872_v44  ;;  %v907_v47 = vld [vmem:[%s1527_s2 + $0xb0] sm:$0xff]  }
  0x35   :  { %v497_v58 = vmax.f32 %v433_v49, 0.0  ;;  %v434_v59 = vadd.f32 %v793_v39, %v242_v50  ;;  %v243_v60 = vadd.f32 %v950_v3, %v177_v51  ;;  %v179_v61 = vmul.f32 %v945_v1, %v670_v52 }
  0x36   :  { %561 = vst.msk [vmem:[%s1528_s3 + $0xf0] sm:$0xff] %vm530_vm0, %v496_v54  ;;  %v244_v63 = vadd.f32 %v950_v3, %v178_v55  ;;  %v180_v0 = vmul.f32 %v945_v1, %v673_v57  ;;  %v801_v2 = vunpack.c.l.bf16 %v903_v53  ;;  %v674_v4 = vunpack.c.h.bf16 %v872_v44 }
  0x37   :  { %562 = vst.msk [vmem:[%s1528_s3 + $0xf8] sm:$0xff] %vm530_vm0, %v497_v58  ;;  %v498_v6 = vmax.f32 %v434_v59, 0.0  ;;  %v435_v7 = vadd.f32 %v794_v43, %v243_v60  ;;  %v245_v8 = vadd.f32 %v950_v3, %v179_v61  ;;  %v802_v9 = vunpack.c.h.bf16 %v903_v53  ;;  %v908_v61 = vld [vmem:[%s1527_s2 + $0xb8] sm:$0xff]  }
  0x38   :  { %v436_v10 = vadd.f32 %v797_v48, %v244_v63  ;;  %v246_v11 = vadd.f32 %v950_v3, %v180_v0  ;;  %v181_v12 = vmul.f32 %v945_v1, %v674_v4  ;;  %v677_v13 = vunpack.c.l.bf16 %v873_v62 }
  0x39   :  { %563 = vst.msk [vmem:[%s1528_s3 + $0x100] sm:$0xff] %vm530_vm0, %v498_v6  ;;  %v499_v15 = vmax.f32 %v435_v7, 0.0  ;;  %v437_v16 = vadd.f32 %v798_v56, %v245_v8  ;;  %v805_v17 = vunpack.c.l.bf16 %v904_v5  ;;  %v678_v18 = vunpack.c.h.bf16 %v873_v62  ;;  %v877_v56 = vld [vmem:[%s1525_s0 + $0xb8] sm:$0xff]   ;;  %v878_v8 = vld [vmem:[%s1525_s0 + $0xc0] sm:$0xff]  }
  0x3a   :  { %v500_v20 = vmax.f32 %v436_v10, 0.0  ;;  %v438_v21 = vadd.f32 %v801_v2, %v246_v11  ;;  %v247_v22 = vadd.f32 %v950_v3, %v181_v12  ;;  %v182_v23 = vmul.f32 %v945_v1, %v677_v13  ;;  %v909_v13 = vld [vmem:[%s1527_s2 + $0xc0] sm:$0xff]  }
  0x3b   :  { %564 = vst.msk [vmem:[%s1528_s3 + $0x108] sm:$0xff] %vm530_vm0, %v499_v15  ;;  %v501_v24 = vmax.f32 %v437_v16, 0.0  ;;  %v183_v25 = vmul.f32 %v945_v1, %v678_v18  ;;  %v806_v26 = vunpack.c.h.bf16 %v904_v5  ;;  %v681_v27 = vunpack.c.l.bf16 %v874_v14 }
  0x3c   :  { %565 = vst.msk [vmem:[%s1528_s3 + $0x110] sm:$0xff] %vm530_vm0, %v500_v20  ;;  %v502_v30 = vmax.f32 %v438_v21, 0.0  ;;  %v439_v31 = vadd.f32 %v802_v9, %v247_v22  ;;  %v248_v32 = vadd.f32 %v950_v3, %v182_v23  ;;  %v809_v33 = vunpack.c.l.bf16 %v905_v19  ;;  %v879_v22 = vld [vmem:[%s1525_s0 + $0xc8] sm:$0xff]  }
  0x3d   :  { %566 = vst.msk [vmem:[%s1528_s3 + $0x118] sm:$0xff] %vm530_vm0, %v501_v24  ;;  %v249_v34 = vadd.f32 %v950_v3, %v183_v25  ;;  %v184_v35 = vmul.f32 %v945_v1, %v681_v27  ;;  %v682_v36 = vunpack.c.h.bf16 %v874_v14  ;;  %v810_v37 = vunpack.c.h.bf16 %v905_v19  ;;  %v910_v23 = vld [vmem:[%s1527_s2 + $0xc8] sm:$0xff]  }
  0x3e   :  { %567 = vst.msk [vmem:[%s1528_s3 + $0x120] sm:$0xff] %vm530_vm0, %v502_v30  ;;  %v503_v39 = vmax.f32 %v439_v31, 0.0  ;;  %v440_v40 = vadd.f32 %v805_v17, %v248_v32  ;;  %v685_v41 = vunpack.c.l.bf16 %v875_v28  ;;  %v813_v42 = vunpack.c.l.bf16 %v906_v29  ;;  %v880_v32 = vld [vmem:[%s1525_s0 + $0xd0] sm:$0xff]  }
  0x3f   :  { %v441_v43 = vadd.f32 %v806_v26, %v249_v34  ;;  %v250_v44 = vadd.f32 %v950_v3, %v184_v35  ;;  %v185_v45 = vmul.f32 %v945_v1, %v682_v36  ;;  %v686_v46 = vunpack.c.h.bf16 %v875_v28 }
  0x40   :  { %568 = vst.msk [vmem:[%s1528_s3 + $0x128] sm:$0xff] %vm530_vm0, %v503_v39  ;;  %v504_v48 = vmax.f32 %v440_v40, 0.0  ;;  %v186_v49 = vmul.f32 %v945_v1, %v685_v41  ;;  %v814_v50 = vunpack.c.h.bf16 %v906_v29  ;;  %v689_v51 = vunpack.c.l.bf16 %v876_v38  ;;  %v911_v41 = vld [vmem:[%s1527_s2 + $0xd0] sm:$0xff]  }
  0x41   :  { %v505_v52 = vmax.f32 %v441_v43, 0.0  ;;  %v442_v53 = vadd.f32 %v809_v33, %v250_v44  ;;  %v251_v54 = vadd.f32 %v950_v3, %v185_v45  ;;  %v187_v55 = vmul.f32 %v945_v1, %v686_v46 }
  0x42   :  { %569 = vst.msk [vmem:[%s1528_s3 + $0x130] sm:$0xff] %vm530_vm0, %v504_v48  ;;  %v252_v57 = vadd.f32 %v950_v3, %v186_v49  ;;  %v188_v58 = vmul.f32 %v945_v1, %v689_v51  ;;  %v817_v59 = vunpack.c.l.bf16 %v907_v47  ;;  %v690_v60 = vunpack.c.h.bf16 %v876_v38 }
  0x43   :  { %570 = vst.msk [vmem:[%s1528_s3 + $0x138] sm:$0xff] %vm530_vm0, %v505_v52  ;;  %v506_v62 = vmax.f32 %v442_v53, 0.0  ;;  %v443_v63 = vadd.f32 %v810_v37, %v251_v54  ;;  %v253_v0 = vadd.f32 %v950_v3, %v187_v55  ;;  %v818_v2 = vunpack.c.h.bf16 %v907_v47  ;;  %v912_v55 = vld [vmem:[%s1527_s2 + $0xd8] sm:$0xff]  }
  0x44   :  { %v444_v4 = vadd.f32 %v813_v42, %v252_v57  ;;  %v254_v5 = vadd.f32 %v950_v3, %v188_v58  ;;  %v189_v6 = vmul.f32 %v945_v1, %v690_v60  ;;  %v693_v7 = vunpack.c.l.bf16 %v877_v56 }
  0x45   :  { %571 = vst.msk [vmem:[%s1528_s3 + $0x140] sm:$0xff] %vm530_vm0, %v506_v62  ;;  %v507_v9 = vmax.f32 %v443_v63, 0.0  ;;  %v445_v10 = vadd.f32 %v814_v50, %v253_v0  ;;  %v821_v11 = vunpack.c.l.bf16 %v908_v61  ;;  %v694_v12 = vunpack.c.h.bf16 %v877_v56  ;;  %v881_v50 = vld [vmem:[%s1525_s0 + $0xd8] sm:$0xff]   ;;  %v882_v0 = vld [vmem:[%s1525_s0 + $0xe0] sm:$0xff]  }
  0x46   :  { %v508_v14 = vmax.f32 %v444_v4, 0.0  ;;  %v446_v15 = vadd.f32 %v817_v59, %v254_v5  ;;  %v255_v16 = vadd.f32 %v950_v3, %v189_v6  ;;  %v190_v17 = vmul.f32 %v945_v1, %v693_v7  ;;  %v913_v7 = vld [vmem:[%s1527_s2 + $0xe0] sm:$0xff]  }
  0x47   :  { %572 = vst.msk [vmem:[%s1528_s3 + $0x148] sm:$0xff] %vm530_vm0, %v507_v9  ;;  %v509_v18 = vmax.f32 %v445_v10, 0.0  ;;  %v191_v19 = vmul.f32 %v945_v1, %v694_v12  ;;  %v822_v20 = vunpack.c.h.bf16 %v908_v61  ;;  %v697_v21 = vunpack.c.l.bf16 %v878_v8 }
  0x48   :  { %573 = vst.msk [vmem:[%s1528_s3 + $0x150] sm:$0xff] %vm530_vm0, %v508_v14  ;;  %v510_v24 = vmax.f32 %v446_v15, 0.0  ;;  %v447_v25 = vadd.f32 %v818_v2, %v255_v16  ;;  %v256_v26 = vadd.f32 %v950_v3, %v190_v17  ;;  %v825_v27 = vunpack.c.l.bf16 %v909_v13  ;;  %v883_v16 = vld [vmem:[%s1525_s0 + $0xe8] sm:$0xff]  }
  0x49   :  { %574 = vst.msk [vmem:[%s1528_s3 + $0x158] sm:$0xff] %vm530_vm0, %v509_v18  ;;  %v257_v28 = vadd.f32 %v950_v3, %v191_v19  ;;  %v192_v29 = vmul.f32 %v945_v1, %v697_v21  ;;  %v698_v30 = vunpack.c.h.bf16 %v878_v8  ;;  %v826_v31 = vunpack.c.h.bf16 %v909_v13  ;;  %v914_v17 = vld [vmem:[%s1527_s2 + $0xe8] sm:$0xff]  }
  0x4a   :  { %575 = vst.msk [vmem:[%s1528_s3 + $0x160] sm:$0xff] %vm530_vm0, %v510_v24  ;;  %v511_v33 = vmax.f32 %v447_v25, 0.0  ;;  %v448_v34 = vadd.f32 %v821_v11, %v256_v26  ;;  %v701_v35 = vunpack.c.l.bf16 %v879_v22  ;;  %v829_v36 = vunpack.c.l.bf16 %v910_v23  ;;  %v884_v26 = vld [vmem:[%s1525_s0 + $0xf0] sm:$0xff]  }
  0x4b   :  { %v449_v37 = vadd.f32 %v822_v20, %v257_v28  ;;  %v258_v38 = vadd.f32 %v950_v3, %v192_v29  ;;  %v193_v39 = vmul.f32 %v945_v1, %v698_v30  ;;  %v702_v40 = vunpack.c.h.bf16 %v879_v22 }
  0x4c   :  { %576 = vst.msk [vmem:[%s1528_s3 + $0x168] sm:$0xff] %vm530_vm0, %v511_v33  ;;  %v512_v42 = vmax.f32 %v448_v34, 0.0  ;;  %v194_v43 = vmul.f32 %v945_v1, %v701_v35  ;;  %v830_v44 = vunpack.c.h.bf16 %v910_v23  ;;  %v705_v45 = vunpack.c.l.bf16 %v880_v32  ;;  %v915_v35 = vld [vmem:[%s1527_s2 + $0xf0] sm:$0xff]  }
  0x4d   :  { %v513_v46 = vmax.f32 %v449_v37, 0.0  ;;  %v450_v47 = vadd.f32 %v825_v27, %v258_v38  ;;  %v259_v48 = vadd.f32 %v950_v3, %v193_v39  ;;  %v195_v49 = vmul.f32 %v945_v1, %v702_v40 }
  0x4e   :  { %577 = vst.msk [vmem:[%s1528_s3 + $0x170] sm:$0xff] %vm530_vm0, %v512_v42  ;;  %v260_v51 = vadd.f32 %v950_v3, %v194_v43  ;;  %v196_v52 = vmul.f32 %v945_v1, %v705_v45  ;;  %v833_v53 = vunpack.c.l.bf16 %v911_v41  ;;  %v706_v54 = vunpack.c.h.bf16 %v880_v32 }
  0x4f   :  { %578 = vst.msk [vmem:[%s1528_s3 + $0x178] sm:$0xff] %vm530_vm0, %v513_v46  ;;  %v514_v56 = vmax.f32 %v450_v47, 0.0  ;;  %v451_v57 = vadd.f32 %v826_v31, %v259_v48  ;;  %v261_v58 = vadd.f32 %v950_v3, %v195_v49  ;;  %v834_v59 = vunpack.c.h.bf16 %v911_v41  ;;  %v916_v49 = vld [vmem:[%s1527_s2 + $0xf8] sm:$0xff]  }
  0x50   :  { %v452_v60 = vadd.f32 %v829_v36, %v260_v51  ;;  %v262_v61 = vadd.f32 %v950_v3, %v196_v52  ;;  %v197_v62 = vmul.f32 %v945_v1, %v706_v54  ;;  %v709_v63 = vunpack.c.l.bf16 %v881_v50 }
  0x51   :  { %579 = vst.msk [vmem:[%s1528_s3 + $0x180] sm:$0xff] %vm530_vm0, %v514_v56  ;;  %v515_v2 = vmax.f32 %v451_v57, 0.0  ;;  %v453_v4 = vadd.f32 %v830_v44, %v261_v58  ;;  %v837_v5 = vunpack.c.l.bf16 %v912_v55  ;;  %v710_v6 = vunpack.c.h.bf16 %v881_v50  ;;  %v885_v44 = vld [vmem:[%s1525_s0 + $0xf8] sm:$0xff]  }
  0x52   :  { %v516_v8 = vmax.f32 %v452_v60, 0.0  ;;  %v454_v9 = vadd.f32 %v833_v53, %v262_v61  ;;  %v263_v10 = vadd.f32 %v950_v3, %v197_v62  ;;  %v198_v11 = vmul.f32 %v945_v1, %v709_v63 }
  0x53   :  { %580 = vst.msk [vmem:[%s1528_s3 + $0x188] sm:$0xff] %vm530_vm0, %v515_v2  ;;  %v517_v12 = vmax.f32 %v453_v4, 0.0  ;;  %v199_v13 = vmul.f32 %v945_v1, %v710_v6  ;;  %v838_v14 = vunpack.c.h.bf16 %v912_v55  ;;  %v713_v15 = vunpack.c.l.bf16 %v882_v0 }
  0x54   :  { %581 = vst.msk [vmem:[%s1528_s3 + $0x190] sm:$0xff] %vm530_vm0, %v516_v8  ;;  %v518_v18 = vmax.f32 %v454_v9, 0.0  ;;  %v455_v19 = vadd.f32 %v834_v59, %v263_v10  ;;  %v264_v20 = vadd.f32 %v950_v3, %v198_v11  ;;  %v841_v21 = vunpack.c.l.bf16 %v913_v7 }
  0x55   :  { %582 = vst.msk [vmem:[%s1528_s3 + $0x198] sm:$0xff] %vm530_vm0, %v517_v12  ;;  %v265_v22 = vadd.f32 %v950_v3, %v199_v13  ;;  %v200_v23 = vmul.f32 %v945_v1, %v713_v15  ;;  %v714_v24 = vunpack.c.h.bf16 %v882_v0  ;;  %v842_v25 = vunpack.c.h.bf16 %v913_v7 }
  0x56   :  { %583 = vst.msk [vmem:[%s1528_s3 + $0x1a0] sm:$0xff] %vm530_vm0, %v518_v18  ;;  %v519_v27 = vmax.f32 %v455_v19, 0.0  ;;  %v456_v28 = vadd.f32 %v837_v5, %v264_v20  ;;  %v717_v29 = vunpack.c.l.bf16 %v883_v16  ;;  %v845_v30 = vunpack.c.l.bf16 %v914_v17 }
  0x57   :  { %v457_v31 = vadd.f32 %v838_v14, %v265_v22  ;;  %v266_v32 = vadd.f32 %v950_v3, %v200_v23  ;;  %v201_v33 = vmul.f32 %v945_v1, %v714_v24  ;;  %v718_v34 = vunpack.c.h.bf16 %v883_v16 }
  0x58   :  { %584 = vst.msk [vmem:[%s1528_s3 + $0x1a8] sm:$0xff] %vm530_vm0, %v519_v27  ;;  %v520_v36 = vmax.f32 %v456_v28, 0.0  ;;  %v202_v37 = vmul.f32 %v945_v1, %v717_v29  ;;  %v846_v38 = vunpack.c.h.bf16 %v914_v17  ;;  %v721_v39 = vunpack.c.l.bf16 %v884_v26 }
  0x59   :  { %v521_v40 = vmax.f32 %v457_v31, 0.0  ;;  %v458_v41 = vadd.f32 %v841_v21, %v266_v32  ;;  %v267_v42 = vadd.f32 %v950_v3, %v201_v33  ;;  %v203_v43 = vmul.f32 %v945_v1, %v718_v34 }
  0x5a   :  { %585 = vst.msk [vmem:[%s1528_s3 + $0x1b0] sm:$0xff] %vm530_vm0, %v520_v36  ;;  %v268_v45 = vadd.f32 %v950_v3, %v202_v37  ;;  %v204_v46 = vmul.f32 %v945_v1, %v721_v39  ;;  %v849_v47 = vunpack.c.l.bf16 %v915_v35  ;;  %v722_v48 = vunpack.c.h.bf16 %v884_v26 }
  0x5b   :  { %586 = vst.msk [vmem:[%s1528_s3 + $0x1b8] sm:$0xff] %vm530_vm0, %v521_v40  ;;  %v522_v50 = vmax.f32 %v458_v41, 0.0  ;;  %v459_v51 = vadd.f32 %v842_v25, %v267_v42  ;;  %v269_v52 = vadd.f32 %v950_v3, %v203_v43  ;;  %v850_v53 = vunpack.c.h.bf16 %v915_v35 }
  0x5c   :  { %v460_v54 = vadd.f32 %v845_v30, %v268_v45  ;;  %v270_v55 = vadd.f32 %v950_v3, %v204_v46  ;;  %v205_v56 = vmul.f32 %v945_v1, %v722_v48  ;;  %v725_v57 = vunpack.c.l.bf16 %v885_v44 }
  0x5d   :  { %587 = vst.msk [vmem:[%s1528_s3 + $0x1c0] sm:$0xff] %vm530_vm0, %v522_v50  ;;  %v523_v58 = vmax.f32 %v459_v51, 0.0  ;;  %v461_v59 = vadd.f32 %v846_v38, %v269_v52  ;;  %v853_v60 = vunpack.c.l.bf16 %v916_v49  ;;  %v726_v61 = vunpack.c.h.bf16 %v885_v44 }
  0x5e   :  { %v524_v62 = vmax.f32 %v460_v54, 0.0  ;;  %v462_v63 = vadd.f32 %v849_v47, %v270_v55  ;;  %v271_v0 = vadd.f32 %v950_v3, %v205_v56  ;;  %v206_v2 = vmul.f32 %v945_v1, %v725_v57 }
  0x5f   :  { %588 = vst.msk [vmem:[%s1528_s3 + $0x1c8] sm:$0xff] %vm530_vm0, %v523_v58  ;;  %v525_v4 = vmax.f32 %v461_v59, 0.0  ;;  %v207_v5 = vmul.f32 %v945_v1, %v726_v61  ;;  %v854_v6 = vunpack.c.h.bf16 %v916_v49 }
  0x60   :  { %589 = vst.msk [vmem:[%s1528_s3 + $0x1d0] sm:$0xff] %vm530_vm0, %v524_v62  ;;  %v526_v7 = vmax.f32 %v462_v63, 0.0  ;;  %v463_v8 = vadd.f32 %v850_v53, %v271_v0  ;;  %v272_v9 = vadd.f32 %v950_v3, %v206_v2 }
  0x61   :  { %590 = vst.msk [vmem:[%s1528_s3 + $0x1d8] sm:$0xff] %vm530_vm0, %v525_v4  ;;  %v273_v10 = vadd.f32 %v950_v3, %v207_v5 }
  0x62   :  { %591 = vst.msk [vmem:[%s1528_s3 + $0x1e0] sm:$0xff] %vm530_vm0, %v526_v7  ;;  %v527_v1 = vmax.f32 %v463_v8, 0.0  ;;  %v464_v11 = vadd.f32 %v853_v60, %v272_v9 }
  0x63   :  { %v465_v12 = vadd.f32 %v854_v6, %v273_v10 }
  0x64   :  { %592 = vst.msk [vmem:[%s1528_s3 + $0x1e8] sm:$0xff] %vm530_vm0, %v527_v1  ;;  %v528_v13 = vmax.f32 %v464_v11, 0.0 }
  0x65   :  { %v529_v14 = vmax.f32 %v465_v12, 0.0 }
  0x66   :  { %593 = vst.msk [vmem:[%s1528_s3 + $0x1f0] sm:$0xff] %vm530_vm0, %v528_v13 }
  0x67   :  { %594 = vst.msk [vmem:[%s1528_s3 + $0x1f8] sm:$0xff] %vm530_vm0, %v529_v14 }

// kernel: bottleneck_forward.5
= control target key start
LH: loop header
LB: loop body
LE: loop exit
PB: predicated region body
PF: predicated region fallthrough
CT: control target
= control target key end

     0   :  { %s2466_s15 = smov 0   ;;  %s3475_s0 = inlined_call_operand.vmem [shape: bf16[2,16,16,4], index: 0, kind: input, shape index: {}]   ;;  %s3476_s1 = inlined_call_operand.vmem [shape: f32[2,4], index: 1, kind: input, shape index: {}]   ;;  %s3477_s2 = inlined_call_operand.vmem [shape: bf16[36,4], index: 2, kind: input, shape index: {}]   ;;  %s3478_s3 = inlined_call_operand.vmem [shape: bf16[2,16,16,4], index: 3, kind: output, shape index: {0}]   ;;  %s3479_s4 = inlined_call_operand.vmem [shape: f32[2,2,4], index: 4, kind: output, shape index: {1}]  }
   0x1 LB: > { %s2186_s16 = sadd.s32 4294967295, %s2434_s15   ;;  %p2190_p0 = scmp.ge.s32.totalorder %s2434_s15, 1  ;;  %s2434_s15 = sphi %s2466_s15, %s15_s15  }
   0x2   : > { %p165_p1 = scmp.lt.s32.totalorder %s2434_s15, 3 }
   0x4   : > { %p166_p2 = pnand %p2190_p0, %p165_p1 }
   0x5   : > { %p195_p3 = scmp.lt.s32.totalorder (!%p166_p2), %s2186_s16, 1  ;;  %s2436_s25 = smov (!%p166_p2), 8  }
   0x6   : > { %169 = sbr.rel (%p166_p2) target bundleno = 590 (0x24e), region = 32  ;;  %s2437_s26 = smov (!%p166_p2), 4  }
   0x7   : > { %s2439_s5 = smov (!%p166_p2), 24   ;;  %s2440_s6 = smov (!%p166_p2), 12  }
   0xb   : > { %vm213_vm0 = vcmask 24576   ;;  %vm221_vm1 = vsmask.f32 256  ;;  %v238_v1 = vld [vmem:[#allocation2 + $0x48] sm:$0x1]  ;;  %s3489_s16 = smov (!%p195_p3, %s2186_s16), 1 }
   0xc   : > { %vm2476_vm2 = vmand %vm213_vm0, %vm221_vm1  ;;  %vm271_vm3 = vsmask.f32 7938  ;;  %v288_v2 = vld [vmem:[#allocation2 + $0x50] sm:$0x1]  ;;  %s2294_s17 = sshll.u32 %s3489_s16, 7  ;;  %vm210_vm5 = vcmask 27648  }
   0xd   : > { %v239_v3 = vsel %vm2476_vm2, 0, %v238_v1  ;;  %vm2486_vm4 = vmand %vm213_vm0, %vm271_vm3  ;;  %s2498_s20 = scalar_lea.vmem %s3475_s0, %s2294_s17  ;;  %v2503_v6 = vld [vmem:[%s3476_s1] ss:$0 sm:$0xff]  ;;  %v223_v7 = vld [vmem:[#allocation2 + $0xc] sm:$0x1]  ;;  %vm1404_vm9 = vcmask 1046528   ;;  %s3233_s18 = scalar_lea.vmem %s3478_s3, %s2294_s17 }
   0xe   : > { %240 = vst [vmem:[#allocation2 + $0x48] sm:$0x1] %v239_v3  ;;  %v289_v5 = vsel %vm2486_vm4, 0, %v288_v2  ;;  %v273_v8 = vld [vmem:[#allocation2 + $0x14] sm:$0x1]  ;;  %v2384_v9 = vld [vmem:[%s2498_s20 + $0x28] sm:$0xff]   ;;  %vm2544_vm7 = vmand %vm210_vm5, %vm271_vm3 }
   0xf   : > { %290 = vst [vmem:[#allocation2 + $0x50] sm:$0x1] %v289_v5  ;;  %v2509_v10 = vld [vmem:[%s3476_s1 + $0x1] ss:$0 sm:$0xff]  ;;  %v224_v11 = vsel %vm2476_vm2, 0, %v223_v7  ;;  %v274_v12 = vsel %vm2486_vm4, 0, %v273_v8  ;;  %v2338_v14 = vunpack.c.l.bf16 %v2384_v9  ;;  %v2339_v15 = vunpack.c.h.bf16 %v2384_v9 }
  0x10   : > { %v2317_v13 = vld [vmem:[%s2498_s20] sm:$0xff]   ;;  %225 = vst [vmem:[#allocation2 + $0xc] sm:$0x1] %v224_v11  ;;  %v247_v18 = vld [vmem:[#allocation2 + $0x6c] sm:$0x1]  ;;  %vm1495_vm11 = vcmask 31744  }
  0x11   : > { %v2318_v16 = vunpack.c.l.bf16 %v2317_v13  ;;  %v2319_v17 = vunpack.c.h.bf16 %v2317_v13  ;;  %v297_v19 = vld [vmem:[#allocation2 + $0x74] sm:$0x1]  ;;  %275 = vst [vmem:[#allocation2 + $0x14] sm:$0x1] %v274_v12  ;;  %v248_v20 = vsel %vm2476_vm2, 0, %v247_v18  ;;  %v2387_v22 = vld [vmem:[%s2498_s20 + $0x40] sm:$0xff]   ;;  %v398_v24 = vmul.f32 %v2503_v6, %v2338_v14 }
  0x12   : > { %v298_v21 = vsel %vm2486_vm4, 0, %v297_v19  ;;  %v2380_v23 = vld [vmem:[%s2498_s20 + $0x8] sm:$0xff]   ;;  %v399_v25 = vmul.f32 %v2503_v6, %v2339_v15  ;;  %vm517_vm6 = vsmask.f32 4368  ;;  %249 = vst [vmem:[#allocation2 + $0x6c] sm:$0x1] %v248_v20  ;;  %v2350_v30 = vunpack.c.l.bf16 %v2387_v22 }
  0x13   : > { %v388_v26 = vmul.f32 %v2503_v6, %v2318_v16  ;;  %v389_v27 = vmul.f32 %v2503_v6, %v2319_v17  ;;  %v226_v28 = vld [vmem:[#allocation2 + $0x18] sm:$0x1]  ;;  %v276_v29 = vld [vmem:[#allocation2 + $0x20] sm:$0x1]  ;;  %299 = vst [vmem:[#allocation2 + $0x74] sm:$0x1] %v298_v21  ;;  %v2351_v31 = vunpack.c.h.bf16 %v2387_v22  ;;  %v431_v34 = vadd.f32 %v2509_v10, %v398_v24  ;;  %vm2550_vm8 = vmor %vm221_vm1, %vm517_vm6 }
  0x14   : > { %v227_v32 = vsel %vm2476_vm2, 0, %v226_v28  ;;  %v277_v33 = vsel %vm2486_vm4, 0, %v276_v29  ;;  %v432_v35 = vadd.f32 %v2509_v10, %v399_v25  ;;  %v404_v38 = vmul.f32 %v2503_v6, %v2350_v30  ;;  %s2195_s17 = sshll.u32 %s3489_s16, 1 }
  0x15   : > { %v421_v36 = vadd.f32 %v2509_v10, %v388_v26  ;;  %v422_v37 = vadd.f32 %v2509_v10, %v389_v27  ;;  %228 = vst [vmem:[#allocation2 + $0x18] sm:$0x1] %v227_v32  ;;  %v405_v39 = vmul.f32 %v2503_v6, %v2351_v31  ;;  %v2322_v40 = vunpack.c.l.bf16 %v2380_v23  ;;  %v876_v8 = vld [vmem:[#allocation2 + $0x48] sm:$0xf]  ;;  %v229_v32 = vld [vmem:[#allocation2 + $0x24] sm:$0x1]  ;;  %s208_s21 = scalar_lea.vmem %s3479_s4, %s2195_s17 }
  0x16   : > { %278 = vst [vmem:[#allocation2 + $0x20] sm:$0x1] %v277_v33  ;;  %v2323_v41 = vunpack.c.h.bf16 %v2380_v23  ;;  %v463_v42 = vmax.f32 %v431_v34, 0.0  ;;  %v464_v43 = vmax.f32 %v432_v35, 0.0  ;;  %v437_v46 = vadd.f32 %v2509_v10, %v404_v38  ;;  %v880_v13 = vld [vmem:[#allocation2 + $0x50] sm:$0x1] }
  0x17   : > { %v453_v44 = vmax.f32 %v421_v36, 0.0  ;;  %v454_v45 = vmax.f32 %v422_v37, 0.0  ;;  %v438_v47 = vadd.f32 %v2509_v10, %v405_v39  ;;  %v390_v48 = vmul.f32 %v2503_v6, %v2322_v40  ;;  %v841_v22 = vld [vmem:[#allocation2 + $0xc] sm:$0xf] }
  0x18   : > { %v391_v49 = vmul.f32 %v2503_v6, %v2323_v41  ;;  %v495_v50 = vpack.c.bf16 %v463_v42, %v463_v42  ;;  %v496_v51 = vpack.c.bf16 %v464_v43, %v464_v43  ;;  %v469_v54 = vmax.f32 %v437_v46, 0.0  ;;  %v845_v30 = vld [vmem:[#allocation2 + $0x14] sm:$0x1]  ;;  %v2565_v41 = vld [vmem:[#allocation2 + $0x2c] sm:$0x1] }
  0x19   : > { %v485_v52 = vpack.c.bf16 %v453_v44, %v453_v44  ;;  %v486_v53 = vpack.c.bf16 %v454_v45, %v454_v45  ;;  %v470_v55 = vmax.f32 %v438_v47, 0.0  ;;  %v423_v56 = vadd.f32 %v2509_v10, %v390_v48  ;;  %v897_v36 = vld [vmem:[#allocation2 + $0x6c] sm:$0xf]  ;;  %v2381_v42 = vld [vmem:[%s2498_s20 + $0x10] sm:$0xff]  }
  0x1a   : > { %v424_v57 = vadd.f32 %v2509_v10, %v391_v49  ;;  %v605_v58 = vshrl.u32 %v495_v50, 16  ;;  %v608_v59 = vshll.u32 %v495_v50, 16  ;;  %v613_v60 = vshrl.u32 %v496_v51, 16  ;;  %v901_v44 = vld [vmem:[#allocation2 + $0x74] sm:$0x1] }
  0x1b   : > { %v616_v61 = vshll.u32 %v496_v51, 16  ;;  %v520_v62 = vshrl.u32 %v485_v52, 16  ;;  %v523_v63 = vshll.u32 %v485_v52, 16  ;;  %v528_v1 = vshrl.u32 %v486_v53, 16 }
  0x1c   : > { %v531_v2 = vshll.u32 %v486_v53, 16  ;;  %v607_v3 = vrot.slane %v605_v58, 7  ;;  %v615_v5 = vrot.slane %v613_v60, 7  ;;  %v501_v9 = vpack.c.bf16 %v469_v54, %v469_v54 }
  0x1d   : > { %v502_v11 = vpack.c.bf16 %v470_v55, %v470_v55  ;;  %v522_v14 = vrot.slane %v520_v62, 7  ;;  %v530_v15 = vrot.slane %v528_v1, 7  ;;  %v455_v16 = vmax.f32 %v423_v56, 0.0  ;;  %v235_v56 = vld [vmem:[#allocation2 + $0x3c] sm:$0x1] }
  0x1e   : > { %v456_v17 = vmax.f32 %v424_v57, 0.0  ;;  %v610_v18 = vor.u32 %v608_v59, %v607_v3  ;;  %v611_v19 = vrot.slane %v607_v3, 4  ;;  %v618_v20 = vor.u32 %v616_v61, %v615_v5  ;;  %v2383_v57 = vld [vmem:[%s2498_s20 + $0x20] sm:$0xff]   ;;  %v848_v1 = vld [vmem:[#allocation2 + $0x18] sm:$0xf] }
  0x1f   : > { %v620_v21 = vrot.slane %v615_v5, 4  ;;  %v525_v23 = vor.u32 %v523_v63, %v522_v14  ;;  %v526_v24 = vrot.slane %v522_v14, 4  ;;  %v533_v25 = vor.u32 %v531_v2, %v530_v15  ;;  %v285_v62 = vld [vmem:[#allocation2 + $0x44] sm:$0x1]  ;;  %v852_v14 = vld [vmem:[#allocation2 + $0x20] sm:$0x1] }
  0x20   : > { %v535_v26 = vrot.slane %v530_v15, 4  ;;  %v619_v27 = vsel %vm2550_vm8, %v611_v19, %v618_v20  ;;  %v877_v28 = vsel %vm2544_vm7, %v610_v18, %v876_v8  ;;  %v656_v31 = vshrl.u32 %v501_v9, 16 }
  0x21   : > { %v881_v29 = vsel %vm2476_vm2, %v620_v21, %v880_v13  ;;  %878 = vst [vmem:[#allocation2 + $0x48] sm:$0xf] %v877_v28  ;;  %v534_v33 = vsel %vm2550_vm8, %v526_v24, %v533_v25  ;;  %v842_v34 = vsel %vm2544_vm7, %v525_v23, %v841_v22  ;;  %v659_v35 = vshll.u32 %v501_v9, 16  ;;  %v2595_v25 = vld [vmem:[%s2498_s20 + $0x30] sm:$0xff]  }
  0x22   : > { %879 = vst.msk [vmem:[#allocation2 + $0x4c] sm:$0xf] %vm210_vm5, %v619_v27  ;;  %v658_v37 = vrot.slane %v656_v31, 7  ;;  %v664_v38 = vshrl.u32 %v502_v11, 16  ;;  %v667_v39 = vshll.u32 %v502_v11, 16  ;;  %v487_v40 = vpack.c.bf16 %v455_v16, %v455_v16 }
  0x23   : > { %882 = vst [vmem:[#allocation2 + $0x50] sm:$0x1] %v881_v29  ;;  %v846_v43 = vsel %vm2476_vm2, %v535_v26, %v845_v30  ;;  %v488_v45 = vpack.c.bf16 %v456_v17, %v456_v17  ;;  %v230_v46 = vsel %vm2476_vm2, 0, %v229_v32  ;;  %v2326_v47 = vunpack.c.l.bf16 %v2381_v42 }
  0x24   : > { %843 = vst [vmem:[#allocation2 + $0xc] sm:$0xf] %v842_v34  ;;  %v661_v48 = vor.u32 %v659_v35, %v658_v37  ;;  %v662_v49 = vrot.slane %v658_v37, 4  ;;  %v666_v50 = vrot.slane %v664_v38, 7  ;;  %v537_v51 = vshrl.u32 %v487_v40, 16 }
  0x25   : > { %844 = vst.msk [vmem:[#allocation2 + $0x10] sm:$0xf] %vm210_vm5, %v534_v33  ;;  %v540_v52 = vshll.u32 %v487_v40, 16  ;;  %v545_v53 = vshrl.u32 %v488_v45, 16  ;;  %v548_v54 = vshll.u32 %v488_v45, 16  ;;  %v2327_v55 = vunpack.c.h.bf16 %v2381_v42 }
  0x26   : > { %847 = vst [vmem:[#allocation2 + $0x14] sm:$0x1] %v846_v43  ;;  %v669_v58 = vor.u32 %v667_v39, %v666_v50  ;;  %v671_v59 = vrot.slane %v666_v50, 4  ;;  %v898_v60 = vsel %vm2544_vm7, %v661_v48, %v897_v36  ;;  %v539_v61 = vrot.slane %v537_v51, 7 }
  0x27   : > { %899 = vst [vmem:[#allocation2 + $0x6c] sm:$0xf] %v898_v60  ;;  %v547_v63 = vrot.slane %v545_v53, 7  ;;  %v280_v2 = vsel %vm2486_vm4, 0, %v2565_v41  ;;  %v392_v3 = vmul.f32 %v2503_v6, %v2326_v47  ;;  %v393_v5 = vmul.f32 %v2503_v6, %v2327_v55 }
  0x28   : > { %v670_v8 = vsel %vm2550_vm8, %v662_v49, %v669_v58  ;;  %v902_v9 = vsel %vm2476_vm2, %v671_v59, %v901_v44  ;;  %v542_v11 = vor.u32 %v540_v52, %v539_v61  ;;  %v543_v13 = vrot.slane %v539_v61, 4  ;;  %231 = vst [vmem:[#allocation2 + $0x24] sm:$0x1] %v230_v46 }
  0x29   : > { %v2585_v15 = vld [vmem:[#allocation2 + $0x48] sm:$0xff]  ;;  %900 = vst.msk [vmem:[#allocation2 + $0x70] sm:$0xf] %vm210_vm5, %v670_v8  ;;  %v550_v16 = vor.u32 %v548_v54, %v547_v63  ;;  %v552_v17 = vrot.slane %v547_v63, 4  ;;  %v425_v18 = vadd.f32 %v2509_v10, %v392_v3  ;;  %v426_v19 = vadd.f32 %v2509_v10, %v393_v5 }
  0x2a   : > { %v973_v20 = vld [vmem:[#allocation2 + $0x50] sm:$0x1]  ;;  %903 = vst [vmem:[#allocation2 + $0x74] sm:$0x1] %v902_v9  ;;  %v849_v21 = vsel %vm2544_vm7, %v542_v11, %v848_v1  ;;  %v236_v22 = vsel %vm2476_vm2, 0, %v235_v56  ;;  %v2334_v23 = vunpack.c.l.bf16 %v2383_v57  ;;  %v2335_v24 = vunpack.c.h.bf16 %v2383_v57 }
  0x2b   : > { %v1121_v26 = vunpack.c.l.b16 %v973_v20  ;;  %v551_v27 = vsel %vm2550_vm8, %v543_v13, %v550_v16  ;;  %850 = vst [vmem:[#allocation2 + $0x18] sm:$0xf] %v849_v21  ;;  %v853_v28 = vsel %vm2476_vm2, %v552_v17, %v852_v14  ;;  %v286_v29 = vsel %vm2486_vm4, 0, %v285_v62  ;;  %v291_v21 = vld [vmem:[#allocation2 + $0x5c] sm:$0x1] }
  0x2c   : > { %v2603_v30 = vld [vmem:[#allocation2 + $0xc] sm:$0xff]  ;;  %851 = vst.msk [vmem:[#allocation2 + $0x1c] sm:$0xf] %vm210_vm5, %v551_v27  ;;  %v457_v31 = vmax.f32 %v425_v18, 0.0  ;;  %v458_v32 = vmax.f32 %v426_v19, 0.0  ;;  %v396_v33 = vmul.f32 %v2503_v6, %v2334_v23  ;;  %v397_v34 = vmul.f32 %v2503_v6, %v2335_v24 }
  0x2d   : > { %v2608_v35 = vpack.c.b16 %v1121_v26, %v1121_v26  ;;  %v1423_v36 = vrot.slane %v2585_v15, 1  ;;  %v958_v37 = vld [vmem:[#allocation2 + $0x14] sm:$0x1]  ;;  %854 = vst [vmem:[#allocation2 + $0x20] sm:$0x1] %v853_v28  ;;  %v2342_v38 = vunpack.c.l.bf16 %v2595_v25  ;;  %v2343_v39 = vunpack.c.h.bf16 %v2595_v25 }
  0x2e   : > { %v1116_v40 = vunpack.c.l.b16 %v958_v37  ;;  %v1408_v41 = vrot.slane %v2603_v30, 1  ;;  %281 = vst [vmem:[#allocation2 + $0x2c] sm:$0x1] %v280_v2  ;;  %v489_v42 = vpack.c.bf16 %v457_v31, %v457_v31  ;;  %v490_v43 = vpack.c.bf16 %v458_v32, %v458_v32  ;;  %v241_v27 = vld [vmem:[#allocation2 + $0x54] sm:$0x1] }
  0x2f   : > { %v1424_v44 = vrot.slane %v2608_v35, 1  ;;  %237 = vst [vmem:[#allocation2 + $0x3c] sm:$0x1] %v236_v22  ;;  %v429_v45 = vadd.f32 %v2509_v10, %v396_v33  ;;  %v430_v46 = vadd.f32 %v2509_v10, %v397_v34  ;;  %v1165_v47 = vshrl.u32 %v2603_v30, 16  ;;  %v855_v1 = vld [vmem:[#allocation2 + $0x24] sm:$0xf] }
  0x30   : > { %v2618_v48 = vpack.c.b16 %v1116_v40, %v1116_v40  ;;  %v2620_v49 = vld [vmem:[#allocation2 + $0x6c] sm:$0xff]  ;;  %v554_v50 = vshrl.u32 %v489_v42, 16  ;;  %v557_v51 = vshll.u32 %v489_v42, 16  ;;  %v562_v52 = vshrl.u32 %v490_v43, 16  ;;  %287 = vst [vmem:[#allocation2 + $0x44] sm:$0x1] %v286_v29 }
  0x31   : > { %v1425_v53 = vsel %vm1404_vm9, %v1423_v36, %v1424_v44  ;;  %v982_v54 = vld [vmem:[#allocation2 + $0x74] sm:$0x1]  ;;  %v565_v55 = vshll.u32 %v490_v43, 16  ;;  %v461_v56 = vmax.f32 %v429_v45, 0.0  ;;  %v462_v57 = vmax.f32 %v430_v46, 0.0 }
  0x32   : > { %1471 = vrot.lane.b32.xlu0 %v1425_v53, %s2436_s25  ;;  %v1409_v58 = vrot.slane %v2618_v48, 1  ;;  %v1124_v59 = vunpack.c.l.b16 %v982_v54  ;;  %v1432_v60 = vrot.slane %v2620_v49, 1  ;;  %v556_v61 = vrot.slane %v554_v50, 7  ;;  %v250_v34 = vld [vmem:[#allocation2 + $0x78] sm:$0x1] }
  0x33   : > { %vm1151_vm10 = vsmask.f32 7424  ;;  %v2626_v62 = vld [vmem:[#allocation2 + $0x18] sm:$0xff]  ;;  %v564_v63 = vrot.slane %v562_v52, 7  ;;  %v493_v2 = vpack.c.bf16 %v461_v56, %v461_v56  ;;  %v494_v3 = vpack.c.bf16 %v462_v57, %v462_v57  ;;  %v300_v42 = vld [vmem:[#allocation2 + $0x80] sm:$0x1] }
  0x34   : > { %v1167_v5 = vshll.u32 %v2603_v30, 16  ;;  %v1410_v8 = vsel %vm1404_vm9, %v1408_v41, %v1409_v58  ;;  %v2630_v9 = vpack.c.b16 %v1124_v59, %v1124_v59  ;;  %v961_v11 = vld [vmem:[#allocation2 + $0x20] sm:$0x1]  ;;  %v559_v13 = vor.u32 %v557_v51, %v556_v61  ;;  %v2388_v58 = vld [vmem:[%s2498_s20 + $0x48] sm:$0xff]  }
  0x35   : > { %v560_v14 = vrot.slane %v556_v61, 4  ;;  %1461 = vrot.lane.b32.xlu1 %v1410_v8, %s2436_s25  ;;  %v1117_v16 = vunpack.c.l.b16 %v961_v11  ;;  %v1411_v17 = vrot.slane %v2626_v62, 1  ;;  %v567_v18 = vor.u32 %v565_v55, %v564_v63  ;;  %v859_v20 = vld [vmem:[#allocation2 + $0x2c] sm:$0x1]  ;;  %v2678_v8 = vld [vmem:[%s2498_s20 + $0x18] sm:$0xff]  }
  0x36   : > { %v569_v19 = vrot.slane %v564_v63, 4  ;;  %v1433_v22 = vrot.slane %v2630_v9, 1  ;;  %v856_v23 = vsel %vm2544_vm7, %v559_v13, %v855_v1  ;;  %v588_v24 = vshrl.u32 %v493_v2, 16  ;;  %v869_v33 = vld [vmem:[#allocation2 + $0x3c] sm:$0xf] }
  0x37   : > { %v591_v26 = vshll.u32 %v493_v2, 16  ;;  %v2637_v28 = vpack.c.b16 %v1117_v16, %v1117_v16  ;;  %v568_v29 = vsel %vm2550_vm8, %v560_v14, %v567_v18  ;;  %857 = vst [vmem:[#allocation2 + $0x24] sm:$0xf] %v856_v23  ;;  %v596_v32 = vshrl.u32 %v494_v3, 16  ;;  %v873_v52 = vld [vmem:[#allocation2 + $0x44] sm:$0x1] }
  0x38   : > { %v860_v31 = vsel %vm2476_vm2, %v569_v19, %v859_v20  ;;  %v1434_v36 = vsel %vm1404_vm9, %v1432_v60, %v1433_v22  ;;  %858 = vst.msk [vmem:[#allocation2 + $0x28] sm:$0xf] %vm210_vm5, %v568_v29  ;;  %v590_v37 = vrot.slane %v588_v24, 7  ;;  %v599_v40 = vshll.u32 %v494_v3, 16 }
  0x39   : > { %v1169_v41 = vrot.slane %v1167_v5, 1  ;;  %v1412_v43 = vrot.slane %v2637_v28, 1  ;;  %861 = vst [vmem:[#allocation2 + $0x2c] sm:$0x1] %v860_v31  ;;  %v598_v44 = vrot.slane %v596_v32, 7  ;;  %v1172_v45 = vshll.u32 %v2618_v48, 16 }
  0x3a   : > { %v242_v46 = vsel %vm2476_vm2, 0, %v241_v27  ;;  %1477 = vrot.lane.b32.xlu0 %v1434_v36, %s2436_s25  ;;  %v593_v50 = vor.u32 %v591_v26, %v590_v37  ;;  %v594_v51 = vrot.slane %v590_v37, 4  ;;  %v292_v54 = vsel %vm2486_vm4, 0, %v291_v21  ;;  %v232_v5 = vld [vmem:[#allocation2 + $0x30] sm:$0x1] }
  0x3b   : > { %v1170_v53 = vor.u32 %v1169_v41, %v1165_v47  ;;  %243 = vst [vmem:[#allocation2 + $0x54] sm:$0x1] %v242_v46  ;;  %v1413_v55 = vsel %vm1404_vm9, %v1411_v17, %v1412_v43  ;;  %v601_v56 = vor.u32 %v599_v40, %v598_v44  ;;  %v603_v57 = vrot.slane %v598_v44, 4  ;;  %v282_v37 = vld [vmem:[#allocation2 + $0x38] sm:$0x1] }
  0x3c   : > { %v1174_v48 = vrot.slane %v1172_v45, 1  ;;  %293 = vst [vmem:[#allocation2 + $0x5c] sm:$0x1] %v292_v54  ;;  %v870_v59 = vsel %vm2544_vm7, %v593_v50, %v869_v33  ;;  %v400_v30 = vmul.f32 %v2503_v6, %v2342_v38  ;;  %v401_v47 = vmul.f32 %v2503_v6, %v2343_v39 }
  0x3d   : > { %v251_v60 = vsel %vm2476_vm2, 0, %v250_v34  ;;  %1463 = vrot.lane.b32.xlu1 %v1413_v55, %s2436_s25  ;;  %v602_v61 = vsel %vm2550_vm8, %v594_v51, %v601_v56  ;;  %871 = vst [vmem:[#allocation2 + $0x3c] sm:$0xf] %v870_v59  ;;  %v874_v63 = vsel %vm2476_vm2, %v603_v57, %v873_v52  ;;  %v301_v38 = vsel %vm2486_vm4, 0, %v300_v42 }
  0x3e   : > { %v1175_v1 = vsel %vm1151_vm10, %v1170_v53, %v1174_v48  ;;  %872 = vst.msk [vmem:[#allocation2 + $0x40] sm:$0xf] %vm210_vm5, %v602_v61  ;;  %v433_v25 = vadd.f32 %v2509_v10, %v400_v30  ;;  %v434_v39 = vadd.f32 %v2509_v10, %v401_v47  ;;  %v2354_v2 = vunpack.c.l.bf16 %v2388_v58 }
  0x3f   : > { %v2355_v3 = vunpack.c.h.bf16 %v2388_v58  ;;  %v2680_v11 = vld [vmem:[#allocation2 + $0x24] sm:$0xff]  ;;  %875 = vst [vmem:[#allocation2 + $0x44] sm:$0x1] %v874_v63  ;;  %v1177_v13 = vshrl.u32 %v2626_v62, 16  ;;  %v1179_v14 = vshll.u32 %v2626_v62, 16  ;;  %v1184_v16 = vshll.u32 %v2637_v28, 16 }
  0x40   : > { %v2330_v17 = vunpack.c.l.bf16 %v2678_v8  ;;  %v964_v18 = vld [vmem:[#allocation2 + $0x2c] sm:$0x1]  ;;  %v465_v19 = vmax.f32 %v433_v25, 0.0  ;;  %v466_v20 = vmax.f32 %v434_v39, 0.0  ;;  %252 = vst [vmem:[#allocation2 + $0x78] sm:$0x1] %v251_v60  ;;  %v406_v21 = vmul.f32 %v2503_v6, %v2354_v2 }
  0x41   : > { %v407_v22 = vmul.f32 %v2503_v6, %v2355_v3  ;;  %v1118_v23 = vunpack.c.l.b16 %v964_v18  ;;  %v1414_v24 = vrot.slane %v2680_v11, 1  ;;  %302 = vst [vmem:[#allocation2 + $0x80] sm:$0x1] %v301_v38  ;;  %v1181_v26 = vrot.slane %v1179_v14, 1 }
  0x42   : > { %v2331_v27 = vunpack.c.h.bf16 %v2678_v8  ;;  %1370 = vrot.lane.b32.xlu0 %v1175_v1, %s2437_s26  ;;  %v497_v62 = vpack.c.bf16 %v465_v19, %v465_v19  ;;  %v498_v28 = vpack.c.bf16 %v466_v20, %v466_v20  ;;  %v439_v29 = vadd.f32 %v2509_v10, %v406_v21  ;;  %v883_v46 = vld [vmem:[#allocation2 + $0x54] sm:$0xf] }
  0x43   : > { %v440_v31 = vadd.f32 %v2509_v10, %v407_v22  ;;  %v2693_v32 = vpack.c.b16 %v1118_v23, %v1118_v23  ;;  %v1182_v33 = vor.u32 %v1181_v26, %v1177_v13  ;;  %v1186_v34 = vrot.slane %v1184_v16, 1  ;;  %v887_v30 = vld [vmem:[#allocation2 + $0x5c] sm:$0x1] }
  0x44   : > { %v233_v36 = vsel %vm2476_vm2, 0, %v232_v5  ;;  %v622_v40 = vshrl.u32 %v497_v62, 16  ;;  %v625_v41 = vshll.u32 %v497_v62, 16  ;;  %v630_v42 = vshrl.u32 %v498_v28, 16 }
  0x45   : > { %v633_v43 = vshll.u32 %v498_v28, 16  ;;  %234 = vst [vmem:[#allocation2 + $0x30] sm:$0x1] %v233_v36  ;;  %v1415_v44 = vrot.slane %v2693_v32, 1  ;;  %v2301_v45 = vld [vmem:[#allocation2 + $0x3c] sm:$0xff]  ;;  %v471_v50 = vmax.f32 %v439_v29, 0.0  ;;  %v1187_v52 = vsel %vm1151_vm10, %v1182_v33, %v1186_v34 }
  0x46   : > { %v472_v51 = vmax.f32 %v440_v31, 0.0  ;;  %v970_v53 = vld [vmem:[#allocation2 + $0x44] sm:$0x1]  ;;  %v624_v54 = vrot.slane %v622_v40, 7  ;;  %v632_v55 = vrot.slane %v630_v42, 7  ;;  %v283_v56 = vsel %vm2486_vm4, 0, %v282_v37 }
  0x47   : > { %v394_v57 = vmul.f32 %v2503_v6, %v2330_v17  ;;  %v1416_v48 = vsel %vm1404_vm9, %v1414_v24, %v1415_v44  ;;  %v1120_v58 = vunpack.c.l.b16 %v970_v53  ;;  %v1420_v59 = vrot.slane %v2301_v45, 1  ;;  %284 = vst [vmem:[#allocation2 + $0x38] sm:$0x1] %v283_v56  ;;  %v904_v19 = vld [vmem:[#allocation2 + $0x78] sm:$0xf] }
  0x48   : > { %v503_v47 = vpack.c.bf16 %v471_v50, %v471_v50  ;;  %1465 = vrot.lane.b32.xlu2 %v1416_v48, %s2436_s25  ;;  %v627_v60 = vor.u32 %v625_v41, %v624_v54  ;;  %v628_v61 = vrot.slane %v624_v54, 4  ;;  %v635_v63 = vor.u32 %v633_v43, %v632_v55  ;;  %v908_v29 = vld [vmem:[#allocation2 + $0x80] sm:$0x1] }
  0x49   : > { %v637_v1 = vrot.slane %v632_v55, 4  ;;  %v1138_v38 = vpack.c.b16 %v1120_v58, %v1120_v58  ;;  %v504_v25 = vpack.c.bf16 %v472_v51, %v472_v51  ;;  %v1213_v13 = vshrl.u32 %v2301_v45, 16 }
  0x4a   : > { %v673_v39 = vshrl.u32 %v503_v47, 16  ;;  %v676_v2 = vshll.u32 %v503_v47, 16  ;;  %v636_v3 = vsel %vm2550_vm8, %v628_v61, %v635_v63  ;;  %v884_v5 = vsel %vm2544_vm7, %v627_v60, %v883_v46  ;;  %1372 = vrot.lane.b32.xlu0 %v1187_v52, %s2437_s26 }
  0x4b   : > { %v888_v8 = vsel %vm2476_vm2, %v637_v1, %v887_v30  ;;  %v1421_v14 = vrot.slane %v1138_v38, 1  ;;  %885 = vst [vmem:[#allocation2 + $0x54] sm:$0xf] %v884_v5  ;;  %v681_v17 = vshrl.u32 %v504_v25, 16  ;;  %v684_v18 = vshll.u32 %v504_v25, 16 }
  0x4c   : > { %v675_v16 = vrot.slane %v673_v39, 7  ;;  %886 = vst.msk [vmem:[#allocation2 + $0x58] sm:$0xf] %vm210_vm5, %v636_v3  ;;  %v1215_v20 = vshll.u32 %v2301_v45, 16  ;;  %v1220_v21 = vshll.u32 %v1138_v38, 16  ;;  %v395_v22 = vmul.f32 %v2503_v6, %v2331_v27 }
  0x4d   : > { %v427_v23 = vadd.f32 %v2509_v10, %v394_v57  ;;  %v1422_v24 = vsel %vm1404_vm9, %v1420_v59, %v1421_v14  ;;  %889 = vst [vmem:[#allocation2 + $0x5c] sm:$0x1] %v888_v8  ;;  %v683_v28 = vrot.slane %v681_v17, 7  ;;  %v1227_v44 = vshll.u32 %v2585_v15, 16  ;;  %v862_v1 = vld [vmem:[#allocation2 + $0x30] sm:$0xf] }
  0x4e   : > { %v678_v26 = vor.u32 %v676_v2, %v675_v16  ;;  %v679_v62 = vrot.slane %v675_v16, 4  ;;  %1469 = vrot.lane.b32.xlu1 %v1422_v24, %s2436_s25  ;;  %v1217_v31 = vrot.slane %v1215_v20, 1  ;;  %v428_v33 = vadd.f32 %v2509_v10, %v395_v22  ;;  %v2391_v8 = vld [vmem:[%s2498_s20 + $0x60] sm:$0xff]   ;;  %v866_v14 = vld [vmem:[#allocation2 + $0x38] sm:$0x1] }
  0x4f   : > { %v459_v34 = vmax.f32 %v427_v23, 0.0  ;;  %v686_v36 = vor.u32 %v684_v18, %v683_v28  ;;  %v688_v37 = vrot.slane %v683_v28, 4  ;;  %v1222_v40 = vrot.slane %v1220_v21, 1 }
  0x50   : > { %v905_v27 = vsel %vm2544_vm7, %v678_v26, %v904_v19  ;;  %v1218_v41 = vor.u32 %v1217_v31, %v1213_v13  ;;  %v460_v42 = vmax.f32 %v428_v33, 0.0  ;;  %v1225_v50 = vshrl.u32 %v2585_v15, 16 }
  0x51   : > { %906 = vst [vmem:[#allocation2 + $0x78] sm:$0xf] %v905_v27  ;;  %v491_v43 = vpack.c.bf16 %v459_v34, %v459_v34  ;;  %v687_v45 = vsel %vm2550_vm8, %v679_v62, %v686_v36  ;;  %v909_v46 = vsel %vm2476_vm2, %v688_v37, %v908_v29  ;;  %v1232_v51 = vshll.u32 %v2608_v35, 16  ;;  %v259_v34 = vld [vmem:[#allocation2 + $0x9c] sm:$0x1] }
  0x52   : > { %907 = vst.msk [vmem:[#allocation2 + $0x7c] sm:$0xf] %vm210_vm5, %v687_v45  ;;  %v492_v52 = vpack.c.bf16 %v460_v42, %v460_v42  ;;  %v1189_v55 = vshrl.u32 %v2680_v11, 16  ;;  %v2729_v57 = vsel %vm1151_vm10, %v1218_v41, %v1222_v40  ;;  %v1229_v48 = vrot.slane %v1227_v44, 1  ;;  %v309_v27 = vld [vmem:[#allocation2 + $0xa4] sm:$0x1] }
  0x53   : > { %v571_v53 = vshrl.u32 %v491_v43, 16  ;;  %v574_v54 = vshll.u32 %v491_v43, 16  ;;  %v2303_v56 = vld [vmem:[#allocation2 + $0x54] sm:$0xff]  ;;  %910 = vst [vmem:[#allocation2 + $0x80] sm:$0x1] %v909_v46  ;;  %v1234_v58 = vrot.slane %v1232_v51, 1  ;;  %v2366_v26 = vunpack.c.l.bf16 %v2391_v8 }
  0x54   : > { %v1191_v59 = vshll.u32 %v2680_v11, 16  ;;  %v976_v15 = vld [vmem:[#allocation2 + $0x5c] sm:$0x1]  ;;  %v579_v35 = vshrl.u32 %v492_v52, 16  ;;  %v582_v47 = vshll.u32 %v492_v52, 16  ;;  %v1196_v60 = vshll.u32 %v2693_v32, 16 }
  0x55   : > { %v573_v30 = vrot.slane %v571_v53, 7  ;;  %v1122_v61 = vunpack.c.l.b16 %v976_v15  ;;  %v1426_v63 = vrot.slane %v2303_v56, 1  ;;  %v1230_v38 = vor.u32 %v1229_v48, %v1225_v50  ;;  %v262_v51 = vld [vmem:[#allocation2 + $0xa8] sm:$0x1] }
  0x56   : > { %v1193_v25 = vrot.slane %v1191_v59, 1  ;;  %v581_v3 = vrot.slane %v579_v35, 7  ;;  %v1198_v5 = vrot.slane %v1196_v60, 1  ;;  %v1261_v17 = vshrl.u32 %v2620_v49, 16 }
  0x57   : > { %v576_v39 = vor.u32 %v574_v54, %v573_v30  ;;  %v577_v2 = vrot.slane %v573_v30, 4  ;;  %v1140_v13 = vpack.c.b16 %v1122_v61, %v1122_v61  ;;  %v1235_v11 = vsel %vm1151_vm10, %v1230_v38, %v1234_v58  ;;  %v2392_v30 = vld [vmem:[%s2498_s20 + $0x68] sm:$0xff]  }
  0x58   : > { %v1194_v16 = vor.u32 %v1193_v25, %v1189_v55  ;;  %v584_v18 = vor.u32 %v582_v47, %v581_v3  ;;  %v586_v19 = vrot.slane %v581_v3, 4  ;;  %1380 = vrot.lane.b32.xlu0 %v1235_v11, %s2437_s26  ;;  %v1263_v20 = vshll.u32 %v2620_v49, 16 }
  0x59   : > { %v863_v32 = vsel %vm2544_vm7, %v576_v39, %v862_v1  ;;  %v1427_v21 = vrot.slane %v1140_v13, 1  ;;  %v2740_v22 = vld [vmem:[#allocation2 + $0x78] sm:$0xff]  ;;  %v1268_v23 = vshll.u32 %v2630_v9, 16  ;;  %v1237_v24 = vshrl.u32 %v2303_v56, 16 }
  0x5a   : > { %864 = vst [vmem:[#allocation2 + $0x30] sm:$0xf] %v863_v32  ;;  %v985_v62 = vld [vmem:[#allocation2 + $0x80] sm:$0x1]  ;;  %v585_v28 = vsel %vm2550_vm8, %v577_v2, %v584_v18  ;;  %v867_v29 = vsel %vm2476_vm2, %v586_v19, %v866_v14  ;;  %v1265_v31 = vrot.slane %v1263_v20, 1  ;;  %v1239_v33 = vshll.u32 %v2303_v56, 16 }
  0x5b   : > { %v1428_v49 = vsel %vm1404_vm9, %v1426_v63, %v1427_v21  ;;  %v1125_v36 = vunpack.c.l.b16 %v985_v62  ;;  %v1435_v37 = vrot.slane %v2740_v22, 1  ;;  %865 = vst.msk [vmem:[#allocation2 + $0x34] sm:$0xf] %vm210_vm5, %v585_v28  ;;  %v2751_v9 = vsel %vm1151_vm10, %v1194_v16, %v1198_v5  ;;  %v312_v56 = vld [vmem:[#allocation2 + $0xb0] sm:$0x1]  ;;  %v2778_v2 = vld [vmem:[%s2498_s20 + $0x38] sm:$0xff]  }
  0x5c   : > { %1473 = vrot.lane.b32.xlu2 %v1428_v49, %s2436_s25  ;;  %868 = vst [vmem:[#allocation2 + $0x38] sm:$0x1] %v867_v29  ;;  %v1270_v40 = vrot.slane %v1268_v23, 1  ;;  %v1241_v41 = vrot.slane %v1239_v33, 1  ;;  %v1244_v42 = vshll.u32 %v1140_v13, 16  ;;  %v1266_v44 = vor.u32 %v1265_v31, %v1261_v17 }
  0x5d   : > { %v1143_v43 = vpack.c.b16 %v1125_v36, %v1125_v36  ;;  %v2438_v45 = vmov 0   ;;  %v260_v46 = vsel %vm2476_vm2, 0, %v259_v34  ;;  %v2367_v50 = vunpack.c.h.bf16 %v2391_v8  ;;  %v244_v63 = vld [vmem:[#allocation2 + $0x60] sm:$0x1] }
  0x5e   : > { %211 = vst.msk [vmem:[#allocation2] sm:$0xf] %vm210_vm5, %v2438_v45  ;;  %v1242_v52 = vor.u32 %v1241_v41, %v1237_v24  ;;  %v1246_v53 = vrot.slane %v1244_v42, 1  ;;  %v310_v54 = vsel %vm2486_vm4, 0, %v309_v27  ;;  %v412_v55 = vmul.f32 %v2503_v6, %v2366_v26 }
  0x5f   : > { %212 = vst.msk [vmem:[#allocation2 + $0x4] sm:$0xf] %vm210_vm5, %v2438_v45  ;;  %v1436_v48 = vrot.slane %v1143_v43, 1  ;;  %v413_v58 = vmul.f32 %v2503_v6, %v2367_v50  ;;  %v1273_v59 = vshrl.u32 %v2740_v22, 16  ;;  %v1275_v15 = vshll.u32 %v2740_v22, 16 }
  0x60   : > { %214 = vst.msk [vmem:[#allocation2 + $0x8] sm:$0x1] %vm213_vm0, %v2438_v45  ;;  %v1247_v35 = vsel %vm1151_vm10, %v1242_v52, %v1246_v53  ;;  %v445_v47 = vadd.f32 %v2509_v10, %v412_v55  ;;  %v1280_v60 = vshll.u32 %v1143_v43, 16  ;;  %v263_v61 = vsel %vm2476_vm2, 0, %v262_v51 }
  0x61   : > { %216 = vst.msk [vmem:[#allocation2 + $0xcc] sm:$0xf] %vm210_vm5, %v2438_v45  ;;  %v1437_v1 = vsel %vm1404_vm9, %v1435_v37, %v1436_v48  ;;  %1382 = vrot.lane.b32.xlu0 %v1247_v35, %s2437_s26  ;;  %v446_v38 = vadd.f32 %v2509_v10, %v413_v58  ;;  %v1277_v25 = vrot.slane %v1275_v15, 1  ;;  %v313_v39 = vsel %vm2486_vm4, 0, %v312_v56 }
  0x62   : > { %217 = vst.msk [vmem:[#allocation2 + $0xd0] sm:$0xf] %vm210_vm5, %v2438_v45  ;;  %1479 = vrot.lane.b32.xlu1 %v1437_v1, %s2436_s25  ;;  %v2781_v3 = vld [vmem:[#allocation2 + $0x30] sm:$0xff]  ;;  %v477_v5 = vmax.f32 %v445_v47, 0.0  ;;  %v1282_v8 = vrot.slane %v1280_v60, 1  ;;  %v2370_v13 = vunpack.c.l.bf16 %v2392_v30  ;;  %v2371_v14 = vunpack.c.h.bf16 %v2392_v30 }
  0x63   : > { %218 = vst.msk [vmem:[#allocation2 + $0xd4] sm:$0x1] %vm213_vm0, %v2438_v45  ;;  %v967_v11 = vld [vmem:[#allocation2 + $0x38] sm:$0x1]  ;;  %v2785_v16 = vsel %vm1151_vm10, %v1266_v44, %v1270_v40  ;;  %v478_v17 = vmax.f32 %v446_v38, 0.0  ;;  %v1278_v18 = vor.u32 %v1277_v25, %v1273_v59  ;;  %v245_v19 = vsel %vm2476_vm2, 0, %v244_v63 }
  0x64   : > { %261 = vst [vmem:[#allocation2 + $0x9c] sm:$0x1] %v260_v46  ;;  %1378 = vrot.lane.b32.xlu2 %v2729_v57, %s2437_s26  ;;  %v1119_v32 = vunpack.c.l.b16 %v967_v11  ;;  %v509_v20 = vpack.c.bf16 %v477_v5, %v477_v5  ;;  %v414_v21 = vmul.f32 %v2503_v6, %v2370_v13  ;;  %v2346_v23 = vunpack.c.l.bf16 %v2778_v2  ;;  %v294_v60 = vld [vmem:[#allocation2 + $0x68] sm:$0x1]  ;;  %v303_v13 = vld [vmem:[#allocation2 + $0x8c] sm:$0x1] }
  0x65   : > { %311 = vst [vmem:[#allocation2 + $0xa4] sm:$0x1] %v310_v54  ;;  %v1417_v24 = vrot.slane %v2781_v3, 1  ;;  %v510_v62 = vpack.c.bf16 %v478_v17, %v478_v17  ;;  %v2797_v28 = vsel %vm1151_vm10, %v1278_v18, %v1282_v8  ;;  %v415_v29 = vmul.f32 %v2503_v6, %v2371_v14  ;;  %v253_v8 = vld [vmem:[#allocation2 + $0x84] sm:$0x1] }
  0x66   : > { %v2794_v26 = vld [vmem:[#allocation2] sm:$0xff]  ;;  %264 = vst [vmem:[#allocation2 + $0xa8] sm:$0x1] %v263_v61  ;;  %v2800_v31 = vpack.c.b16 %v1119_v32, %v1119_v32  ;;  %v724_v33 = vshrl.u32 %v509_v20, 16  ;;  %v727_v34 = vshll.u32 %v509_v20, 16  ;;  %v447_v49 = vadd.f32 %v2509_v10, %v414_v21 }
  0x67   : > { %v955_v57 = vld [vmem:[#allocation2 + $0x8] sm:$0x1]  ;;  %314 = vst [vmem:[#allocation2 + $0xb0] sm:$0x1] %v313_v39  ;;  %v1153_v37 = vshrl.u32 %v2794_v26, 16  ;;  %v1155_v27 = vshll.u32 %v2794_v26, 16  ;;  %v448_v46 = vadd.f32 %v2509_v10, %v415_v29  ;;  %v2347_v21 = vunpack.c.h.bf16 %v2778_v2 }
  0x68   : > { %v1115_v36 = vunpack.c.l.b16 %v955_v57  ;;  %v1203_v40 = vshll.u32 %v2781_v3, 16  ;;  %246 = vst [vmem:[#allocation2 + $0x60] sm:$0x1] %v245_v19  ;;  %v1418_v41 = vrot.slane %v2800_v31, 1  ;;  %v726_v42 = vrot.slane %v724_v33, 7 }
  0x69   : > { %v732_v6 = vshrl.u32 %v510_v62, 16  ;;  %v735_v43 = vshll.u32 %v510_v62, 16  ;;  %v1157_v45 = vrot.slane %v1155_v27, 1  ;;  %v479_v50 = vmax.f32 %v447_v49, 0.0  ;;  %v2835_v33 = vld [vmem:[%s3476_s1] ss:$0 sm:$0xff] }
  0x6a   : > { %v2807_v44 = vpack.c.b16 %v1115_v36, %v1115_v36  ;;  %v1419_v51 = vsel %vm1404_vm9, %v1417_v24, %v1418_v41  ;;  %v729_v52 = vor.u32 %v727_v34, %v726_v42  ;;  %v730_v53 = vrot.slane %v726_v42, 4  ;;  %v2389_v24 = vld [vmem:[%s2498_s20 + $0x50] sm:$0xff]   ;;  %v2848_v2 = vld [vmem:[%s3476_s1 + $0x1] ss:$0 sm:$0xff] }
  0x6b   : > { %v734_v54 = vrot.slane %v732_v6, 7  ;;  %v925_v55 = vld [vmem:[#allocation2 + $0x9c] sm:$0xf]  ;;  %1467 = vrot.lane.b32.xlu1 %v1419_v51, %s2436_s25  ;;  %v1158_v56 = vor.u32 %v1157_v45, %v1153_v37  ;;  %v1405_v58 = vrot.slane %v2794_v26, 1  ;;  %v480_v15 = vmax.f32 %v448_v46, 0.0 }
  0x6c   : > { %v1160_v48 = vshll.u32 %v2807_v44, 16  ;;  %v929_v59 = vld [vmem:[#allocation2 + $0xa4] sm:$0x1]  ;;  %1374 = vrot.lane.b32.xlu2 %v2751_v9, %s2437_s26  ;;  %v926_v35 = vsel %vm2544_vm7, %v729_v52, %v925_v55  ;;  %v511_v47 = vpack.c.bf16 %v479_v50, %v479_v50  ;;  %v1406_v63 = vrot.slane %v2807_v44, 1  ;;  %v306_v50 = vld [vmem:[#allocation2 + $0x98] sm:$0x1] }
  0x6d   : > { %v737_v10 = vor.u32 %v735_v43, %v734_v54  ;;  %v739_v30 = vrot.slane %v734_v54, 4  ;;  %927 = vst [vmem:[#allocation2 + $0x9c] sm:$0xf] %v926_v35  ;;  %v512_v1 = vpack.c.bf16 %v480_v15, %v480_v15  ;;  %v1201_v38 = vshrl.u32 %v2781_v3, 16  ;;  %v932_v29 = vld [vmem:[#allocation2 + $0xa8] sm:$0xf] }
  0x6e   : > { %v1162_v61 = vrot.slane %v1160_v48, 1  ;;  %v741_v39 = vshrl.u32 %v511_v47, 16  ;;  %v744_v5 = vshll.u32 %v511_v47, 16  ;;  %v1205_v18 = vrot.slane %v1203_v40, 1  ;;  %v936_v37 = vld [vmem:[#allocation2 + $0xb0] sm:$0x1] }
  0x6f   : > { %v738_v25 = vsel %vm2550_vm8, %v730_v53, %v737_v10  ;;  %v930_v9 = vsel %vm2476_vm2, %v739_v30, %v929_v59  ;;  %v749_v11 = vshrl.u32 %v512_v1, 16  ;;  %v752_v17 = vshll.u32 %v512_v1, 16  ;;  %v256_v43 = vld [vmem:[#allocation2 + $0x90] sm:$0x1]  ;;  %v2390_v51 = vld [vmem:[%s2498_s20 + $0x58] sm:$0xff]  }
  0x70   : > { %v1163_v14 = vsel %vm1151_vm10, %v1158_v56, %v1162_v61  ;;  %928 = vst.msk [vmem:[#allocation2 + $0xa0] sm:$0xf] %vm210_vm5, %v738_v25  ;;  %v743_v19 = vrot.slane %v741_v39, 7  ;;  %v1208_v32 = vshll.u32 %v2800_v31, 16  ;;  %v295_v20 = vsel %vm2486_vm4, 0, %v294_v60 }
  0x71   : > { %1368 = vrot.lane.b32.xlu0 %v1163_v14, %s2437_s26  ;;  %931 = vst [vmem:[#allocation2 + $0xa4] sm:$0x1] %v930_v9  ;;  %v751_v62 = vrot.slane %v749_v11, 7  ;;  %v1206_v57 = vor.u32 %v1205_v18, %v1201_v38  ;;  %v402_v34 = vmul.f32 %v2835_v33, %v2346_v23  ;;  %v254_v31 = vsel %vm2476_vm2, 0, %v253_v8  ;;  %v1006_v7 = vld [vmem:[#allocation2 + $0xd4] sm:$0x1] }
  0x72   : > { %296 = vst [vmem:[#allocation2 + $0x68] sm:$0x1] %v295_v20  ;;  %v746_v49 = vor.u32 %v744_v5, %v743_v19  ;;  %v747_v36 = vrot.slane %v743_v19, 4  ;;  %v1210_v27 = vrot.slane %v1208_v32, 1  ;;  %v403_v40 = vmul.f32 %v2835_v33, %v2347_v21 }
  0x73   : > { %255 = vst [vmem:[#allocation2 + $0x84] sm:$0x1] %v254_v31  ;;  %1386 = vrot.lane.b32.xlu1 %v2785_v16, %s2437_s26  ;;  %v754_v41 = vor.u32 %v752_v17, %v751_v62  ;;  %v756_v42 = vrot.slane %v751_v62, 4  ;;  %v435_v23 = vadd.f32 %v2848_v2, %v402_v34  ;;  %v304_v6 = vsel %vm2486_vm4, 0, %v303_v13  ;;  %v890_v31 = vld [vmem:[#allocation2 + $0x60] sm:$0xf] }
  0x74   : > { %v1407_v44 = vsel %vm1404_vm9, %v1405_v58, %v1406_v63  ;;  %1388 = vrot.lane.b32.xlu2 %v2797_v28, %s2437_s26  ;;  %v933_v16 = vsel %vm2544_vm7, %v746_v49, %v932_v29  ;;  %v436_v45 = vadd.f32 %v2848_v2, %v403_v40  ;;  %305 = vst [vmem:[#allocation2 + $0x8c] sm:$0x1] %v304_v6  ;;  %v2358_v46 = vunpack.c.l.bf16 %v2389_v24 }
  0x75   : > { %v755_v52 = vsel %vm2550_vm8, %v747_v36, %v754_v41  ;;  %934 = vst [vmem:[#allocation2 + $0xa8] sm:$0xf] %v933_v16  ;;  %v937_v53 = vsel %vm2476_vm2, %v756_v42, %v936_v37  ;;  %v467_v54 = vmax.f32 %v435_v23, 0.0  ;;  %v2359_v55 = vunpack.c.h.bf16 %v2389_v24 }
  0x76   : > { %935 = vst.msk [vmem:[#allocation2 + $0xac] sm:$0xf] %vm210_vm5, %v755_v52  ;;  %v1211_v28 = vsel %vm1151_vm10, %v1206_v57, %v1210_v27  ;;  %v468_v48 = vmax.f32 %v436_v45, 0.0  ;;  %v408_v58 = vmul.f32 %v2835_v33, %v2358_v46  ;;  %v257_v59 = vsel %vm2476_vm2, 0, %v256_v43 }
  0x77   : > { %v2864_v56 = vld [vmem:[#allocation2 + $0x9c] sm:$0xff]  ;;  %938 = vst [vmem:[#allocation2 + $0xb0] sm:$0x1] %v937_v53  ;;  %v499_v10 = vpack.c.bf16 %v467_v54, %v467_v54  ;;  %v409_v30 = vmul.f32 %v2835_v33, %v2359_v55  ;;  %v307_v35 = vsel %vm2486_vm4, 0, %v306_v50  ;;  %v2362_v47 = vunpack.c.l.bf16 %v2390_v51  ;;  %v265_v55 = vld [vmem:[#allocation2 + $0xb4] sm:$0x1] }
  0x78   : > { %v994_v15 = vld [vmem:[#allocation2 + $0xa4] sm:$0x1]  ;;  %v1309_v61 = vshrl.u32 %v2864_v56, 16  ;;  %v1311_v63 = vshll.u32 %v2864_v56, 16  ;;  %v2363_v1 = vunpack.c.h.bf16 %v2390_v51  ;;  %v500_v38 = vpack.c.bf16 %v468_v48, %v468_v48  ;;  %258 = vst [vmem:[#allocation2 + $0x90] sm:$0x1] %v257_v59 }
  0x79   : > { %v1128_v60 = vunpack.c.l.b16 %v994_v15  ;;  %v639_v25 = vshrl.u32 %v499_v10, 16  ;;  %v642_v9 = vshll.u32 %v499_v10, 16  ;;  %v441_v39 = vadd.f32 %v2848_v2, %v408_v58  ;;  %308 = vst [vmem:[#allocation2 + $0x98] sm:$0x1] %v307_v35  ;;  %v315_v10 = vld [vmem:[#allocation2 + $0xbc] sm:$0x1] }
  0x7a   : > { %v1313_v8 = vrot.slane %v1311_v63, 1  ;;  %v1444_v13 = vrot.slane %v2864_v56, 1  ;;  %v442_v14 = vadd.f32 %v2848_v2, %v409_v30  ;;  %v647_v17 = vshrl.u32 %v500_v38, 16  ;;  %v911_v15 = vld [vmem:[#allocation2 + $0x84] sm:$0xf] }
  0x7b   : > { %v1146_v5 = vpack.c.b16 %v1128_v60, %v1128_v60  ;;  %1459 = vrot.lane.b32.xlu1 %v1407_v44, %s2436_s25  ;;  %v641_v11 = vrot.slane %v639_v25, 7  ;;  %v650_v18 = vshll.u32 %v500_v38, 16  ;;  %v473_v19 = vmax.f32 %v441_v39, 0.0  ;;  %v894_v44 = vld [vmem:[#allocation2 + $0x68] sm:$0x1] }
  0x7c   : > { %v1314_v32 = vor.u32 %v1313_v8, %v1309_v61  ;;  %1376 = vrot.lane.b32.xlu2 %v1211_v28, %s2437_s26  ;;  %v474_v24 = vmax.f32 %v442_v14, 0.0  ;;  %v649_v34 = vrot.slane %v647_v17, 7  ;;  %v410_v41 = vmul.f32 %v2835_v33, %v2362_v47  ;;  %v915_v63 = vld [vmem:[#allocation2 + $0x8c] sm:$0x1] }
  0x7d   : > { %v1316_v20 = vshll.u32 %v1146_v5, 16  ;;  %v1445_v21 = vrot.slane %v1146_v5, 1  ;;  %v2881_v62 = vld [vmem:[#allocation2 + $0xa8] sm:$0xff]  ;;  %v644_v29 = vor.u32 %v642_v9, %v641_v11  ;;  %v645_v57 = vrot.slane %v641_v11, 4 }
  0x7e   : > { %v505_v49 = vpack.c.bf16 %v473_v19, %v473_v19  ;;  %v997_v27 = vld [vmem:[#allocation2 + $0xb0] sm:$0x1]  ;;  %v506_v40 = vpack.c.bf16 %v474_v24, %v474_v24  ;;  %v1321_v23 = vshrl.u32 %v2881_v62, 16  ;;  %v1323_v6 = vshll.u32 %v2881_v62, 16  ;;  %v318_v9 = vld [vmem:[#allocation2 + $0xc8] sm:$0x1] }
  0x7f   : > { %v1318_v36 = vrot.slane %v1316_v20, 1  ;;  %v1446_v37 = vsel %vm1404_vm9, %v1444_v13, %v1445_v21  ;;  %v1129_v42 = vunpack.c.l.b16 %v997_v27  ;;  %v652_v43 = vor.u32 %v650_v18, %v649_v34  ;;  %v2393_v19 = vld [vmem:[%s2498_s20 + $0x70] sm:$0xff]  }
  0x80   : > { %v654_v45 = vrot.slane %v649_v34, 4  ;;  %v891_v46 = vsel %vm2544_vm7, %v644_v29, %v890_v31  ;;  %v411_v50 = vmul.f32 %v2835_v33, %v2363_v1  ;;  %v1325_v52 = vrot.slane %v1323_v6, 1 }
  0x81   : > { %v1319_v16 = vsel %vm1151_vm10, %v1314_v32, %v1318_v36  ;;  %v1147_v51 = vpack.c.b16 %v1129_v42, %v1129_v42  ;;  %v653_v53 = vsel %vm2550_vm8, %v645_v57, %v652_v43  ;;  %892 = vst [vmem:[#allocation2 + $0x60] sm:$0xf] %v891_v46  ;;  %v690_v54 = vshrl.u32 %v505_v49, 16  ;;  %v268_v32 = vld [vmem:[#allocation2 + $0xc0] sm:$0x1] }
  0x82   : > { %1394 = vrot.lane.b32.xlu0 %v1319_v16, %s2437_s26  ;;  %893 = vst.msk [vmem:[#allocation2 + $0x64] sm:$0xf] %vm210_vm5, %v653_v53  ;;  %v895_v28 = vsel %vm2476_vm2, %v654_v45, %v894_v44  ;;  %v693_v48 = vshll.u32 %v505_v49, 16  ;;  %v698_v58 = vshrl.u32 %v506_v40, 16  ;;  %v701_v59 = vshll.u32 %v506_v40, 16  ;;  %v2394_v53 = vld [vmem:[%s2498_s20 + $0x78] sm:$0xff]  }
  0x83   : > { %1485 = vrot.lane.b32.xlu1 %v1446_v37, %s2436_s25  ;;  %v1326_v30 = vor.u32 %v1325_v52, %v1321_v23  ;;  %v1328_v35 = vshll.u32 %v1147_v51, 16  ;;  %896 = vst [vmem:[#allocation2 + $0x68] sm:$0x1] %v895_v28  ;;  %v1447_v47 = vrot.slane %v2881_v62, 1  ;;  %v692_v60 = vrot.slane %v690_v54, 7 }
  0x84   : > { %v700_v61 = vrot.slane %v698_v58, 7  ;;  %v443_v1 = vadd.f32 %v2848_v2, %v410_v41  ;;  %v444_v38 = vadd.f32 %v2848_v2, %v411_v50  ;;  %v266_v25 = vsel %vm2476_vm2, 0, %v265_v55 }
  0x85   : > { %v1330_v39 = vrot.slane %v1328_v35, 1  ;;  %v1448_v5 = vrot.slane %v1147_v51, 1  ;;  %v695_v8 = vor.u32 %v693_v48, %v692_v60  ;;  %v696_v13 = vrot.slane %v692_v60, 4  ;;  %267 = vst [vmem:[#allocation2 + $0xb4] sm:$0x1] %v266_v25 }
  0x86   : > { %v703_v14 = vor.u32 %v701_v59, %v700_v61  ;;  %v705_v11 = vrot.slane %v700_v61, 4  ;;  %v475_v17 = vmax.f32 %v443_v1, 0.0  ;;  %v476_v18 = vmax.f32 %v444_v38, 0.0  ;;  %v918_v48 = vld [vmem:[#allocation2 + $0x90] sm:$0xf] }
  0x87   : > { %v1331_v20 = vsel %vm1151_vm10, %v1326_v30, %v1330_v39  ;;  %v912_v21 = vsel %vm2544_vm7, %v695_v8, %v911_v15  ;;  %v316_v24 = vsel %vm2486_vm4, 0, %v315_v10  ;;  %v2374_v29 = vunpack.c.l.bf16 %v2393_v19  ;;  %v922_v10 = vld [vmem:[#allocation2 + $0x98] sm:$0x1] }
  0x88   : > { %v704_v57 = vsel %vm2550_vm8, %v696_v13, %v703_v14  ;;  %913 = vst [vmem:[#allocation2 + $0x84] sm:$0xf] %v912_v21  ;;  %v916_v34 = vsel %vm2476_vm2, %v705_v11, %v915_v63  ;;  %v507_v31 = vpack.c.bf16 %v475_v17, %v475_v17  ;;  %v508_v49 = vpack.c.bf16 %v476_v18, %v476_v18 }
  0x89   : > { %v2914_v36 = vld [vmem:[#allocation2 + $0x60] sm:$0xff]  ;;  %914 = vst.msk [vmem:[#allocation2 + $0x88] sm:$0xf] %vm210_vm5, %v704_v57  ;;  %v2375_v37 = vunpack.c.h.bf16 %v2393_v19  ;;  %v416_v27 = vmul.f32 %v2835_v33, %v2374_v29  ;;  %v269_v40 = vsel %vm2476_vm2, 0, %v268_v32  ;;  %v319_v41 = vsel %vm2486_vm4, 0, %v318_v9 }
  0x8a   : > { %1396 = vrot.lane.b32.xlu0 %v1331_v20, %s2437_s26  ;;  %v979_v42 = vld [vmem:[#allocation2 + $0x68] sm:$0x1]  ;;  %v1449_v23 = vsel %vm1404_vm9, %v1447_v47, %v1448_v5  ;;  %917 = vst [vmem:[#allocation2 + $0x8c] sm:$0x1] %v916_v34  ;;  %v707_v6 = vshrl.u32 %v507_v31, 16  ;;  %v710_v43 = vshll.u32 %v507_v31, 16  ;;  %v2378_v58 = vunpack.c.l.bf16 %v2394_v53 }
  0x8b   : > { %v1123_v44 = vunpack.c.l.b16 %v979_v42  ;;  %v1249_v16 = vshrl.u32 %v2914_v36, 16  ;;  %v1251_v45 = vshll.u32 %v2914_v36, 16  ;;  %v715_v46 = vshrl.u32 %v508_v49, 16  ;;  %317 = vst [vmem:[#allocation2 + $0xbc] sm:$0x1] %v316_v24 }
  0x8c   : > { %v709_v50 = vrot.slane %v707_v6, 7  ;;  %v718_v51 = vshll.u32 %v508_v49, 16  ;;  %v417_v52 = vmul.f32 %v2835_v33, %v2375_v37  ;;  %v449_v4 = vadd.f32 %v2848_v2, %v416_v27  ;;  %270 = vst [vmem:[#allocation2 + $0xc0] sm:$0x1] %v269_v40  ;;  %v939_v42 = vld [vmem:[#allocation2 + $0xb4] sm:$0xf] }
  0x8d   : > { %v2928_v54 = vpack.c.b16 %v1123_v44, %v1123_v44  ;;  %v1253_v55 = vrot.slane %v1251_v45, 1  ;;  %v717_v28 = vrot.slane %v715_v46, 7  ;;  %320 = vst [vmem:[#allocation2 + $0xc8] sm:$0x1] %v319_v41  ;;  %v2379_v39 = vunpack.c.h.bf16 %v2394_v53 }
  0x8e   : > { %v712_v59 = vor.u32 %v710_v43, %v709_v50  ;;  %v713_v15 = vrot.slane %v709_v50, 4  ;;  %v450_v30 = vadd.f32 %v2848_v2, %v417_v52  ;;  %v481_v35 = vmax.f32 %v449_v4, 0.0 }
  0x8f   : > { %v1254_v47 = vor.u32 %v1253_v55, %v1249_v16  ;;  %v1256_v60 = vshll.u32 %v2928_v54, 16  ;;  %v720_v61 = vor.u32 %v718_v51, %v717_v28  ;;  %v722_v63 = vrot.slane %v717_v28, 4 }
  0x90   : > { %v2932_v1 = vld [vmem:[#allocation2 + $0x84] sm:$0xff]  ;;  %v919_v38 = vsel %vm2544_vm7, %v712_v59, %v918_v48  ;;  %v482_v25 = vmax.f32 %v450_v30, 0.0  ;;  %v513_v9 = vpack.c.bf16 %v481_v35, %v481_v35  ;;  %v418_v11 = vmul.f32 %v2835_v33, %v2378_v58 }
  0x91   : > { %v1258_v5 = vrot.slane %v1256_v60, 1  ;;  %v988_v8 = vld [vmem:[#allocation2 + $0x8c] sm:$0x1]  ;;  %v721_v13 = vsel %vm2550_vm8, %v713_v15, %v720_v61  ;;  %920 = vst [vmem:[#allocation2 + $0x90] sm:$0xf] %v919_v38  ;;  %v923_v14 = vsel %vm2476_vm2, %v722_v63, %v922_v10  ;;  %v1285_v18 = vshrl.u32 %v2932_v1, 16 }
  0x92   : > { %1487 = vrot.lane.b32.xlu0 %v1449_v23, %s2436_s25  ;;  %v1126_v17 = vunpack.c.l.b16 %v988_v8  ;;  %v1287_v19 = vshll.u32 %v2932_v1, 16  ;;  %921 = vst.msk [vmem:[#allocation2 + $0x94] sm:$0xf] %vm210_vm5, %v721_v13  ;;  %v514_v20 = vpack.c.bf16 %v482_v25, %v482_v25  ;;  %v758_v21 = vshrl.u32 %v513_v9, 16  ;;  %v943_v4 = vld [vmem:[#allocation2 + $0xbc] sm:$0x1] }
  0x93   : > { %v1259_v32 = vsel %vm1151_vm10, %v1254_v47, %v1258_v5  ;;  %924 = vst [vmem:[#allocation2 + $0x98] sm:$0x1] %v923_v14  ;;  %v761_v24 = vshll.u32 %v513_v9, 16  ;;  %v419_v34 = vmul.f32 %v2835_v33, %v2379_v39  ;;  %v451_v27 = vadd.f32 %v2848_v2, %v418_v11  ;;  %v946_v11 = vld [vmem:[#allocation2 + $0xc0] sm:$0xf] }
  0x94   : > { %1384 = vrot.lane.b32.xlu1 %v1259_v32, %s2437_s26  ;;  %v1144_v29 = vpack.c.b16 %v1126_v17, %v1126_v17  ;;  %v1289_v57 = vrot.slane %v1287_v19, 1  ;;  %v760_v31 = vrot.slane %v758_v21, 7  ;;  %v766_v49 = vshrl.u32 %v514_v20, 16  ;;  %v950_v32 = vld [vmem:[#allocation2 + $0xc8] sm:$0x1] }
  0x95   : > { %v769_v37 = vshll.u32 %v514_v20, 16  ;;  %v452_v23 = vadd.f32 %v2848_v2, %v419_v34  ;;  %v483_v44 = vmax.f32 %v451_v27, 0.0  ;;  %v1438_v28 = vrot.slane %v2932_v1, 1 }
  0x96   : > { %v1290_v40 = vor.u32 %v1289_v57, %v1285_v18  ;;  %v1292_v41 = vshll.u32 %v1144_v29, 16  ;;  %v763_v6 = vor.u32 %v761_v24, %v760_v31  ;;  %v768_v43 = vrot.slane %v766_v49, 7 }
  0x97   : > { %v764_v45 = vrot.slane %v760_v31, 4  ;;  %v484_v46 = vmax.f32 %v452_v23, 0.0  ;;  %v515_v53 = vpack.c.bf16 %v483_v44, %v483_v44  ;;  %v1439_v2 = vrot.slane %v1144_v29, 1 }
  0x98   : > { %v1294_v16 = vrot.slane %v1292_v41, 1  ;;  %v771_v51 = vor.u32 %v769_v37, %v768_v43  ;;  %v773_v33 = vrot.slane %v768_v43, 4  ;;  %v940_v52 = vsel %vm2544_vm7, %v763_v6, %v939_v42 }
  0x99   : > { %v2950_v50 = vld [vmem:[#allocation2 + $0x90] sm:$0xff]  ;;  %941 = vst [vmem:[#allocation2 + $0xb4] sm:$0xf] %v940_v52  ;;  %v516_v58 = vpack.c.bf16 %v484_v46, %v484_v46  ;;  %v775_v60 = vshrl.u32 %v515_v53, 16  ;;  %v778_v61 = vshll.u32 %v515_v53, 16  ;;  %v1440_v17 = vsel %vm1404_vm9, %v1438_v28, %v1439_v2 }
  0x9a   : > { %v1295_v55 = vsel %vm1151_vm10, %v1290_v40, %v1294_v16  ;;  %v991_v48 = vld [vmem:[#allocation2 + $0x98] sm:$0x1]  ;;  %v1297_v15 = vshrl.u32 %v2950_v50, 16  ;;  %v1299_v10 = vshll.u32 %v2950_v50, 16  ;;  %v1441_v30 = vrot.slane %v2950_v50, 1 }
  0x9b   : > { %1390 = vrot.lane.b32.xlu2 %v1295_v55, %s2437_s26  ;;  %v1127_v59 = vunpack.c.l.b16 %v991_v48  ;;  %v772_v35 = vsel %vm2550_vm8, %v764_v45, %v771_v51  ;;  %v944_v47 = vsel %vm2476_vm2, %v773_v33, %v943_v4  ;;  %v783_v25 = vshrl.u32 %v516_v58, 16  ;;  %v2988_v45 = vld [vmem:[#allocation2 + $0xcc] sm:$0xff] }
  0x9c   : > { %v1301_v38 = vrot.slane %v1299_v10, 1  ;;  %942 = vst.msk [vmem:[#allocation2 + $0xb8] sm:$0xf] %vm210_vm5, %v772_v35  ;;  %v786_v9 = vshll.u32 %v516_v58, 16  ;;  %v777_v39 = vrot.slane %v775_v60, 7  ;;  %v1429_v57 = vrot.slane %v2914_v36, 1 }
  0x9d   : > { %v1145_v63 = vpack.c.b16 %v1127_v59, %v1127_v59  ;;  %945 = vst [vmem:[#allocation2 + $0xbc] sm:$0x1] %v944_v47  ;;  %v785_v14 = vrot.slane %v783_v25, 7  ;;  %v1430_v49 = vrot.slane %v2928_v54, 1  ;;  %v1132_v6 = vunpack.c.l.b16 %v1006_v7 }
  0x9e   : > { %v1302_v5 = vor.u32 %v1301_v38, %v1297_v15  ;;  %v780_v18 = vor.u32 %v778_v61, %v777_v39  ;;  %v781_v19 = vrot.slane %v777_v39, 4  ;;  %v1359_v59 = vshll.u32 %v2988_v45, 16 }
  0x9f   : > { %v1304_v8 = vshll.u32 %v1145_v63, 16  ;;  %v1442_v13 = vrot.slane %v1145_v63, 1  ;;  %v788_v24 = vor.u32 %v786_v9, %v785_v14  ;;  %v790_v29 = vrot.slane %v785_v14, 4 }
  0xa0   : > { %v947_v34 = vsel %vm2544_vm7, %v780_v18, %v946_v11  ;;  %v1431_v12 = vsel %vm1404_vm9, %v1429_v57, %v1430_v49  ;;  %v1150_v55 = vpack.c.b16 %v1132_v6, %v1132_v6  ;;  %v1456_v10 = vrot.slane %v2988_v45, 1  ;;  %v2422_v49 = vld [vmem:[#allocation2 + $0x18] sm:$0xff] }
  0xa1   : > { %v1306_v20 = vrot.slane %v1304_v8, 1  ;;  %v1443_v21 = vsel %vm1404_vm9, %v1441_v30, %v1442_v13  ;;  %v789_v37 = vsel %vm2550_vm8, %v781_v19, %v788_v24  ;;  %948 = vst [vmem:[#allocation2 + $0xc0] sm:$0xf] %v947_v34  ;;  %v951_v27 = vsel %vm2476_vm2, %v790_v29, %v950_v32  ;;  %v2421_v34 = vld [vmem:[#allocation2 + $0xc] sm:$0xff] }
  0xa2   : > { %1483 = vrot.lane.b32.xlu0 %v1443_v21, %s2436_s25  ;;  %949 = vst.msk [vmem:[#allocation2 + $0xc4] sm:$0xf] %vm210_vm5, %v789_v37  ;;  %v1466_v53 = vpop.permute.xlu2 %1465  ;;  %v1457_v30 = vrot.slane %v1150_v55, 1  ;;  %v1357_v60 = vshrl.u32 %v2988_v45, 16  ;;  %v1361_v9 = vrot.slane %v1359_v59, 1  ;;  %v1364_v39 = vshll.u32 %v1150_v55, 16 }
  0xa3   : > { %1481 = vrot.lane.b32.xlu2 %v1440_v17, %s2436_s25  ;;  %v1307_v31 = vsel %vm1151_vm10, %v1302_v5, %v1306_v20  ;;  %v2979_v40 = vld [vmem:[#allocation2 + $0xb4] sm:$0xff]  ;;  %952 = vst [vmem:[#allocation2 + $0xc8] sm:$0x1] %v951_v27  ;;  %vm1532_vm12 = vcmask 64512   ;;  %vm1769_vm13 = vcmask 1041408   ;;  %vm1650_vm14 = vcmask 97280  }
  0xa4   : > { %1392 = vrot.lane.b32.xlu1 %v1307_v31, %s2437_s26  ;;  %v2982_v41 = vpop.permute.xlu0 %1471  ;;  %v1000_v42 = vld [vmem:[#allocation2 + $0xbc] sm:$0x1]  ;;  %v1335_v54 = vshll.u32 %v2979_v40, 16  ;;  %v1450_v0 = vrot.slane %v2979_v40, 1  ;;  %v1333_v44 = vshrl.u32 %v2979_v40, 16  ;;  %v1458_v13 = vsel %vm1404_vm9, %v1456_v10, %v1457_v30 }
  0xa5   : > { %v1130_v23 = vunpack.c.l.b16 %v1000_v42  ;;  %v1362_v19 = vor.u32 %v1361_v9, %v1357_v60  ;;  %v1366_v32 = vrot.slane %v1364_v39, 1  ;;  %v2427_v60 = vld [vmem:[#allocation2 + $0x6c] sm:$0xff]  ;;  %vm1683_vm15 = vcmask 195584  }
  0xa6   : > { %v1337_v16 = vrot.slane %v1335_v54, 1  ;;  %vm1736_vm0 = vcmask 293888   ;;  %vm2096_vm1 = vcmask 1040384   ;;  %vm2098_vm2 = vcmask 25600  }
  0xa7   : > { %v1148_v43 = vpack.c.b16 %v1130_v23, %v1130_v23  ;;  %v1462_v5 = vpop.permute.xlu1 %1461  ;;  %v1367_v24 = vsel %vm1151_vm10, %v1362_v19, %v1366_v32  ;;  %v2423_v23 = vld [vmem:[#allocation2 + $0x3c] sm:$0xff] }
  0xa8   : > { %v1338_v28 = vor.u32 %v1337_v16, %v1333_v44 }
  0xa9   : > { %v1451_v46 = vrot.slane %v1148_v43, 1  ;;  %v1340_v51 = vshll.u32 %v1148_v43, 16  ;;  %v2991_v33 = vld [vmem:[#allocation2 + $0xc0] sm:$0xff] }
  0xaa   : > { %v1003_v4 = vld [vmem:[#allocation2 + $0xc8] sm:$0x1]  ;;  %v1347_v15 = vshll.u32 %v2991_v33, 16  ;;  %v1453_v47 = vrot.slane %v2991_v33, 1  ;;  %v1345_v63 = vshrl.u32 %v2991_v33, 16 }
  0xab   : > { %1475 = vrot.lane.b32.xlu2 %v1431_v12, %s2436_s25  ;;  %v1452_v52 = vsel %vm1404_vm9, %v1450_v0, %v1451_v46  ;;  %v1342_v2 = vrot.slane %v1340_v51, 1  ;;  %v1131_v58 = vunpack.c.l.b16 %v1003_v4  ;;  %v2424_v0 = vld [vmem:[#allocation2 + $0x24] sm:$0xff] }
  0xac   : > { %v2994_v48 = vpop.permute.xlu0 %1477  ;;  %1489 = vrot.lane.b32.xlu1 %v1452_v52, %s2436_s25  ;;  %v1349_v38 = vrot.slane %v1347_v15, 1  ;;  %v2425_v51 = vld [vmem:[#allocation2 + $0x48] sm:$0xff] }
  0xad   : > { %v1149_v35 = vpack.c.b16 %v1131_v58, %v1131_v58  ;;  %v1343_v61 = vsel %vm1151_vm10, %v1338_v28, %v1342_v2  ;;  %v2426_v58 = vld [vmem:[#allocation2 + $0x54] sm:$0xff] }
  0xae   : > { %v1350_v11 = vor.u32 %v1349_v38, %v1345_v63 }
  0xaf   : > { %v1454_v25 = vrot.slane %v1149_v35, 1  ;;  %v1352_v8 = vshll.u32 %v1149_v35, 16  ;;  %v1464_v29 = vpop.permute.xlu1 %1463 }
  0xb1   : > { %v1455_v14 = vsel %vm1404_vm9, %v1453_v47, %v1454_v25  ;;  %v1354_v17 = vrot.slane %v1352_v8, 1 }
  0xb2   : > { %1491 = vrot.lane.b32.xlu0 %v1455_v14, %s2436_s25 }
  0xb3   : > { %1398 = vrot.lane.b32.xlu2 %v1343_v61, %s2437_s26  ;;  %v1355_v21 = vsel %vm1151_vm10, %v1350_v11, %v1354_v17 }
  0xb4   : > { %v1371_v18 = vpop.permute.xlu0 %1370  ;;  %1493 = vrot.lane.b32.xlu1 %v1458_v13, %s2436_s25 }
  0xb5   : > { %v1499_v31 = vsel %vm1495_vm11, %v2421_v34, %v1371_v18 }
  0xb6   : > { %v1474_v20 = vpop.permute.xlu2 %1473  ;;  %v3021_v42 = vsel %vm1532_vm12, %v1499_v31, %v1462_v5 }
  0xba   : > { %1402 = vrot.lane.b32.xlu0 %v1367_v24, %s2437_s26 }
  0xbb   : > { %1400 = vrot.lane.b32.xlu2 %v1355_v21, %s2437_s26 }
  0xbc   : > { %v1373_v57 = vpop.permute.xlu0 %1372 }
  0xbd   : > { %v1501_v37 = vsel %vm1495_vm11, %v2422_v49, %v1373_v57 }
  0xbe   : > { %v1379_v27 = vpop.permute.xlu2 %1378  ;;  %v3016_v7 = vsel %vm1532_vm12, %v1501_v37, %v1464_v29 }
  0xbf   : > { %1618 = vrot.lane.b32.xlu1 %v3016_v7, %s2439_s5  ;;  %v1507_v54 = vsel %vm1495_vm11, %v2423_v23, %v1379_v27 }
  0xc0   : > { %v1470_v12 = vpop.permute.xlu1 %1469 }
  0xc1   : > { %v3029_v43 = vsel %vm1532_vm12, %v1507_v54, %v1470_v12  ;;  %v2315_v12 = vld [vmem:[%s3477_s2 + $0x8] sm:$0xff] }
  0xc2   : > { %1587 = vrot.lane.b32.xlu0 %v3016_v7, %s2440_s6 }
  0xc3   : > { %1585 = vrot.lane.b32.xlu2 %v3021_v42, %s2440_s6 }
  0xc6   : > { %v1375_v6 = vpop.permute.xlu2 %1374 }
  0xc7   : > { %v1503_v44 = vsel %vm1495_vm11, %v2424_v0, %v1375_v6  ;;  %1593 = vrot.lane.b32.xlu1 %v3029_v43, %s2440_s6  ;;  %v2314_v0 = vld [vmem:[%s3477_s2] sm:$0xff] }
  0xc8   : > { %v3035_v16 = vsel %vm1532_vm12, %v1503_v44, %v1466_v53 }
  0xca   : > { %v1381_v46 = vpop.permute.xlu0 %1380 }
  0xcb   : > { %1620 = vrot.lane.b32.xlu2 %v3035_v16, %s2439_s5  ;;  %v1509_v52 = vsel %vm1495_vm11, %v2425_v51, %v1381_v46 }
  0xcc   : > { %v3042_v4 = vsel %vm1532_vm12, %v1509_v52, %v2982_v41 }
  0xcd   : > { %1626 = vrot.lane.b32.xlu0 %v3042_v4, %s2439_s5 }
  0xce   : > { %v1389_v55 = vpop.permute.xlu2 %1388 }
  0xcf   : > { %1589 = vrot.lane.b32.xlu1 %v3035_v16, %s2440_s6  ;;  %v1517_v53 = vsel %vm1495_vm11, %v2740_v22, %v1389_v55 }
  0xd3   : > { %v1383_v28 = vpop.permute.xlu0 %1382 }
  0xd4   : > { %v1480_v2 = vpop.permute.xlu1 %1479  ;;  %v1511_v59 = vsel %vm1495_vm11, %v2426_v58, %v1383_v28 }
  0xd5   : > { %v3052_v15 = vsel %vm1532_vm12, %v1517_v53, %v1480_v2  ;;  %v3057_v41 = vsel %vm1532_vm12, %v1511_v59, %v1474_v20 }
  0xd6   : > { %1634 = vrot.lane.b32.xlu0 %v3052_v15, %s2439_s5  ;;  %v1377_v10 = vpop.permute.xlu2 %1376 }
  0xd7   : > { %1628 = vrot.lane.b32.xlu1 %v3057_v41, %s2439_s5  ;;  %v1505_v22 = vsel %vm1495_vm11, %v2781_v3, %v1377_v10 }
  0xdd   : > { %v1468_v30 = vpop.permute.xlu1 %1467 }
  0xde   : > { %v3064_v35 = vsel %vm1532_vm12, %v1505_v22, %v1468_v30 }
  0xdf   : > { %1622 = vrot.lane.b32.xlu0 %v3064_v35, %s2439_s5  ;;  %1603 = vrot.lane.b32.xlu1 %v3052_v15, %s2440_s6 }
  0xe3   : > { %v1369_v3 = vpop.permute.xlu0 %1368 }
  0xe4   : > { %v1497_v38 = vsel %vm1495_vm11, %v2794_v26, %v1369_v3 }
  0xe5   : > { %v1387_v47 = vpop.permute.xlu1 %1386 }
  0xe6   : > { %v1515_v61 = vsel %vm1495_vm11, %v2427_v60, %v1387_v47 }
  0xe7   : > { %v3073_v63 = vsel %vm1532_vm12, %v1515_v61, %v2994_v48 }
  0xe8   : > { %1601 = vrot.lane.b32.xlu2 %v3073_v63, %s2440_s6 }
  0xed   : > { %v1460_v25 = vpop.permute.xlu1 %1459 }
  0xee   : > { %v3080_v9 = vsel %vm1532_vm12, %v1497_v38, %v1460_v25 }
  0xf0   : > { %1595 = vrot.lane.b32.xlu2 %v3042_v4, %s2440_s6 }
  0xf4   : > { %v1395_v39 = vpop.permute.xlu0 %1394 }
  0xf5   : > { %v1523_v5 = vsel %vm1495_vm11, %v2864_v56, %v1395_v39  ;;  %v1391_v48 = vpop.permute.xlu2 %1390  ;;  %v1486_v8 = vpop.permute.xlu1 %1485 }
  0xf6   : > { %v3087_v13 = vsel %vm1532_vm12, %v1523_v5, %v1486_v8  ;;  %v1519_v26 = vsel %vm1495_vm11, %v2932_v1, %v1391_v48 }
  0xf8   : > { %1609 = vrot.lane.b32.xlu2 %v3087_v13, %s2440_s6 }
  0xfc   : > { %v1397_v14 = vpop.permute.xlu0 %1396 }
  0xfd   : > { %v1482_v11 = vpop.permute.xlu2 %1481  ;;  %v1525_v56 = vsel %vm1495_vm11, %v2881_v62, %v1397_v14  ;;  %v1720_v62 = vld [vmem:[%s3477_s2 + $0x10] sm:$0x3] }
  0xfe   : > { %v3094_v17 = vsel %vm1532_vm12, %v1519_v26, %v1482_v11 }
  0xff   : > { %1636 = vrot.lane.b32.xlu0 %v3094_v17, %s2439_s5 }
 0x100   : > { %1591 = vrot.lane.b32.xlu2 %v3064_v35, %s2440_s6 }
 0x104   : > { %v1488_v18 = vpop.permute.xlu0 %1487 }
 0x105   : > { %v3103_v19 = vsel %vm1532_vm12, %v1525_v56, %v1488_v18  ;;  %v1476_v32 = vpop.permute.xlu2 %1475 }
 0x106   : > { %1642 = vrot.lane.b32.xlu1 %v3103_v19, %s2439_s5  ;;  %v1385_v1 = vpop.permute.xlu1 %1384 }
 0x107   : > { %1597 = vrot.lane.b32.xlu0 %v3057_v41, %s2440_s6  ;;  %v1513_v20 = vsel %vm1495_vm11, %v2914_v36, %v1385_v1  ;;  %v1730_v36 = vunpack.c.l.b16 %v1720_v62 }
 0x108   : > { %v3112_v21 = vsel %vm1532_vm12, %v1513_v20, %v1476_v32 }
 0x109   : > { %1630 = vrot.lane.b32.xlu2 %v3112_v21, %s2439_s5  ;;  %v1733_v29 = vpack.c.b16 %v1730_v36, %v1730_v36 }
 0x10b   : > { %v1771_v49 = vsel %vm1769_vm13, %v1733_v29, 0 }
 0x10c   : > { %1778 = vmatpush.bf16.msra.mxu0 %v1771_v49  ;;  %2395 = vmatpush.bf16.msra.mxu1 %v1771_v49 }
 0x10d   : > { %v1399_v31 = vpop.permute.xlu2 %1398  ;;  %2396 = vmatpush.bf16.msra.mxu2 %v1771_v49  ;;  %2397 = vmatpush.bf16.msra.mxu3 %v1771_v49 }
 0x10e   : > { %1624 = vrot.lane.b32.xlu1 %v3029_v43, %s2439_s5  ;;  %v1527_v27 = vsel %vm1495_vm11, %v2979_v40, %v1399_v31 }
 0x10f   : > { %1611 = vrot.lane.b32.xlu0 %v3103_v19, %s2440_s6 }
 0x110   : > { %1779 = vmatpush.bf16.msra.mxu0 %v2315_v12  ;;  %2398 = vmatpush.bf16.msra.mxu1 %v2315_v12 }
 0x111   : > { %1605 = vrot.lane.b32.xlu2 %v3094_v17, %s2440_s6  ;;  %2399 = vmatpush.bf16.msra.mxu2 %v2315_v12 }
 0x112   : > { %2400 = vmatpush.bf16.msra.mxu3 %v2315_v12 }
 0x114   : > { %v1484_v24 = vpop.permute.xlu0 %1483  ;;  %1780 = vmatpush.bf16.msra.mxu0 %v2314_v0  ;;  %2401 = vmatpush.bf16.msra.mxu1 %v2314_v0 }
 0x115   : > { %v1401_v54 = vpop.permute.xlu2 %1400  ;;  %2402 = vmatpush.bf16.msra.mxu2 %v2314_v0 }
 0x116   : > { %v1393_v57 = vpop.permute.xlu1 %1392  ;;  %v1529_v40 = vsel %vm1495_vm11, %v2991_v33, %v1401_v54  ;;  %2403 = vmatpush.bf16.msra.mxu3 %v2314_v0 }
 0x117   : > { %v1521_v34 = vsel %vm1495_vm11, %v2950_v50, %v1393_v57  ;;  %1599 = vrot.lane.b32.xlu0 %v3112_v21, %s2440_s6 }
 0x118   : > { %v3130_v37 = vsel %vm1532_vm12, %v1521_v34, %v1484_v24 }
 0x119   : > { %1638 = vrot.lane.b32.xlu1 %v3130_v37, %s2439_s5 }
 0x11d   : > { %v1586_v33 = vpop.permute.xlu2 %1585 }
 0x11e   : > { %v1490_v23 = vpop.permute.xlu1 %1489  ;;  %v1652_v53 = vsel %vm1650_vm14, %v3080_v9, %v1586_v33 }
 0x11f   : > { %v3137_v50 = vsel %vm1532_vm12, %v1527_v27, %v1490_v23 }
 0x120   : > { %1644 = vrot.lane.b32.xlu2 %v3137_v50, %s2439_s5  ;;  %1613 = vrot.lane.b32.xlu0 %v3137_v50, %s2440_s6 }
 0x121   : > { %1632 = vrot.lane.b32.xlu1 %v3073_v63, %s2439_s5 }
 0x124   : > { %v1492_v6 = vpop.permute.xlu0 %1491 }
 0x125   : > { %v1566_v44 = vsel %vm1532_vm12, %v1529_v40, %v1492_v6  ;;  %v1621_v10 = vpop.permute.xlu2 %1620 }
 0x126   : > { %v1494_v46 = vpop.permute.xlu1 %1493 }
 0x128   : > { %1607 = vrot.lane.b32.xlu2 %v3130_v37, %s2440_s6  ;;  %1615 = vrot.lane.b32.xlu0 %v1566_v44, %s2440_s6 }
 0x129   : > { %1640 = vrot.lane.b32.xlu1 %v3087_v13, %s2439_s5 }
 0x12c   : > { %v1403_v51 = vpop.permute.xlu0 %1402 }
 0x12d   : > { %v1531_v52 = vsel %vm1495_vm11, %v2988_v45, %v1403_v51 }
 0x12e   : > { %v1568_v55 = vsel %vm1532_vm12, %v1531_v52, %v1494_v46 }
 0x130   : > { %1646 = vrot.lane.b32.xlu2 %v1566_v44, %s2439_s5 }
 0x131   : > { %v1619_v28 = vpop.permute.xlu1 %1618  ;;  %1648 = vrot.lane.b32.xlu1 %v1568_v55, %s2439_s5 }
 0x132   : > { %v1685_v2 = vsel %vm1683_vm15, %v1652_v53, %v1619_v28 }
 0x133   : > { %2276 = vmatmul.msk.bf16.vlgmr.msra.gmra.mxu0 %vm1736_vm0, %v1685_v2 }
 0x134   : > { %v1588_v58 = vpop.permute.xlu0 %1587 }
 0x135   : > { %v1654_v22 = vsel %vm1650_vm14, %v3021_v42, %v1588_v58 }
 0x136   : > { %v1687_v3 = vsel %vm1683_vm15, %v1654_v22, %v1621_v10 }
 0x139   : > { %v1594_v59 = vpop.permute.xlu1 %1593 }
 0x13a   : > { %v1660_v45 = vsel %vm1650_vm14, %v3064_v35, %v1594_v59 }
 0x13f   : > { %v1627_v30 = vpop.permute.xlu0 %1626 }
 0x140   : > { %v1693_v47 = vsel %vm1683_vm15, %v1660_v45, %v1627_v30 }
 0x141   : > { %2280 = vmatmul.msk.bf16.vlgmr.msra.gmra.mxu1 %vm1736_vm0, %v1693_v47  ;;  %v1590_v60 = vpop.permute.xlu1 %1589 }
 0x142   : > { %v1602_v61 = vpop.permute.xlu2 %1601  ;;  %v1656_v48 = vsel %vm1650_vm14, %v3016_v7, %v1590_v60 }
 0x143   : > { %2277 = vmatmul.msk.bf16.gmra.mxu0 %vm1736_vm0, %v1687_v3  ;;  %v1668_v38 = vsel %vm1650_vm14, %v3112_v21, %v1602_v61 }
 0x148   : > { %v1635_v25 = vpop.permute.xlu0 %1634 }
 0x149   : > { %v1701_v35 = vsel %vm1683_vm15, %v1668_v38, %v1635_v25  ;;  %v1629_v42 = vpop.permute.xlu1 %1628 }
 0x14a   : > { %v1596_v9 = vpop.permute.xlu2 %1595  ;;  %2284 = vmatmul.msk.bf16.vlgmr.msra.gmra.mxu2 %vm1736_vm0, %v1701_v35 }
 0x14b   : > { %v1662_v39 = vsel %vm1650_vm14, %v3029_v43, %v1596_v9 }
 0x14c   : > { %v1695_v5 = vsel %vm1683_vm15, %v1662_v39, %v1629_v42 }
 0x151   : > { %v1623_v8 = vpop.permute.xlu0 %1622  ;;  %2281 = vmatmul.msk.bf16.gmra.mxu1 %vm1736_vm0, %v1695_v5  ;;  %v1604_v56 = vpop.permute.xlu1 %1603 }
 0x152   : > { %v1689_v26 = vsel %vm1683_vm15, %v1656_v48, %v1623_v8  ;;  %v1610_v14 = vpop.permute.xlu2 %1609  ;;  %v1670_v32 = vsel %vm1650_vm14, %v3073_v63, %v1604_v56 }
 0x153   : > { %2278 = vmatmul.msk.bf16.gmra.mxu0 %vm1736_vm0, %v1689_v26  ;;  %v1676_v7 = vsel %vm1650_vm14, %v3130_v37, %v1610_v14 }
 0x15a   : > { %v1592_v11 = vpop.permute.xlu2 %1591 }
 0x15b   : > { %v1658_v29 = vsel %vm1650_vm14, %v3035_v16, %v1592_v11 }
 0x163   : > { %v1631_v18 = vpop.permute.xlu2 %1630 }
 0x16b   : > { %v1606_v62 = vpop.permute.xlu2 %1605 }
 0x16c   : > { %v1672_v23 = vsel %vm1650_vm14, %v3052_v15, %v1606_v62 }
 0x171   : > { %v1637_v43 = vpop.permute.xlu0 %1636 }
 0x172   : > { %v1703_v1 = vsel %vm1683_vm15, %v1670_v32, %v1637_v43 }
 0x173   : > { %2285 = vmatmul.msk.bf16.gmra.mxu2 %vm1736_vm0, %v1703_v1 }
 0x178   : > { %v1643_v20 = vpop.permute.xlu1 %1642 }
 0x179   : > { %v1709_v21 = vsel %vm1683_vm15, %v1676_v7, %v1643_v20  ;;  %v1598_v36 = vpop.permute.xlu0 %1597 }
 0x17a   : > { %2288 = vmatmul.msk.bf16.vlgmr.msra.gmra.mxu3 %vm1736_vm0, %v1709_v21  ;;  %v1664_v24 = vsel %vm1650_vm14, %v3042_v4, %v1598_v36  ;;  %v1645_v49 = vpop.permute.xlu2 %1644 }
 0x17b   : > { %v1697_v63 = vsel %vm1683_vm15, %v1664_v24, %v1631_v18 }
 0x17c   : > { %2282 = vmatmul.msk.bf16.gmra.mxu1 %vm1736_vm0, %v1697_v63 }
 0x180   : > { %v1625_v57 = vpop.permute.xlu1 %1624 }
 0x181   : > { %v1691_v34 = vsel %vm1683_vm15, %v1658_v29, %v1625_v57  ;;  %v1612_v31 = vpop.permute.xlu0 %1611 }
 0x182   : > { %2279 = vmatmul.msk.bf16.gmra.mxu0 %vm1736_vm0, %v1691_v34  ;;  %v1678_v37 = vsel %vm1650_vm14, %v3087_v13, %v1612_v31  ;;  %v1608_v12 = vpop.permute.xlu2 %1607 }
 0x183   : > { %v1711_v27 = vsel %vm1683_vm15, %v1678_v37, %v1645_v49  ;;  %v1674_v33 = vsel %vm1650_vm14, %v3094_v17, %v1608_v12 }
 0x189   : > { %v1600_v4 = vpop.permute.xlu0 %1599 }
 0x18a   : > { %2289 = vmatmul.msk.bf16.gmra.mxu3 %vm1736_vm0, %v1711_v27  ;;  %v1666_v6 = vsel %vm1650_vm14, %v3057_v41, %v1600_v4  ;;  %v1647_v13 = vpop.permute.xlu2 %1646 }
 0x18b   : > { %v1639_v54 = vpop.permute.xlu1 %1638 }
 0x18c   : > { %v1705_v16 = vsel %vm1683_vm15, %v1672_v23, %v1639_v54 }
 0x18d   : > { %2286 = vmatmul.msk.bf16.gmra.mxu2 %vm1736_vm0, %v1705_v16 }
 0x192   : > { %v1614_v40 = vpop.permute.xlu0 %1613 }
 0x193   : > { %v1633_v0 = vpop.permute.xlu1 %1632  ;;  %v1680_v44 = vsel %vm1650_vm14, %v3103_v19, %v1614_v40 }
 0x194   : > { %v1699_v46 = vsel %vm1683_vm15, %v1666_v6, %v1633_v0  ;;  %v1713_v15 = vsel %vm1683_vm15, %v1680_v44, %v1647_v13 }
 0x195   : > { %2283 = vmatmul.msk.bf16.gmra.mxu1 %vm1736_vm0, %v1699_v46 }
 0x19a   : > { %2290 = vmatmul.msk.bf16.gmra.mxu3 %vm1736_vm0, %v1713_v15  ;;  %v1616_v52 = vpop.permute.xlu0 %1615 }
 0x19b   : > { %v1641_v51 = vpop.permute.xlu1 %1640  ;;  %v1682_v19 = vsel %vm1650_vm14, %v3137_v50, %v1616_v52 }
 0x19c   : > { %v1707_v41 = vsel %vm1683_vm15, %v1674_v33, %v1641_v51 }
 0x19d   : > { %2287 = vmatmul.msk.bf16.gmra.mxu2 %vm1736_vm0, %v1707_v41 }
 0x1a3   : > { %v1649_v55 = vpop.permute.xlu1 %1648 }
 0x1a4   : > { %v1715_v53 = vsel %vm1683_vm15, %v1682_v19, %v1649_v55 }
 0x1aa   : > { %2291 = vmatmul.msk.bf16.gmra.mxu3 %vm1736_vm0, %v1715_v53 }
 0x1b0   : > { %v1782_v17 = vpop.f32.mrf.mxu0 }
 0x1b1   : > { %v1862_v28 = vpack.c.bf16 %v1782_v17, %v1782_v17  ;;  %v1995_v2 = vmul.f32 %v1782_v17, %v1782_v17  ;;  %v1926_v50 = vsel %vm1495_vm11, %v1782_v17, 0.0 }
 0x1b3   : > { %1894 = vst.msk [vmem:[%s3233_s18] sm:$0xf] %vm210_vm5, %v1862_v28  ;;  %v2027_v30 = vsel %vm1495_vm11, %v1995_v2, 0.0 }
 0x1b8   : > { %v1784_v58 = vpop.f32.mrf.mxu0 }
 0x1b9   : > { %v1863_v59 = vpack.c.bf16 %v1784_v58, %v1784_v58  ;;  %v1927_v10 = vsel %vm1495_vm11, %v1784_v58, 0.0  ;;  %v1996_v45 = vmul.f32 %v1784_v58, %v1784_v58 }
 0x1ba   : > { %v1928_v22 = vadd.f32 %v1927_v10, %v1926_v50 }
 0x1bb   : > { %1895 = vst.msk [vmem:[%s3233_s18 + $0x4] sm:$0xf] %vm210_vm5, %v1863_v59  ;;  %v2028_v47 = vsel %vm1495_vm11, %v1996_v45, 0.0 }
 0x1bc   : > { %v2029_v60 = vadd.f32 %v2028_v47, %v2027_v30 }
 0x1be   : > { %v3243_v61 = vpop.f32.mrf.mxu1 }
 0x1bf   : > { %v1870_v3 = vpack.c.bf16 %v3243_v61, %v3243_v61  ;;  %v2003_v45 = vmul.f32 %v3243_v61, %v3243_v61 }
 0x1c0   : > { %v1787_v38 = vpop.f32.mrf.mxu0 }
 0x1c1   : > { %1902 = vst.msk [vmem:[%s3233_s18 + $0x20] sm:$0xf] %vm210_vm5, %v1870_v3  ;;  %v1864_v25 = vpack.c.bf16 %v1787_v38, %v1787_v38  ;;  %v1929_v35 = vsel %vm1495_vm11, %v1787_v38, 0.0  ;;  %v1997_v9 = vmul.f32 %v1787_v38, %v1787_v38  ;;  %v1941_v38 = vsel %vm1495_vm11, %v3243_v61, 0.0 }
 0x1c2   : > { %v1930_v42 = vadd.f32 %v1929_v35, %v1928_v22 }
 0x1c3   : > { %1896 = vst.msk [vmem:[%s3233_s18 + $0x8] sm:$0xf] %vm210_vm5, %v1864_v25  ;;  %v2030_v39 = vsel %vm1495_vm11, %v1997_v9, 0.0 }
 0x1c4   : > { %v2031_v5 = vadd.f32 %v2030_v39, %v2029_v60  ;;  %v2042_v39 = vsel %vm1495_vm11, %v2003_v45, 0.0 }
 0x1c6   : > { %v3253_v48 = vpop.f32.mrf.mxu1 }
 0x1c7   : > { %v1871_v8 = vpack.c.bf16 %v3253_v48, %v3253_v48  ;;  %v2004_v25 = vmul.f32 %v3253_v48, %v3253_v48 }
 0x1c8   : > { %v1789_v26 = vpop.f32.mrf.mxu0 }
 0x1c9   : > { %1903 = vst.msk [vmem:[%s3233_s18 + $0x24] sm:$0xf] %vm210_vm5, %v1871_v8  ;;  %v1865_v14 = vpack.c.bf16 %v1789_v26, %v1789_v26  ;;  %v1998_v31 = vmul.f32 %v1789_v26, %v1789_v26  ;;  %v1931_v37 = vsel %vm1495_vm11, %v1789_v26, 0.0 }
 0x1ca   : > { %v1932_v0 = vadd.f32 %v1931_v37, %v1930_v42 }
 0x1cb   : > { %1897 = vst.msk [vmem:[%s3233_s18 + $0xc] sm:$0xf] %vm210_vm5, %v1865_v14  ;;  %v2032_v16 = vsel %vm1495_vm11, %v1998_v31, 0.0 }
 0x1cc   : > { %v2033_v51 = vadd.f32 %v2032_v16, %v2031_v5  ;;  %v1943_v5 = vsel %vm1495_vm11, %v3253_v48, 0.0 }
 0x1cd   : > { %v3261_v11 = vpop.f32.mrf.mxu2 }
 0x1ce   : > { %v1878_v56 = vpack.c.bf16 %v3261_v11, %v3261_v11  ;;  %v3265_v18 = vpop.f32.mrf.mxu1 }
 0x1cf   : > { %v1872_v32 = vpack.c.bf16 %v3265_v18, %v3265_v18  ;;  %v2005_v8 = vmul.f32 %v3265_v18, %v3265_v18 }
 0x1d0   : > { %1910 = vst.msk [vmem:[%s3233_s18 + $0x40] sm:$0xf] %vm210_vm5, %v1878_v56  ;;  %v1792_v43 = vpop.f32.mrf.mxu0  ;;  %v2044_v56 = vsel %vm1495_vm11, %v2004_v25, 0.0 }
 0x1d1   : > { %1904 = vst.msk [vmem:[%s3233_s18 + $0x28] sm:$0xf] %vm210_vm5, %v1872_v32  ;;  %v1866_v1 = vpack.c.bf16 %v1792_v43, %v1792_v43  ;;  %v1999_v27 = vmul.f32 %v1792_v43, %v1792_v43  ;;  %v1933_v12 = vsel %vm1495_vm11, %v1792_v43, 0.0  ;;  %v1945_v32 = vsel %vm1495_vm11, %v3265_v18, 0.0 }
 0x1d2   : > { %v1934_v41 = vadd.f32 %v1933_v12, %v1932_v0 }
 0x1d3   : > { %1898 = vst.msk [vmem:[%s3233_s18 + $0x10] sm:$0xf] %vm210_vm5, %v1866_v1  ;;  %v2034_v44 = vsel %vm1495_vm11, %v1999_v27, 0.0 }
 0x1d4   : > { %v2035_v53 = vadd.f32 %v2034_v44, %v2033_v51 }
 0x1d5   : > { %v3275_v7 = vpop.f32.mrf.mxu2 }
 0x1d6   : > { %v1879_v20 = vpack.c.bf16 %v3275_v7, %v3275_v7  ;;  %v3279_v21 = vpop.f32.mrf.mxu1 }
 0x1d7   : > { %v1873_v62 = vpack.c.bf16 %v3279_v21, %v3279_v21  ;;  %v2006_v43 = vmul.f32 %v3279_v21, %v3279_v21 }
 0x1d8   : > { %1911 = vst.msk [vmem:[%s3233_s18 + $0x44] sm:$0xf] %vm210_vm5, %v1879_v20  ;;  %v1794_v36 = vpop.f32.mrf.mxu0 }
 0x1d9   : > { %1905 = vst.msk [vmem:[%s3233_s18 + $0x2c] sm:$0xf] %vm210_vm5, %v1873_v62  ;;  %v1867_v24 = vpack.c.bf16 %v1794_v36, %v1794_v36  ;;  %v2000_v40 = vmul.f32 %v1794_v36, %v1794_v36  ;;  %v1935_v46 = vsel %vm1495_vm11, %v1794_v36, 0.0  ;;  %v2046_v62 = vsel %vm1495_vm11, %v2005_v8, 0.0 }
 0x1da   : > { %v1936_v17 = vadd.f32 %v1935_v46, %v1934_v41  ;;  %v1947_v36 = vsel %vm1495_vm11, %v3279_v21, 0.0  ;;  %v2048_v31 = vsel %vm1495_vm11, %v2006_v43, 0.0 }
 0x1db   : > { %1899 = vst.msk [vmem:[%s3233_s18 + $0x14] sm:$0xf] %vm210_vm5, %v1867_v24  ;;  %v2036_v55 = vsel %vm1495_vm11, %v2000_v40, 0.0 }
 0x1dc   : > { %v2037_v50 = vadd.f32 %v2036_v55, %v2035_v53 }
 0x1f6   : > { %v3289_v63 = vpop.f32.mrf.mxu2 }
 0x1f7   : > { %v1880_v29 = vpack.c.bf16 %v3289_v63, %v3289_v63  ;;  %v1961_v8 = vsel %vm1495_vm11, %v3289_v63, 0.0 }
 0x1f9   : > { %1912 = vst.msk [vmem:[%s3233_s18 + $0x48] sm:$0xf] %vm210_vm5, %v1880_v29  ;;  %v3295_v57 = vpop.f32.mrf.mxu1 }
 0x1fa   : > { %v1874_v34 = vpack.c.bf16 %v3295_v57, %v3295_v57  ;;  %v2007_v24 = vmul.f32 %v3295_v57, %v3295_v57  ;;  %v1949_v37 = vsel %vm1495_vm11, %v3295_v57, 0.0 }
 0x1fc   : > { %1906 = vst.msk [vmem:[%s3233_s18 + $0x30] sm:$0xf] %vm210_vm5, %v1874_v34  ;;  %v2050_v12 = vsel %vm1495_vm11, %v2007_v24, 0.0 }
 0x1fd   : > { %v3301_v49 = vpop.f32.mrf.mxu3 }
 0x1fe   : > { %v1886_v4 = vpack.c.bf16 %v3301_v49, %v3301_v49  ;;  %v3306_v23 = vpop.f32.mrf.mxu2 }
 0x1ff   : > { %v1797_v54 = vpop.f32.mrf.mxu0  ;;  %v1881_v6 = vpack.c.bf16 %v3306_v23, %v3306_v23  ;;  %v1963_v43 = vsel %vm1495_vm11, %v3306_v23, 0.0 }
 0x200   : > { %1918 = vst.msk [vmem:[%s3233_s18 + $0x60] sm:$0xf] %vm210_vm5, %v1886_v4  ;;  %v1868_v13 = vpack.c.bf16 %v1797_v54, %v1797_v54  ;;  %v2001_v33 = vmul.f32 %v1797_v54, %v1797_v54  ;;  %v1937_v19 = vsel %vm1495_vm11, %v1797_v54, 0.0 }
 0x201   : > { %1913 = vst.msk [vmem:[%s3233_s18 + $0x4c] sm:$0xf] %vm210_vm5, %v1881_v6  ;;  %v1814_v15 = vpop.f32.mrf.mxu1  ;;  %v1938_v59 = vadd.f32 %v1937_v19, %v1936_v17 }
 0x202   : > { %v1875_v52 = vpack.c.bf16 %v1814_v15, %v1814_v15  ;;  %1900 = vst.msk [vmem:[%s3233_s18 + $0x18] sm:$0xf] %vm210_vm5, %v1868_v13  ;;  %v2038_v2 = vsel %vm1495_vm11, %v2001_v33, 0.0  ;;  %v2008_v4 = vmul.f32 %v1814_v15, %v1814_v15  ;;  %v1951_v40 = vsel %vm1495_vm11, %v1814_v15, 0.0 }
 0x203   : > { %v2039_v60 = vadd.f32 %v2038_v2, %v2037_v50  ;;  %v2011_v2 = vmul.f32 %v3261_v11, %v3261_v11 }
 0x204   : > { %1907 = vst.msk [vmem:[%s3233_s18 + $0x34] sm:$0xf] %vm210_vm5, %v1875_v52  ;;  %v2052_v46 = vsel %vm1495_vm11, %v2008_v4, 0.0 }
 0x205   : > { %v3324_v28 = vpop.f32.mrf.mxu3  ;;  %v2058_v25 = vsel %vm1495_vm11, %v2011_v2, 0.0 }
 0x206   : > { %v1887_v58 = vpack.c.bf16 %v3324_v28, %v3324_v28 }
 0x207   : > { %v1799_v10 = vpop.f32.mrf.mxu0 }
 0x208   : > { %1919 = vst.msk [vmem:[%s3233_s18 + $0x64] sm:$0xf] %vm210_vm5, %v1887_v58  ;;  %v1869_v22 = vpack.c.bf16 %v1799_v10, %v1799_v10  ;;  %v1939_v30 = vsel %vm1495_vm11, %v1799_v10, 0.0  ;;  %v2002_v47 = vmul.f32 %v1799_v10, %v1799_v10 }
 0x209   : > { %v1940_v3 = vadd.f32 %v1939_v30, %v1938_v59  ;;  %v1957_v30 = vsel %vm1495_vm11, %v3261_v11, 0.0  ;;  %v2013_v11 = vmul.f32 %v3289_v63, %v3289_v63 }
 0x20a   : > { %1901 = vst.msk [vmem:[%s3233_s18 + $0x1c] sm:$0xf] %vm210_vm5, %v1869_v22  ;;  %v2040_v35 = vsel %vm1495_vm11, %v2002_v47, 0.0  ;;  %v2012_v47 = vmul.f32 %v3275_v7, %v3275_v7 }
 0x20b   : > { %v1942_v9 = vadd.f32 %v1941_v38, %v1940_v3  ;;  %v2041_v42 = vadd.f32 %v2040_v35, %v2039_v60  ;;  %v1959_v35 = vsel %vm1495_vm11, %v3275_v7, 0.0  ;;  %v2062_v7 = vsel %vm1495_vm11, %v2013_v11, 0.0 }
 0x20d   : > { %v1944_v26 = vadd.f32 %v1943_v5, %v1942_v9  ;;  %v2043_v61 = vadd.f32 %v2042_v39, %v2041_v42  ;;  %v3346_v14 = vpop.f32.mrf.mxu3  ;;  %v2060_v5 = vsel %vm1495_vm11, %v2012_v47, 0.0 }
 0x20e   : > { %v1888_v1 = vpack.c.bf16 %v3346_v14, %v3346_v14 }
 0x20f   : > { %v1946_v48 = vadd.f32 %v1945_v32, %v1944_v26  ;;  %v2045_v20 = vadd.f32 %v2044_v56, %v2043_v61  ;;  %v2014_v26 = vmul.f32 %v3306_v23, %v3306_v23 }
 0x210   : > { %1920 = vst.msk [vmem:[%s3233_s18 + $0x68] sm:$0xf] %vm210_vm5, %v1888_v1  ;;  %v3362_v29 = vpop.f32.mrf.mxu2 }
 0x211   : > { %v2047_v18 = vadd.f32 %v2046_v62, %v2045_v20  ;;  %v1948_v34 = vadd.f32 %v1947_v36, %v1946_v48  ;;  %v1882_v27 = vpack.c.bf16 %v3362_v29, %v3362_v29  ;;  %v2015_v1 = vmul.f32 %v3362_v29, %v3362_v29 }
 0x212   : > { %v1817_v16 = vpop.f32.mrf.mxu1  ;;  %v2064_v36 = vsel %vm1495_vm11, %v2014_v26, 0.0  ;;  %v1965_v24 = vsel %vm1495_vm11, %v3362_v29, 0.0 }
 0x213   : > { %v1950_v21 = vadd.f32 %v1949_v37, %v1948_v34  ;;  %v2049_v54 = vadd.f32 %v2048_v31, %v2047_v18  ;;  %1914 = vst.msk [vmem:[%s3233_s18 + $0x50] sm:$0xf] %vm210_vm5, %v1882_v27  ;;  %v1876_v6 = vpack.c.bf16 %v1817_v16, %v1817_v16  ;;  %v2009_v33 = vmul.f32 %v1817_v16, %v1817_v16 }
 0x214   : > { %v1953_v41 = vsel %vm1495_vm11, %v1817_v16, 0.0  ;;  %v2066_v23 = vsel %vm1495_vm11, %v2015_v1, 0.0 }
 0x215   : > { %v3373_v0 = vpop.f32.mrf.mxu3  ;;  %v1952_v13 = vadd.f32 %v1951_v40, %v1950_v21  ;;  %v2051_v57 = vadd.f32 %v2050_v12, %v2049_v54  ;;  %1908 = vst.msk [vmem:[%s3233_s18 + $0x38] sm:$0xf] %vm210_vm5, %v1876_v6  ;;  %v2054_v19 = vsel %vm1495_vm11, %v2009_v33, 0.0 }
 0x216   : > { %v1889_v44 = vpack.c.bf16 %v3373_v0, %v3373_v0 }
 0x217   : > { %v2053_v51 = vadd.f32 %v2052_v46, %v2051_v57  ;;  %v1954_v52 = vadd.f32 %v1953_v41, %v1952_v13  ;;  %v2019_v57 = vmul.f32 %v3301_v49, %v3301_v49 }
 0x218   : > { %1921 = vst.msk [vmem:[%s3233_s18 + $0x6c] sm:$0xf] %vm210_vm5, %v1889_v44  ;;  %v1834_v15 = vpop.f32.mrf.mxu2 }
 0x219   : > { %v1883_v55 = vpack.c.bf16 %v1834_v15, %v1834_v15  ;;  %v2055_v53 = vadd.f32 %v2054_v19, %v2053_v51  ;;  %v2016_v18 = vmul.f32 %v1834_v15, %v1834_v15  ;;  %v1967_v37 = vsel %vm1495_vm11, %v1834_v15, 0.0 }
 0x21a   : > { %v1819_v17 = vpop.f32.mrf.mxu1  ;;  %v2074_v2 = vsel %vm1495_vm11, %v2019_v57, 0.0 }
 0x21b   : > { %1915 = vst.msk [vmem:[%s3233_s18 + $0x54] sm:$0xf] %vm210_vm5, %v1883_v55  ;;  %v1877_v58 = vpack.c.bf16 %v1819_v17, %v1819_v17  ;;  %v1955_v50 = vsel %vm1495_vm11, %v1819_v17, 0.0  ;;  %v2010_v59 = vmul.f32 %v1819_v17, %v1819_v17  ;;  %v2068_v16 = vsel %vm1495_vm11, %v2016_v18, 0.0 }
 0x21c   : > { %v1956_v45 = vadd.f32 %v1955_v50, %v1954_v52  ;;  %v1973_v52 = vsel %vm1495_vm11, %v3301_v49, 0.0  ;;  %v2020_v55 = vmul.f32 %v3324_v28, %v3324_v28  ;;  %v2021_v50 = vmul.f32 %v3346_v14, %v3346_v14 }
 0x21d   : > { %v3389_v10 = vpop.f32.mrf.mxu3  ;;  %1909 = vst.msk [vmem:[%s3233_s18 + $0x3c] sm:$0xf] %vm210_vm5, %v1877_v58  ;;  %v2056_v60 = vsel %vm1495_vm11, %v2010_v59, 0.0  ;;  %v1975_v58 = vsel %vm1495_vm11, %v3324_v28, 0.0  ;;  %v1979_v28 = vsel %vm1495_vm11, %v3373_v0, 0.0 }
 0x21e   : > { %v1890_v22 = vpack.c.bf16 %v3389_v10, %v3389_v10  ;;  %v1958_v3 = vadd.f32 %v1957_v30, %v1956_v45  ;;  %v2057_v38 = vadd.f32 %v2056_v60, %v2055_v53  ;;  %v2076_v49 = vsel %vm1495_vm11, %v2020_v55, 0.0 }
 0x21f   : > { %v2022_v30 = vmul.f32 %v3373_v0, %v3373_v0 }
 0x220   : > { %1922 = vst.msk [vmem:[%s3233_s18 + $0x70] sm:$0xf] %vm210_vm5, %v1890_v22  ;;  %v1960_v9 = vadd.f32 %v1959_v35, %v1958_v3  ;;  %v2059_v42 = vadd.f32 %v2058_v25, %v2057_v38  ;;  %v1837_v39 = vpop.f32.mrf.mxu2  ;;  %v1977_v22 = vsel %vm1495_vm11, %v3346_v14, 0.0  ;;  %v2078_v3 = vsel %vm1495_vm11, %v2021_v50, 0.0 }
 0x221   : > { %v1884_v61 = vpack.c.bf16 %v1837_v39, %v1837_v39  ;;  %v2017_v27 = vmul.f32 %v1837_v39, %v1837_v39  ;;  %v1969_v12 = vsel %vm1495_vm11, %v1837_v39, 0.0  ;;  %v2023_v38 = vmul.f32 %v3389_v10, %v3389_v10 }
 0x222   : > { %v1962_v56 = vadd.f32 %v1961_v8, %v1960_v9  ;;  %v2061_v32 = vadd.f32 %v2060_v5, %v2059_v42  ;;  %v2080_v14 = vsel %vm1495_vm11, %v2022_v30, 0.0  ;;  %v1981_v42 = vsel %vm1495_vm11, %v3389_v10, 0.0 }
 0x223   : > { %1916 = vst.msk [vmem:[%s3233_s18 + $0x58] sm:$0xf] %vm210_vm5, %v1884_v61  ;;  %v2070_v44 = vsel %vm1495_vm11, %v2017_v27, 0.0  ;;  %v2082_v26 = vsel %vm1495_vm11, %v2023_v38, 0.0 }
 0x224   : > { %v2063_v20 = vadd.f32 %v2062_v7, %v2061_v32  ;;  %v1964_v63 = vadd.f32 %v1963_v43, %v1962_v56 }
 0x225   : > { %v1854_v48 = vpop.f32.mrf.mxu3 }
 0x226   : > { %v1891_v62 = vpack.c.bf16 %v1854_v48, %v1854_v48  ;;  %v1966_v34 = vadd.f32 %v1965_v24, %v1964_v63  ;;  %v2065_v31 = vadd.f32 %v2064_v36, %v2063_v20  ;;  %v2024_v39 = vmul.f32 %v1854_v48, %v1854_v48 }
 0x227   : > { %v1983_v0 = vsel %vm1495_vm11, %v1854_v48, 0.0 }
 0x228   : > { %1923 = vst.msk [vmem:[%s3233_s18 + $0x74] sm:$0xf] %vm210_vm5, %v1891_v62  ;;  %v1968_v4 = vadd.f32 %v1967_v37, %v1966_v34  ;;  %v2067_v21 = vadd.f32 %v2066_v23, %v2065_v31  ;;  %v1839_v54 = vpop.f32.mrf.mxu2  ;;  %v2084_v7 = vsel %vm1495_vm11, %v2024_v39, 0.0 }
 0x229   : > { %v1885_v40 = vpack.c.bf16 %v1839_v54, %v1839_v54  ;;  %v2018_v29 = vmul.f32 %v1839_v54, %v1839_v54  ;;  %v1971_v46 = vsel %vm1495_vm11, %v1839_v54, 0.0 }
 0x22a   : > { %v1970_v6 = vadd.f32 %v1969_v12, %v1968_v4  ;;  %v2069_v13 = vadd.f32 %v2068_v16, %v2067_v21 }
 0x22b   : > { %1917 = vst.msk [vmem:[%s3233_s18 + $0x5c] sm:$0xf] %vm210_vm5, %v1885_v40  ;;  %v2072_v19 = vsel %vm1495_vm11, %v2018_v29, 0.0 }
 0x22c   : > { %v2071_v51 = vadd.f32 %v2070_v44, %v2069_v13  ;;  %v1972_v41 = vadd.f32 %v1971_v46, %v1970_v6 }
 0x22d   : > { %v1857_v33 = vpop.f32.mrf.mxu3 }
 0x22e   : > { %v1892_v15 = vpack.c.bf16 %v1857_v33, %v1857_v33  ;;  %v1974_v53 = vadd.f32 %v1973_v52, %v1972_v41  ;;  %v2073_v17 = vadd.f32 %v2072_v19, %v2071_v51  ;;  %v2025_v61 = vmul.f32 %v1857_v33, %v1857_v33 }
 0x22f   : > { %v1985_v43 = vsel %vm1495_vm11, %v1857_v33, 0.0 }
 0x230   : > { %1924 = vst.msk [vmem:[%s3233_s18 + $0x78] sm:$0xf] %vm210_vm5, %v1892_v15  ;;  %v1976_v59 = vadd.f32 %v1975_v58, %v1974_v53  ;;  %v2075_v45 = vadd.f32 %v2074_v2, %v2073_v17  ;;  %v2086_v10 = vsel %vm1495_vm11, %v2025_v61, 0.0 }
 0x232   : > { %v1978_v47 = vadd.f32 %v1977_v22, %v1976_v59  ;;  %v2077_v60 = vadd.f32 %v2076_v49, %v2075_v45 }
 0x234   : > { %v2079_v35 = vadd.f32 %v2078_v3, %v2077_v60  ;;  %v1980_v11 = vadd.f32 %v1979_v28, %v1978_v47 }
 0x235   : > { %v1859_v25 = vpop.f32.mrf.mxu3 }
 0x236   : > { %v1893_v9 = vpack.c.bf16 %v1859_v25, %v1859_v25  ;;  %v1982_v5 = vadd.f32 %v1981_v42, %v1980_v11  ;;  %v2081_v8 = vadd.f32 %v2080_v14, %v2079_v35  ;;  %v2026_v1 = vmul.f32 %v1859_v25, %v1859_v25 }
 0x237   : > { %v1987_v62 = vsel %vm1495_vm11, %v1859_v25, 0.0 }
 0x238   : > { %1925 = vst.msk [vmem:[%s3233_s18 + $0x7c] sm:$0xf] %vm210_vm5, %v1893_v9  ;;  %v1984_v56 = vadd.f32 %v1983_v0, %v1982_v5  ;;  %v2083_v32 = vadd.f32 %v2082_v26, %v2081_v8  ;;  %v2088_v18 = vsel %vm1495_vm11, %v2026_v1, 0.0 }
 0x23a   : > { %v2085_v20 = vadd.f32 %v2084_v7, %v2083_v32  ;;  %v1986_v63 = vadd.f32 %v1985_v43, %v1984_v56 }
 0x23c   : > { %v2087_v36 = vadd.f32 %v2086_v10, %v2085_v20  ;;  %v1988_v24 = vadd.f32 %v1987_v62, %v1986_v63 }
 0x23e   : > { %v1989_v48 = vrot.slane %v1988_v24, 4  ;;  %v2089_v34 = vadd.f32 %v2088_v18, %v2087_v36 }
 0x240   : > { %v1990_v31 = vadd.f32 %v1989_v48, %v1988_v24  ;;  %v2090_v23 = vrot.slane %v2089_v34, 4 }
 0x242   : > { %v1991_v37 = vrot.slane %v1990_v31, 2  ;;  %v2091_v27 = vadd.f32 %v2090_v23, %v2089_v34 }
 0x244   : > { %v1992_v4 = vadd.f32 %v1991_v37, %v1990_v31  ;;  %v2092_v21 = vrot.slane %v2091_v27, 2 }
 0x246   : > { %v1993_v54 = vrot.slane %v1992_v4, 1  ;;  %v2093_v16 = vadd.f32 %v2092_v21, %v2091_v27 }
 0x248   : > { %v2094_v12 = vrot.slane %v2093_v16, 1  ;;  %v1994_v40 = vadd.f32 %v1993_v54, %v1992_v4 }
 0x24a   : > { %v2095_v29 = vadd.f32 %v2094_v12, %v2093_v16 }
 0x24c   : > { %v2097_v6 = vsel %vm2096_vm1, %v1994_v40, %v2095_v29 }
 0x24d   : > { %2099 = vst.msk [vmem:[%s208_s21] sm:$0x3] %vm2098_vm2, %v2097_v6 }
 0x24e PF: > { %s15_s15 = sadd.s32 1, %s2434_s15  }
 0x24f   : > { %p12_p4 = scmp.ge.s32.totalorder %s15_s15, 4  }
 0x251   :  { %14 = sbr.rel (!%p12_p4) target bundleno = 1 (0x1), region = 76 }

</bundles_post_ra>
